<compile_context>
chip_gen: v7x
topology: tpu7x:2x2x1
jax: 0.10.0
libtpu: 0.0.40
codegen_flags: <defaults>
</compile_context>

<pallas_src>
import numpy as np
import jax
import jax.numpy as jnp
from jax import lax
from jax.experimental import pallas as pl
from jax.experimental.pallas import tpu as pltpu

BN_EPS = 1e-3


# ------------------------ parameters (deterministic) ----------------------- #

def _bn_fold(c):
    # Freshly-initialized BatchNorm2d (gamma=1, beta=0, mean=0, var=1), eval mode.
    gamma = jnp.ones((c,), jnp.float32)
    beta = jnp.zeros((c,), jnp.float32)
    mean = jnp.zeros((c,), jnp.float32)
    var = jnp.ones((c,), jnp.float32)
    scale = gamma / jnp.sqrt(var + BN_EPS)
    bias = beta - mean * scale
    return scale, bias


def init_extended_mobilenet_params(key, version="mobile2"):
    bbone_couts = [96, 1280] if version == "mobile2" else [672, 480]
    settings = [(bbone_couts[-1], 512), (512, 256), (256, 256), (256, 128)]
    params = []
    for cin, cout in settings:
        cmid = cout // 2
        key, k1, k2, k3 = jax.random.split(key, 4)
        w1 = jax.random.normal(k1, (cin, cmid), jnp.float32) * (1.0 / cin) ** 0.5
        wdw = jax.random.normal(k2, (9, cmid), jnp.float32) * (1.0 / 9.0) ** 0.5
        w2 = jax.random.normal(k3, (cmid, cout), jnp.float32) * (1.0 / cmid) ** 0.5
        s1, b1 = _bn_fold(cmid)
        sd, bd = _bn_fold(cmid)
        s2, b2 = _bn_fold(cout)
        params.append(dict(
            cin=cin, cmid=cmid, cout=cout,
            # BN scale folded into the conv weights; matmul weights in bf16.
            w1=(w1 * s1[None, :]).astype(jnp.bfloat16),
            b1=b1.reshape(1, cmid).astype(jnp.float32),
            wdw=(wdw * sd[None, :]).reshape(9, 1, cmid).astype(jnp.float32),
            bdw=bd.reshape(1, cmid).astype(jnp.float32),
            w2=(w2 * s2[None, :]).astype(jnp.bfloat16),
            b2=b2.reshape(1, cout).astype(jnp.float32),
        ))
    couts = bbone_couts + [s[1] for s in settings]
    return params, bbone_couts, couts


# ------------------- depthwise 3x3 / s2 / p1 tap geometry ------------------ #

def _dw_taps(N, H, W):
    """Static geometry for a 3x3, stride-2, pad-1 depthwise conv on (N,H,W).

    Returns (Ho, Wo, id_taps, g_taps, G_stacked):
      id_taps   : tap ids k whose gather is an exact identity (Mo == M).
      g_taps    : tap ids gathered through G_stacked (one Mo-row slab each).
      G_stacked : (len(g_taps)*Mo, M) float32 0/1 matrix (or None).  Slab t
                  selects, for every flattened output pixel, its g_taps[t]-th
                  source pixel (all-zero rows where the tap is in the padding).
    """
    Ho = (H - 1) // 2 + 1
    Wo = (W - 1) // 2 + 1
    M, Mo = N * H * W, N * Ho * Wo
    id_taps, g_taps, mats = [], [], []
    for ki in range(3):
        for kj in range(3):
            G = np.zeros((Mo, M), np.float32)
            any_valid = False
            for n in range(N):
                for io in range(Ho):
                    for jo in range(Wo):
                        i = 2 * io - 1 + ki
                        j = 2 * jo - 1 + kj
                        if 0 <= i < H and 0 <= j < W:
                            G[(n * Ho + io) * Wo + jo, (n * H + i) * W + j] = 1.0
                            any_valid = True
            if not any_valid:
                continue
            k = ki * 3 + kj
            if Mo == M and np.array_equal(G, np.eye(M, dtype=np.float32)):
                id_taps.append(k)
            else:
                g_taps.append(k)
                mats.append(G)
    G_stacked = np.concatenate(mats, axis=0) if mats else None
    return Ho, Wo, id_taps, g_taps, G_stacked


# ---------------------- fused extras chain (one kernel) -------------------- #

def _run_extras_fused(x_nchw, params):
    """Run all extra blocks in a single Pallas kernel; returns NHWC outputs."""
    N, Cin0, H, W = x_nchw.shape
    # Free (layout-preserving) reshape: NCHW -> (N, Cin, H*W).  The NCHW->NHWC
    # transpose is folded into the first matmul inside the kernel.
    x3d = x_nchw.reshape(N, Cin0, H * W)

    flat_inputs, in_specs = [], []
    pref_slots, pref_bufs = [], []   # inputs left in HBM, prefetched in-kernel

    def add_vmem(arr):
        flat_inputs.append(arr)
        in_specs.append(pl.BlockSpec(memory_space=pltpu.MemorySpace.VMEM))
        return ("vmem", len(flat_inputs) - 1)

    def add_pref(arr):
        flat_inputs.append(arr)
        in_specs.append(pl.BlockSpec(memory_space=pl.ANY))
        pref_slots.append(len(flat_inputs) - 1)
        pref_bufs.append(pltpu.VMEM(arr.shape, arr.dtype))
        return ("pref", len(pref_slots) - 1)

    add_vmem(x3d)   # slot 0: block-1 input, needed immediately -> auto DMA

    metas, out_shapes, out_4d = [], [], []
    h_, w_ = H, W
    for bi, p in enumerate(params):
        cmid, cout = p["cmid"], p["cout"]
        Ho, Wo, id_taps, g_taps, G = _dw_taps(N, h_, w_)
        Mo = N * Ho * Wo
        meta = dict(cmid=cmid, cout=cout, Mo=Mo,
                    id_taps=tuple(id_taps), g_taps=tuple(g_taps))
        # block-1's first 1x1 weight is needed for the very first matmul ->
        # auto-DMA path; every other sizable weight is prefetched behind it.
        meta["w1"] = add_vmem(p["w1"]) if bi == 0 else add_pref(p["w1"])
        meta["b1"] = add_vmem(p["b1"])
        meta["wdw"] = add_vmem(p["wdw"])
        meta["bdw"] = add_vmem(p["bdw"])
        if G is None:
            meta["G"] = None
        else:
            g_arr = jnp.asarray(G, jnp.bfloat16)     # 0/1 exact in bf16
            meta["G"] = add_pref(g_arr) if g_arr.size >= 8192 else add_vmem(g_arr)
        meta["w2"] = add_pref(p["w2"])
        meta["b2"] = add_vmem(p["b2"])
        metas.append(meta)
        out_shapes.append(jax.ShapeDtypeStruct((Mo, cout), x_nchw.dtype))
        out_4d.append((N, Ho, Wo, cout))
        h_, w_ = Ho, Wo

    n_in, n_out, n_pref = len(flat_inputs), len(out_shapes), len(pref_bufs)

    def kernel(*refs):
        in_refs = refs[:n_in]
        out_refs = refs[n_in:n_in + n_out]
        wbufs = refs[n_in + n_out:n_in + n_out + n_pref]
        sems = refs[n_in + n_out + n_pref]

        # Kick off HBM->VMEM prefetch of every weight NOT needed for block-1's
        # first matmul so their DMA overlaps block-1 compute (item 4).
        copies = []
        for i, slot in enumerate(pref_slots):
            cp = pltpu.make_async_copy(in_refs[slot], wbufs[i], sems.at[i])
            cp.start()
            copies.append(cp)

        def get(tag):
            kind, idx = tag
            if kind == "vmem":
                return in_refs[idx][...]
            copies[idx].wait()            # each prefetched operand used once
            return wbufs[idx][...]

        # ---- block-1 pw1 with the NCHW->NHWC transpose folded in (item 3) --
        # x_ref[n] is (Cin, H*W); contracting over Cin (transposed LHS, native
        # on the MXU) yields the NHWC-flattened (H*W, Cmid) directly.
        w1 = get(metas[0]["w1"])                       # (Cin, Cmid) bf16
        rows = [
            lax.dot_general(in_refs[0][n].astype(jnp.bfloat16), w1,
                            dimension_numbers=(((0,), (0,)), ((), ())),
                            preferred_element_type=jnp.float32)
            for n in range(N)
        ]
        h1 = rows[0] if N == 1 else jnp.concatenate(rows, axis=0)   # (M, Cmid)

        act = None
        for bi, meta in enumerate(metas):
            Mo = meta["Mo"]

            # --- 1x1 conv (BN folded) + ReLU6 ---
            if bi > 0:
                h1 = jnp.dot(act.astype(jnp.bfloat16), get(meta["w1"]),
                             preferred_element_type=jnp.float32)
            h1 = jnp.clip(h1 + get(meta["b1"]), 0.0, 6.0)            # (M, Cmid)

            # --- depthwise 3x3 / s2 / p1 + ReLU6 (items 1 & 2) ---
            wdw = get(meta["wdw"])                                   # (9,1,Cmid)
            acc = None
            for k in meta["id_taps"]:                                # identity taps
                term = h1 * wdw[k]
                acc = term if acc is None else acc + term
            if meta["G"] is not None:
                # ONE stacked bf16 gather matmul for all remaining taps.
                taps = jnp.dot(get(meta["G"]), h1.astype(jnp.bfloat16),
                               preferred_element_type=jnp.float32)   # (T*Mo, Cmid)
                for t, k in enumerate(meta["g_taps"]):
                    term = taps[t * Mo:(t + 1) * Mo, :] * wdw[k]     # VPU
                    acc = term if acc is None else acc + term
            hd = jnp.clip(acc + get(meta["bdw"]), 0.0, 6.0)          # (Mo, Cmid)

            # --- 1x1 conv (BN folded) + ReLU6 ---
            h2 = jnp.dot(hd.astype(jnp.bfloat16), get(meta["w2"]),
                         preferred_element_type=jnp.float32)
            h2 = jnp.clip(h2 + get(meta["b2"]), 0.0, 6.0)            # (Mo, Cout)

            out_refs[bi][...] = h2.astype(out_refs[bi].dtype)
            act = h2

    outs = pl.pallas_call(
        kernel,
        out_shape=tuple(out_shapes),
        in_specs=in_specs,
        out_specs=tuple(pl.BlockSpec(memory_space=pltpu.MemorySpace.VMEM)
                        for _ in out_shapes),
        scratch_shapes=pref_bufs + [pltpu.SemaphoreType.DMA((n_pref,))],
        compiler_params=pltpu.CompilerParams(vmem_limit_bytes=32 * 1024 * 1024),
    )(*flat_inputs)
    return [o.reshape(s) for o, s in zip(outs, out_4d)]


# ------------------------------- forward ----------------------------------- #

def extended_mobilenet_forward(backbone_feats_nchw, params):
    """Reproduces ExtendedMobileNet.forward given the backbone feature maps.

        xs = backbone(x); x = xs[1]
        for block in extra: x = block(x); xs.append(x)
        return xs
    """
    # TODO(synk): MobileNetV2/MobileNetV3L backbone definitions are not included
    # in the reference snippet; its two output feature maps are taken as inputs.
    xs = list(backbone_feats_nchw)
    outs_nhwc = _run_extras_fused(xs[1], params)     # all 4 extra blocks, 1 kernel
    for o in outs_nhwc:
        xs.append(jnp.transpose(o, (0, 3, 1, 2)))    # tiny outputs back to NCHW
    return xs


# --------------------------------- main ------------------------------------ #

if __name__ == "__main__":
    root = jax.random.PRNGKey(0)
    k_f0, k_f1, k_par = jax.random.split(root, 3)

    params, bbone_couts, couts = init_extended_mobilenet_params(k_par, "mobile2")

    # Small synthetic backbone feature maps (version='mobile2': channels 96, 1280)
    N = 2
    feat0 = jax.random.normal(k_f0, (N, bbone_couts[0], 16, 16), jnp.float32)
    feat1 = jax.random.normal(k_f1, (N, bbone_couts[1], 8, 8), jnp.float32)

    xs = extended_mobilenet_forward([feat0, feat1], params)
    xs = [jax.block_until_ready(t) for t in xs]

    expected_shapes = [
        (N, 96, 16, 16),
        (N, 1280, 8, 8),
        (N, 512, 4, 4),
        (N, 256, 2, 2),
        (N, 256, 1, 1),
        (N, 128, 1, 1),
    ]
    assert len(xs) == len(expected_shapes)
    for t, s in zip(xs, expected_shapes):
        assert tuple(t.shape) == s, (t.shape, s)
        assert bool(jnp.all(jnp.isfinite(t)))
    # ReLU6 range check on kernel outputs
    for t in xs[2:]:
        assert float(t.min()) >= 0.0 and float(t.max()) <= 6.0

    print("KERNEL_OK")
</pallas_src>

<mosaic_0001>
module attributes {stable_mosaic.version = 11 : i64} {
  func.func @kernel(%arg0: memref<2x1280x64xf32, #tpu.memory_space<vmem>>, %arg1: memref<1280x256xbf16, #tpu.memory_space<vmem>>, %arg2: memref<1x256xf32, #tpu.memory_space<vmem>>, %arg3: memref<9x1x256xf32, #tpu.memory_space<vmem>>, %arg4: memref<1x256xf32, #tpu.memory_space<vmem>>, %arg5: memref<288x128xbf16, #tpu.memory_space<any>>, %arg6: memref<256x512xbf16, #tpu.memory_space<any>>, %arg7: memref<1x512xf32, #tpu.memory_space<vmem>>, %arg8: memref<512x128xbf16, #tpu.memory_space<any>>, %arg9: memref<1x128xf32, #tpu.memory_space<vmem>>, %arg10: memref<9x1x128xf32, #tpu.memory_space<vmem>>, %arg11: memref<1x128xf32, #tpu.memory_space<vmem>>, %arg12: memref<72x32xbf16, #tpu.memory_space<vmem>>, %arg13: memref<128x256xbf16, #tpu.memory_space<any>>, %arg14: memref<1x256xf32, #tpu.memory_space<vmem>>, %arg15: memref<256x128xbf16, #tpu.memory_space<any>>, %arg16: memref<1x128xf32, #tpu.memory_space<vmem>>, %arg17: memref<9x1x128xf32, #tpu.memory_space<vmem>>, %arg18: memref<1x128xf32, #tpu.memory_space<vmem>>, %arg19: memref<8x8xbf16, #tpu.memory_space<vmem>>, %arg20: memref<128x256xbf16, #tpu.memory_space<any>>, %arg21: memref<1x256xf32, #tpu.memory_space<vmem>>, %arg22: memref<256x64xbf16, #tpu.memory_space<any>>, %arg23: memref<1x64xf32, #tpu.memory_space<vmem>>, %arg24: memref<9x1x64xf32, #tpu.memory_space<vmem>>, %arg25: memref<1x64xf32, #tpu.memory_space<vmem>>, %arg26: memref<64x128xbf16, #tpu.memory_space<any>>, %arg27: memref<1x128xf32, #tpu.memory_space<vmem>>, %arg28: memref<32x512xf32, #tpu.memory_space<vmem>>, %arg29: memref<8x256xf32, #tpu.memory_space<vmem>>, %arg30: memref<2x256xf32, #tpu.memory_space<vmem>>, %arg31: memref<2x128xf32, #tpu.memory_space<vmem>>, %arg32: memref<288x128xbf16, #tpu.memory_space<vmem>>, %arg33: memref<256x512xbf16, #tpu.memory_space<vmem>>, %arg34: memref<512x128xbf16, #tpu.memory_space<vmem>>, %arg35: memref<128x256xbf16, #tpu.memory_space<vmem>>, %arg36: memref<256x128xbf16, #tpu.memory_space<vmem>>, %arg37: memref<128x256xbf16, #tpu.memory_space<vmem>>, %arg38: memref<256x64xbf16, #tpu.memory_space<vmem>>, %arg39: memref<64x128xbf16, #tpu.memory_space<vmem>>, %arg40: memref<8x!tpu.dma_semaphore, #tpu.memory_space<semaphore_mem>>) attributes {dimension_semantics = [], scalar_prefetch = 0 : i64, scratch_operands = 9 : i64, tpu.core_type = #tpu.core_type<tc>} {
    %c0_i32 = arith.constant 0 : i32
    %0 = tpu.memref_slice %arg40[%c0_i32] : memref<8x!tpu.dma_semaphore, #tpu.memory_space<semaphore_mem>> -> memref<1x!tpu.dma_semaphore, #tpu.memory_space<semaphore_mem>>
    %1 = tpu.memref_squeeze %0 : memref<1x!tpu.dma_semaphore, #tpu.memory_space<semaphore_mem>> -> memref<!tpu.dma_semaphore, #tpu.memory_space<semaphore_mem>>
    tpu.enqueue_dma source(%arg5 : memref<288x128xbf16, #tpu.memory_space<any>>) target(%arg32 : memref<288x128xbf16, #tpu.memory_space<vmem>>) target_semaphore(%1 : memref<!tpu.dma_semaphore, #tpu.memory_space<semaphore_mem>>)
    %c1_i32 = arith.constant 1 : i32
    %2 = tpu.memref_slice %arg40[%c1_i32] : memref<8x!tpu.dma_semaphore, #tpu.memory_space<semaphore_mem>> -> memref<1x!tpu.dma_semaphore, #tpu.memory_space<semaphore_mem>>
    %3 = tpu.memref_squeeze %2 : memref<1x!tpu.dma_semaphore, #tpu.memory_space<semaphore_mem>> -> memref<!tpu.dma_semaphore, #tpu.memory_space<semaphore_mem>>
    tpu.enqueue_dma source(%arg6 : memref<256x512xbf16, #tpu.memory_space<any>>) target(%arg33 : memref<256x512xbf16, #tpu.memory_space<vmem>>) target_semaphore(%3 : memref<!tpu.dma_semaphore, #tpu.memory_space<semaphore_mem>>)
    %c2_i32 = arith.constant 2 : i32
    %4 = tpu.memref_slice %arg40[%c2_i32] : memref<8x!tpu.dma_semaphore, #tpu.memory_space<semaphore_mem>> -> memref<1x!tpu.dma_semaphore, #tpu.memory_space<semaphore_mem>>
    %5 = tpu.memref_squeeze %4 : memref<1x!tpu.dma_semaphore, #tpu.memory_space<semaphore_mem>> -> memref<!tpu.dma_semaphore, #tpu.memory_space<semaphore_mem>>
    tpu.enqueue_dma source(%arg8 : memref<512x128xbf16, #tpu.memory_space<any>>) target(%arg34 : memref<512x128xbf16, #tpu.memory_space<vmem>>) target_semaphore(%5 : memref<!tpu.dma_semaphore, #tpu.memory_space<semaphore_mem>>)
    %c3_i32 = arith.constant 3 : i32
    %6 = tpu.memref_slice %arg40[%c3_i32] : memref<8x!tpu.dma_semaphore, #tpu.memory_space<semaphore_mem>> -> memref<1x!tpu.dma_semaphore, #tpu.memory_space<semaphore_mem>>
    %7 = tpu.memref_squeeze %6 : memref<1x!tpu.dma_semaphore, #tpu.memory_space<semaphore_mem>> -> memref<!tpu.dma_semaphore, #tpu.memory_space<semaphore_mem>>
    tpu.enqueue_dma source(%arg13 : memref<128x256xbf16, #tpu.memory_space<any>>) target(%arg35 : memref<128x256xbf16, #tpu.memory_space<vmem>>) target_semaphore(%7 : memref<!tpu.dma_semaphore, #tpu.memory_space<semaphore_mem>>)
    %c4_i32 = arith.constant 4 : i32
    %8 = tpu.memref_slice %arg40[%c4_i32] : memref<8x!tpu.dma_semaphore, #tpu.memory_space<semaphore_mem>> -> memref<1x!tpu.dma_semaphore, #tpu.memory_space<semaphore_mem>>
    %9 = tpu.memref_squeeze %8 : memref<1x!tpu.dma_semaphore, #tpu.memory_space<semaphore_mem>> -> memref<!tpu.dma_semaphore, #tpu.memory_space<semaphore_mem>>
    tpu.enqueue_dma source(%arg15 : memref<256x128xbf16, #tpu.memory_space<any>>) target(%arg36 : memref<256x128xbf16, #tpu.memory_space<vmem>>) target_semaphore(%9 : memref<!tpu.dma_semaphore, #tpu.memory_space<semaphore_mem>>)
    %c5_i32 = arith.constant 5 : i32
    %10 = tpu.memref_slice %arg40[%c5_i32] : memref<8x!tpu.dma_semaphore, #tpu.memory_space<semaphore_mem>> -> memref<1x!tpu.dma_semaphore, #tpu.memory_space<semaphore_mem>>
    %11 = tpu.memref_squeeze %10 : memref<1x!tpu.dma_semaphore, #tpu.memory_space<semaphore_mem>> -> memref<!tpu.dma_semaphore, #tpu.memory_space<semaphore_mem>>
    tpu.enqueue_dma source(%arg20 : memref<128x256xbf16, #tpu.memory_space<any>>) target(%arg37 : memref<128x256xbf16, #tpu.memory_space<vmem>>) target_semaphore(%11 : memref<!tpu.dma_semaphore, #tpu.memory_space<semaphore_mem>>)
    %c6_i32 = arith.constant 6 : i32
    %12 = tpu.memref_slice %arg40[%c6_i32] : memref<8x!tpu.dma_semaphore, #tpu.memory_space<semaphore_mem>> -> memref<1x!tpu.dma_semaphore, #tpu.memory_space<semaphore_mem>>
    %13 = tpu.memref_squeeze %12 : memref<1x!tpu.dma_semaphore, #tpu.memory_space<semaphore_mem>> -> memref<!tpu.dma_semaphore, #tpu.memory_space<semaphore_mem>>
    tpu.enqueue_dma source(%arg22 : memref<256x64xbf16, #tpu.memory_space<any>>) target(%arg38 : memref<256x64xbf16, #tpu.memory_space<vmem>>) target_semaphore(%13 : memref<!tpu.dma_semaphore, #tpu.memory_space<semaphore_mem>>)
    %c7_i32 = arith.constant 7 : i32
    %14 = tpu.memref_slice %arg40[%c7_i32] : memref<8x!tpu.dma_semaphore, #tpu.memory_space<semaphore_mem>> -> memref<1x!tpu.dma_semaphore, #tpu.memory_space<semaphore_mem>>
    %15 = tpu.memref_squeeze %14 : memref<1x!tpu.dma_semaphore, #tpu.memory_space<semaphore_mem>> -> memref<!tpu.dma_semaphore, #tpu.memory_space<semaphore_mem>>
    tpu.enqueue_dma source(%arg26 : memref<64x128xbf16, #tpu.memory_space<any>>) target(%arg39 : memref<64x128xbf16, #tpu.memory_space<vmem>>) target_semaphore(%15 : memref<!tpu.dma_semaphore, #tpu.memory_space<semaphore_mem>>)
    %c0 = arith.constant 0 : index
    %c0_0 = arith.constant 0 : index
    %16 = vector.load %arg1[%c0, %c0_0] : memref<1280x256xbf16, #tpu.memory_space<vmem>>, vector<1280x256xbf16>
    %c0_1 = arith.constant 0 : index
    %c0_2 = arith.constant 0 : index
    %c0_3 = arith.constant 0 : index
    %17 = vector.load %arg0[%c0_1, %c0_2, %c0_3] : memref<2x1280x64xf32, #tpu.memory_space<vmem>>, vector<1x1280x64xf32>
    %18 = vector.shape_cast %17 : vector<1x1280x64xf32> to vector<1280x64xf32>
    %19 = arith.truncf %18 : vector<1280x64xf32> to vector<1280x64xbf16>
    %cst = arith.constant dense<0.000000e+00> : vector<64x256xf32>
    %20 = tpu.matmul %19, %16, %cst {dimension_numbers = #tpu.dot_dimension_numbers<[0], [0], [1], [1], [0, 1, 1, 1], [], []>} : vector<1280x64xbf16>, vector<1280x256xbf16>, vector<64x256xf32> -> vector<64x256xf32>
    %c1 = arith.constant 1 : index
    %c0_4 = arith.constant 0 : index
    %c0_5 = arith.constant 0 : index
    %21 = vector.load %arg0[%c1, %c0_4, %c0_5] : memref<2x1280x64xf32, #tpu.memory_space<vmem>>, vector<1x1280x64xf32>
    %22 = vector.shape_cast %21 : vector<1x1280x64xf32> to vector<1280x64xf32>
    %23 = arith.truncf %22 : vector<1280x64xf32> to vector<1280x64xbf16>
    %cst_6 = arith.constant dense<0.000000e+00> : vector<64x256xf32>
    %24 = tpu.matmul %23, %16, %cst_6 {dimension_numbers = #tpu.dot_dimension_numbers<[0], [0], [1], [1], [0, 1, 1, 1], [], []>} : vector<1280x64xbf16>, vector<1280x256xbf16>, vector<64x256xf32> -> vector<64x256xf32>
    %25 = tpu.concatenate %20, %24 in 0 : vector<64x256xf32>, vector<64x256xf32> -> vector<128x256xf32>
    %c0_7 = arith.constant 0 : index
    %c0_8 = arith.constant 0 : index
    %26 = vector.load %arg2[%c0_7, %c0_8] : memref<1x256xf32, #tpu.memory_space<vmem>>, vector<1x256xf32>
    %27 = vector.broadcast %26 : vector<1x256xf32> to vector<128x256xf32>
    %28 = arith.addf %25, %27 : vector<128x256xf32>
    %cst_9 = arith.constant 0.000000e+00 : f32
    %cst_10 = arith.constant 6.000000e+00 : f32
    %29 = vector.broadcast %cst_9 : f32 to vector<128x256xf32>
    %30 = arith.maximumf %29, %28 : vector<128x256xf32>
    %31 = vector.broadcast %cst_10 : f32 to vector<128x256xf32>
    %32 = arith.minimumf %31, %30 : vector<128x256xf32>
    %c0_11 = arith.constant 0 : index
    %c0_12 = arith.constant 0 : index
    %c0_13 = arith.constant 0 : index
    %33 = vector.load %arg3[%c0_11, %c0_12, %c0_13] : memref<9x1x256xf32, #tpu.memory_space<vmem>>, vector<9x1x256xf32>
    %c0_i32_14 = arith.constant 0 : i32
    %34 = tpu.memref_slice %arg40[%c0_i32_14] : memref<8x!tpu.dma_semaphore, #tpu.memory_space<semaphore_mem>> -> memref<1x!tpu.dma_semaphore, #tpu.memory_space<semaphore_mem>>
    %35 = tpu.memref_squeeze %34 : memref<1x!tpu.dma_semaphore, #tpu.memory_space<semaphore_mem>> -> memref<!tpu.dma_semaphore, #tpu.memory_space<semaphore_mem>>
    tpu.wait_dma2 semaphore(%35 : memref<!tpu.dma_semaphore, #tpu.memory_space<semaphore_mem>>) src(%arg5 : memref<288x128xbf16, #tpu.memory_space<any>>) dst(%arg32 : memref<288x128xbf16, #tpu.memory_space<vmem>>)
    %c0_15 = arith.constant 0 : index
    %c0_16 = arith.constant 0 : index
    %36 = vector.load %arg32[%c0_15, %c0_16] : memref<288x128xbf16, #tpu.memory_space<vmem>>, vector<288x128xbf16>
    %37 = arith.truncf %32 : vector<128x256xf32> to vector<128x256xbf16>
    %cst_17 = arith.constant dense<0.000000e+00> : vector<288x256xf32>
    %38 = tpu.matmul %36, %37, %cst_17 {dimension_numbers = #tpu.dot_dimension_numbers<[1], [0], [0], [1], [0, 0, 1, 1], [], []>} : vector<288x128xbf16>, vector<128x256xbf16>, vector<288x256xf32> -> vector<288x256xf32>
    %39 = vector.extract_strided_slice %38 {offsets = [0, 0], sizes = [32, 256], strides = [1, 1]} : vector<288x256xf32> to vector<32x256xf32>
    %40 = vector.extract_strided_slice %33 {offsets = [0, 0, 0], sizes = [1, 1, 256], strides = [1, 1, 1]} : vector<9x1x256xf32> to vector<1x1x256xf32>
    %41 = vector.shape_cast %40 : vector<1x1x256xf32> to vector<1x256xf32>
    %42 = vector.broadcast %41 : vector<1x256xf32> to vector<32x256xf32>
    %43 = arith.mulf %39, %42 : vector<32x256xf32>
    %44 = vector.extract_strided_slice %38 {offsets = [32, 0], sizes = [32, 256], strides = [1, 1]} : vector<288x256xf32> to vector<32x256xf32>
    %45 = vector.extract_strided_slice %33 {offsets = [1, 0, 0], sizes = [1, 1, 256], strides = [1, 1, 1]} : vector<9x1x256xf32> to vector<1x1x256xf32>
    %46 = vector.shape_cast %45 : vector<1x1x256xf32> to vector<1x256xf32>
    %47 = vector.broadcast %46 : vector<1x256xf32> to vector<32x256xf32>
    %48 = arith.mulf %44, %47 : vector<32x256xf32>
    %49 = arith.addf %43, %48 : vector<32x256xf32>
    %50 = vector.extract_strided_slice %38 {offsets = [64, 0], sizes = [32, 256], strides = [1, 1]} : vector<288x256xf32> to vector<32x256xf32>
    %51 = vector.extract_strided_slice %33 {offsets = [2, 0, 0], sizes = [1, 1, 256], strides = [1, 1, 1]} : vector<9x1x256xf32> to vector<1x1x256xf32>
    %52 = vector.shape_cast %51 : vector<1x1x256xf32> to vector<1x256xf32>
    %53 = vector.broadcast %52 : vector<1x256xf32> to vector<32x256xf32>
    %54 = arith.mulf %50, %53 : vector<32x256xf32>
    %55 = arith.addf %49, %54 : vector<32x256xf32>
    %56 = vector.extract_strided_slice %38 {offsets = [96, 0], sizes = [32, 256], strides = [1, 1]} : vector<288x256xf32> to vector<32x256xf32>
    %57 = vector.extract_strided_slice %33 {offsets = [3, 0, 0], sizes = [1, 1, 256], strides = [1, 1, 1]} : vector<9x1x256xf32> to vector<1x1x256xf32>
    %58 = vector.shape_cast %57 : vector<1x1x256xf32> to vector<1x256xf32>
    %59 = vector.broadcast %58 : vector<1x256xf32> to vector<32x256xf32>
    %60 = arith.mulf %56, %59 : vector<32x256xf32>
    %61 = arith.addf %55, %60 : vector<32x256xf32>
    %62 = vector.extract_strided_slice %38 {offsets = [128, 0], sizes = [32, 256], strides = [1, 1]} : vector<288x256xf32> to vector<32x256xf32>
    %63 = vector.extract_strided_slice %33 {offsets = [4, 0, 0], sizes = [1, 1, 256], strides = [1, 1, 1]} : vector<9x1x256xf32> to vector<1x1x256xf32>
    %64 = vector.shape_cast %63 : vector<1x1x256xf32> to vector<1x256xf32>
    %65 = vector.broadcast %64 : vector<1x256xf32> to vector<32x256xf32>
    %66 = arith.mulf %62, %65 : vector<32x256xf32>
    %67 = arith.addf %61, %66 : vector<32x256xf32>
    %68 = vector.extract_strided_slice %38 {offsets = [160, 0], sizes = [32, 256], strides = [1, 1]} : vector<288x256xf32> to vector<32x256xf32>
    %69 = vector.extract_strided_slice %33 {offsets = [5, 0, 0], sizes = [1, 1, 256], strides = [1, 1, 1]} : vector<9x1x256xf32> to vector<1x1x256xf32>
    %70 = vector.shape_cast %69 : vector<1x1x256xf32> to vector<1x256xf32>
    %71 = vector.broadcast %70 : vector<1x256xf32> to vector<32x256xf32>
    %72 = arith.mulf %68, %71 : vector<32x256xf32>
    %73 = arith.addf %67, %72 : vector<32x256xf32>
    %74 = vector.extract_strided_slice %38 {offsets = [192, 0], sizes = [32, 256], strides = [1, 1]} : vector<288x256xf32> to vector<32x256xf32>
    %75 = vector.extract_strided_slice %33 {offsets = [6, 0, 0], sizes = [1, 1, 256], strides = [1, 1, 1]} : vector<9x1x256xf32> to vector<1x1x256xf32>
    %76 = vector.shape_cast %75 : vector<1x1x256xf32> to vector<1x256xf32>
    %77 = vector.broadcast %76 : vector<1x256xf32> to vector<32x256xf32>
    %78 = arith.mulf %74, %77 : vector<32x256xf32>
    %79 = arith.addf %73, %78 : vector<32x256xf32>
    %80 = vector.extract_strided_slice %38 {offsets = [224, 0], sizes = [32, 256], strides = [1, 1]} : vector<288x256xf32> to vector<32x256xf32>
    %81 = vector.extract_strided_slice %33 {offsets = [7, 0, 0], sizes = [1, 1, 256], strides = [1, 1, 1]} : vector<9x1x256xf32> to vector<1x1x256xf32>
    %82 = vector.shape_cast %81 : vector<1x1x256xf32> to vector<1x256xf32>
    %83 = vector.broadcast %82 : vector<1x256xf32> to vector<32x256xf32>
    %84 = arith.mulf %80, %83 : vector<32x256xf32>
    %85 = arith.addf %79, %84 : vector<32x256xf32>
    %86 = vector.extract_strided_slice %38 {offsets = [256, 0], sizes = [32, 256], strides = [1, 1]} : vector<288x256xf32> to vector<32x256xf32>
    %87 = vector.extract_strided_slice %33 {offsets = [8, 0, 0], sizes = [1, 1, 256], strides = [1, 1, 1]} : vector<9x1x256xf32> to vector<1x1x256xf32>
    %88 = vector.shape_cast %87 : vector<1x1x256xf32> to vector<1x256xf32>
    %89 = vector.broadcast %88 : vector<1x256xf32> to vector<32x256xf32>
    %90 = arith.mulf %86, %89 : vector<32x256xf32>
    %91 = arith.addf %85, %90 : vector<32x256xf32>
    %c0_18 = arith.constant 0 : index
    %c0_19 = arith.constant 0 : index
    %92 = vector.load %arg4[%c0_18, %c0_19] : memref<1x256xf32, #tpu.memory_space<vmem>>, vector<1x256xf32>
    %93 = vector.broadcast %92 : vector<1x256xf32> to vector<32x256xf32>
    %94 = arith.addf %91, %93 : vector<32x256xf32>
    %cst_20 = arith.constant 0.000000e+00 : f32
    %cst_21 = arith.constant 6.000000e+00 : f32
    %95 = vector.broadcast %cst_20 : f32 to vector<32x256xf32>
    %96 = arith.maximumf %95, %94 : vector<32x256xf32>
    %97 = vector.broadcast %cst_21 : f32 to vector<32x256xf32>
    %98 = arith.minimumf %97, %96 : vector<32x256xf32>
    %99 = arith.truncf %98 : vector<32x256xf32> to vector<32x256xbf16>
    %c1_i32_22 = arith.constant 1 : i32
    %100 = tpu.memref_slice %arg40[%c1_i32_22] : memref<8x!tpu.dma_semaphore, #tpu.memory_space<semaphore_mem>> -> memref<1x!tpu.dma_semaphore, #tpu.memory_space<semaphore_mem>>
    %101 = tpu.memref_squeeze %100 : memref<1x!tpu.dma_semaphore, #tpu.memory_space<semaphore_mem>> -> memref<!tpu.dma_semaphore, #tpu.memory_space<semaphore_mem>>
    tpu.wait_dma2 semaphore(%101 : memref<!tpu.dma_semaphore, #tpu.memory_space<semaphore_mem>>) src(%arg6 : memref<256x512xbf16, #tpu.memory_space<any>>) dst(%arg33 : memref<256x512xbf16, #tpu.memory_space<vmem>>)
    %c0_23 = arith.constant 0 : index
    %c0_24 = arith.constant 0 : index
    %102 = vector.load %arg33[%c0_23, %c0_24] : memref<256x512xbf16, #tpu.memory_space<vmem>>, vector<256x512xbf16>
    %cst_25 = arith.constant dense<0.000000e+00> : vector<32x512xf32>
    %103 = tpu.matmul %99, %102, %cst_25 {dimension_numbers = #tpu.dot_dimension_numbers<[1], [0], [0], [1], [0, 0, 1, 1], [], []>} : vector<32x256xbf16>, vector<256x512xbf16>, vector<32x512xf32> -> vector<32x512xf32>
    %c0_26 = arith.constant 0 : index
    %c0_27 = arith.constant 0 : index
    %104 = vector.load %arg7[%c0_26, %c0_27] : memref<1x512xf32, #tpu.memory_space<vmem>>, vector<1x512xf32>
    %105 = vector.broadcast %104 : vector<1x512xf32> to vector<32x512xf32>
    %106 = arith.addf %103, %105 : vector<32x512xf32>
    %cst_28 = arith.constant 0.000000e+00 : f32
    %cst_29 = arith.constant 6.000000e+00 : f32
    %107 = vector.broadcast %cst_28 : f32 to vector<32x512xf32>
    %108 = arith.maximumf %107, %106 : vector<32x512xf32>
    %109 = vector.broadcast %cst_29 : f32 to vector<32x512xf32>
    %110 = arith.minimumf %109, %108 : vector<32x512xf32>
    %c0_30 = arith.constant 0 : index
    %c0_31 = arith.constant 0 : index
    %111 = vector.load %arg28[%c0_30, %c0_31] : memref<32x512xf32, #tpu.memory_space<vmem>>, vector<32x512xf32>
    tpu.vector_store %arg28[%c0_30, %c0_31], %110 {strides = array<i32>} : memref<32x512xf32, #tpu.memory_space<vmem>>, vector<32x512xf32>,
    %112 = arith.truncf %110 : vector<32x512xf32> to vector<32x512xbf16>
    %c2_i32_32 = arith.constant 2 : i32
    %113 = tpu.memref_slice %arg40[%c2_i32_32] : memref<8x!tpu.dma_semaphore, #tpu.memory_space<semaphore_mem>> -> memref<1x!tpu.dma_semaphore, #tpu.memory_space<semaphore_mem>>
    %114 = tpu.memref_squeeze %113 : memref<1x!tpu.dma_semaphore, #tpu.memory_space<semaphore_mem>> -> memref<!tpu.dma_semaphore, #tpu.memory_space<semaphore_mem>>
    tpu.wait_dma2 semaphore(%114 : memref<!tpu.dma_semaphore, #tpu.memory_space<semaphore_mem>>) src(%arg8 : memref<512x128xbf16, #tpu.memory_space<any>>) dst(%arg34 : memref<512x128xbf16, #tpu.memory_space<vmem>>)
    %c0_33 = arith.constant 0 : index
    %c0_34 = arith.constant 0 : index
    %115 = vector.load %arg34[%c0_33, %c0_34] : memref<512x128xbf16, #tpu.memory_space<vmem>>, vector<512x128xbf16>
    %cst_35 = arith.constant dense<0.000000e+00> : vector<32x128xf32>
    %116 = tpu.matmul %112, %115, %cst_35 {dimension_numbers = #tpu.dot_dimension_numbers<[1], [0], [0], [1], [0, 0, 1, 1], [], []>} : vector<32x512xbf16>, vector<512x128xbf16>, vector<32x128xf32> -> vector<32x128xf32>
    %c0_36 = arith.constant 0 : index
    %c0_37 = arith.constant 0 : index
    %117 = vector.load %arg9[%c0_36, %c0_37] : memref<1x128xf32, #tpu.memory_space<vmem>>, vector<1x128xf32>
    %118 = vector.broadcast %117 : vector<1x128xf32> to vector<32x128xf32>
    %119 = arith.addf %116, %118 : vector<32x128xf32>
    %cst_38 = arith.constant 0.000000e+00 : f32
    %cst_39 = arith.constant 6.000000e+00 : f32
    %120 = vector.broadcast %cst_38 : f32 to vector<32x128xf32>
    %121 = arith.maximumf %120, %119 : vector<32x128xf32>
    %122 = vector.broadcast %cst_39 : f32 to vector<32x128xf32>
    %123 = arith.minimumf %122, %121 : vector<32x128xf32>
    %c0_40 = arith.constant 0 : index
    %c0_41 = arith.constant 0 : index
    %c0_42 = arith.constant 0 : index
    %124 = vector.load %arg10[%c0_40, %c0_41, %c0_42] : memref<9x1x128xf32, #tpu.memory_space<vmem>>, vector<9x1x128xf32>
    %c0_43 = arith.constant 0 : index
    %c0_44 = arith.constant 0 : index
    %125 = vector.load %arg12[%c0_43, %c0_44] : memref<72x32xbf16, #tpu.memory_space<vmem>>, vector<72x32xbf16>
    %126 = arith.truncf %123 : vector<32x128xf32> to vector<32x128xbf16>
    %cst_45 = arith.constant dense<0.000000e+00> : vector<72x128xf32>
    %127 = tpu.matmul %125, %126, %cst_45 {dimension_numbers = #tpu.dot_dimension_numbers<[1], [0], [0], [1], [0, 0, 1, 1], [], []>} : vector<72x32xbf16>, vector<32x128xbf16>, vector<72x128xf32> -> vector<72x128xf32>
    %128 = vector.extract_strided_slice %127 {offsets = [0, 0], sizes = [8, 128], strides = [1, 1]} : vector<72x128xf32> to vector<8x128xf32>
    %129 = vector.extract_strided_slice %124 {offsets = [0, 0, 0], sizes = [1, 1, 128], strides = [1, 1, 1]} : vector<9x1x128xf32> to vector<1x1x128xf32>
    %130 = vector.shape_cast %129 : vector<1x1x128xf32> to vector<1x128xf32>
    %131 = vector.broadcast %130 : vector<1x128xf32> to vector<8x128xf32>
    %132 = arith.mulf %128, %131 : vector<8x128xf32>
    %133 = vector.extract_strided_slice %127 {offsets = [8, 0], sizes = [8, 128], strides = [1, 1]} : vector<72x128xf32> to vector<8x128xf32>
    %134 = vector.extract_strided_slice %124 {offsets = [1, 0, 0], sizes = [1, 1, 128], strides = [1, 1, 1]} : vector<9x1x128xf32> to vector<1x1x128xf32>
    %135 = vector.shape_cast %134 : vector<1x1x128xf32> to vector<1x128xf32>
    %136 = vector.broadcast %135 : vector<1x128xf32> to vector<8x128xf32>
    %137 = arith.mulf %133, %136 : vector<8x128xf32>
    %138 = arith.addf %132, %137 : vector<8x128xf32>
    %139 = vector.extract_strided_slice %127 {offsets = [16, 0], sizes = [8, 128], strides = [1, 1]} : vector<72x128xf32> to vector<8x128xf32>
    %140 = vector.extract_strided_slice %124 {offsets = [2, 0, 0], sizes = [1, 1, 128], strides = [1, 1, 1]} : vector<9x1x128xf32> to vector<1x1x128xf32>
    %141 = vector.shape_cast %140 : vector<1x1x128xf32> to vector<1x128xf32>
    %142 = vector.broadcast %141 : vector<1x128xf32> to vector<8x128xf32>
    %143 = arith.mulf %139, %142 : vector<8x128xf32>
    %144 = arith.addf %138, %143 : vector<8x128xf32>
    %145 = vector.extract_strided_slice %127 {offsets = [24, 0], sizes = [8, 128], strides = [1, 1]} : vector<72x128xf32> to vector<8x128xf32>
    %146 = vector.extract_strided_slice %124 {offsets = [3, 0, 0], sizes = [1, 1, 128], strides = [1, 1, 1]} : vector<9x1x128xf32> to vector<1x1x128xf32>
    %147 = vector.shape_cast %146 : vector<1x1x128xf32> to vector<1x128xf32>
    %148 = vector.broadcast %147 : vector<1x128xf32> to vector<8x128xf32>
    %149 = arith.mulf %145, %148 : vector<8x128xf32>
    %150 = arith.addf %144, %149 : vector<8x128xf32>
    %151 = vector.extract_strided_slice %127 {offsets = [32, 0], sizes = [8, 128], strides = [1, 1]} : vector<72x128xf32> to vector<8x128xf32>
    %152 = vector.extract_strided_slice %124 {offsets = [4, 0, 0], sizes = [1, 1, 128], strides = [1, 1, 1]} : vector<9x1x128xf32> to vector<1x1x128xf32>
    %153 = vector.shape_cast %152 : vector<1x1x128xf32> to vector<1x128xf32>
    %154 = vector.broadcast %153 : vector<1x128xf32> to vector<8x128xf32>
    %155 = arith.mulf %151, %154 : vector<8x128xf32>
    %156 = arith.addf %150, %155 : vector<8x128xf32>
    %157 = vector.extract_strided_slice %127 {offsets = [40, 0], sizes = [8, 128], strides = [1, 1]} : vector<72x128xf32> to vector<8x128xf32>
    %158 = vector.extract_strided_slice %124 {offsets = [5, 0, 0], sizes = [1, 1, 128], strides = [1, 1, 1]} : vector<9x1x128xf32> to vector<1x1x128xf32>
    %159 = vector.shape_cast %158 : vector<1x1x128xf32> to vector<1x128xf32>
    %160 = vector.broadcast %159 : vector<1x128xf32> to vector<8x128xf32>
    %161 = arith.mulf %157, %160 : vector<8x128xf32>
    %162 = arith.addf %156, %161 : vector<8x128xf32>
    %163 = vector.extract_strided_slice %127 {offsets = [48, 0], sizes = [8, 128], strides = [1, 1]} : vector<72x128xf32> to vector<8x128xf32>
    %164 = vector.extract_strided_slice %124 {offsets = [6, 0, 0], sizes = [1, 1, 128], strides = [1, 1, 1]} : vector<9x1x128xf32> to vector<1x1x128xf32>
    %165 = vector.shape_cast %164 : vector<1x1x128xf32> to vector<1x128xf32>
    %166 = vector.broadcast %165 : vector<1x128xf32> to vector<8x128xf32>
    %167 = arith.mulf %163, %166 : vector<8x128xf32>
    %168 = arith.addf %162, %167 : vector<8x128xf32>
    %169 = vector.extract_strided_slice %127 {offsets = [56, 0], sizes = [8, 128], strides = [1, 1]} : vector<72x128xf32> to vector<8x128xf32>
    %170 = vector.extract_strided_slice %124 {offsets = [7, 0, 0], sizes = [1, 1, 128], strides = [1, 1, 1]} : vector<9x1x128xf32> to vector<1x1x128xf32>
    %171 = vector.shape_cast %170 : vector<1x1x128xf32> to vector<1x128xf32>
    %172 = vector.broadcast %171 : vector<1x128xf32> to vector<8x128xf32>
    %173 = arith.mulf %169, %172 : vector<8x128xf32>
    %174 = arith.addf %168, %173 : vector<8x128xf32>
    %175 = vector.extract_strided_slice %127 {offsets = [64, 0], sizes = [8, 128], strides = [1, 1]} : vector<72x128xf32> to vector<8x128xf32>
    %176 = vector.extract_strided_slice %124 {offsets = [8, 0, 0], sizes = [1, 1, 128], strides = [1, 1, 1]} : vector<9x1x128xf32> to vector<1x1x128xf32>
    %177 = vector.shape_cast %176 : vector<1x1x128xf32> to vector<1x128xf32>
    %178 = vector.broadcast %177 : vector<1x128xf32> to vector<8x128xf32>
    %179 = arith.mulf %175, %178 : vector<8x128xf32>
    %180 = arith.addf %174, %179 : vector<8x128xf32>
    %c0_46 = arith.constant 0 : index
    %c0_47 = arith.constant 0 : index
    %181 = vector.load %arg11[%c0_46, %c0_47] : memref<1x128xf32, #tpu.memory_space<vmem>>, vector<1x128xf32>
    %182 = vector.broadcast %181 : vector<1x128xf32> to vector<8x128xf32>
    %183 = arith.addf %180, %182 : vector<8x128xf32>
    %cst_48 = arith.constant 0.000000e+00 : f32
    %cst_49 = arith.constant 6.000000e+00 : f32
    %184 = vector.broadcast %cst_48 : f32 to vector<8x128xf32>
    %185 = arith.maximumf %184, %183 : vector<8x128xf32>
    %186 = vector.broadcast %cst_49 : f32 to vector<8x128xf32>
    %187 = arith.minimumf %186, %185 : vector<8x128xf32>
    %188 = arith.truncf %187 : vector<8x128xf32> to vector<8x128xbf16>
    %c3_i32_50 = arith.constant 3 : i32
    %189 = tpu.memref_slice %arg40[%c3_i32_50] : memref<8x!tpu.dma_semaphore, #tpu.memory_space<semaphore_mem>> -> memref<1x!tpu.dma_semaphore, #tpu.memory_space<semaphore_mem>>
    %190 = tpu.memref_squeeze %189 : memref<1x!tpu.dma_semaphore, #tpu.memory_space<semaphore_mem>> -> memref<!tpu.dma_semaphore, #tpu.memory_space<semaphore_mem>>
    tpu.wait_dma2 semaphore(%190 : memref<!tpu.dma_semaphore, #tpu.memory_space<semaphore_mem>>) src(%arg13 : memref<128x256xbf16, #tpu.memory_space<any>>) dst(%arg35 : memref<128x256xbf16, #tpu.memory_space<vmem>>)
    %c0_51 = arith.constant 0 : index
    %c0_52 = arith.constant 0 : index
    %191 = vector.load %arg35[%c0_51, %c0_52] : memref<128x256xbf16, #tpu.memory_space<vmem>>, vector<128x256xbf16>
    %cst_53 = arith.constant dense<0.000000e+00> : vector<8x256xf32>
    %192 = tpu.matmul %188, %191, %cst_53 {dimension_numbers = #tpu.dot_dimension_numbers<[1], [0], [0], [1], [0, 0, 1, 1], [], []>} : vector<8x128xbf16>, vector<128x256xbf16>, vector<8x256xf32> -> vector<8x256xf32>
    %c0_54 = arith.constant 0 : index
    %c0_55 = arith.constant 0 : index
    %193 = vector.load %arg14[%c0_54, %c0_55] : memref<1x256xf32, #tpu.memory_space<vmem>>, vector<1x256xf32>
    %194 = vector.broadcast %193 : vector<1x256xf32> to vector<8x256xf32>
    %195 = arith.addf %192, %194 : vector<8x256xf32>
    %cst_56 = arith.constant 0.000000e+00 : f32
    %cst_57 = arith.constant 6.000000e+00 : f32
    %196 = vector.broadcast %cst_56 : f32 to vector<8x256xf32>
    %197 = arith.maximumf %196, %195 : vector<8x256xf32>
    %198 = vector.broadcast %cst_57 : f32 to vector<8x256xf32>
    %199 = arith.minimumf %198, %197 : vector<8x256xf32>
    %c0_58 = arith.constant 0 : index
    %c0_59 = arith.constant 0 : index
    %200 = vector.load %arg29[%c0_58, %c0_59] : memref<8x256xf32, #tpu.memory_space<vmem>>, vector<8x256xf32>
    tpu.vector_store %arg29[%c0_58, %c0_59], %199 {strides = array<i32>} : memref<8x256xf32, #tpu.memory_space<vmem>>, vector<8x256xf32>,
    %201 = arith.truncf %199 : vector<8x256xf32> to vector<8x256xbf16>
    %c4_i32_60 = arith.constant 4 : i32
    %202 = tpu.memref_slice %arg40[%c4_i32_60] : memref<8x!tpu.dma_semaphore, #tpu.memory_space<semaphore_mem>> -> memref<1x!tpu.dma_semaphore, #tpu.memory_space<semaphore_mem>>
    %203 = tpu.memref_squeeze %202 : memref<1x!tpu.dma_semaphore, #tpu.memory_space<semaphore_mem>> -> memref<!tpu.dma_semaphore, #tpu.memory_space<semaphore_mem>>
    tpu.wait_dma2 semaphore(%203 : memref<!tpu.dma_semaphore, #tpu.memory_space<semaphore_mem>>) src(%arg15 : memref<256x128xbf16, #tpu.memory_space<any>>) dst(%arg36 : memref<256x128xbf16, #tpu.memory_space<vmem>>)
    %c0_61 = arith.constant 0 : index
    %c0_62 = arith.constant 0 : index
    %204 = vector.load %arg36[%c0_61, %c0_62] : memref<256x128xbf16, #tpu.memory_space<vmem>>, vector<256x128xbf16>
    %cst_63 = arith.constant dense<0.000000e+00> : vector<8x128xf32>
    %205 = tpu.matmul %201, %204, %cst_63 {dimension_numbers = #tpu.dot_dimension_numbers<[1], [0], [0], [1], [0, 0, 1, 1], [], []>} : vector<8x256xbf16>, vector<256x128xbf16>, vector<8x128xf32> -> vector<8x128xf32>
    %c0_64 = arith.constant 0 : index
    %c0_65 = arith.constant 0 : index
    %206 = vector.load %arg16[%c0_64, %c0_65] : memref<1x128xf32, #tpu.memory_space<vmem>>, vector<1x128xf32>
    %207 = vector.broadcast %206 : vector<1x128xf32> to vector<8x128xf32>
    %208 = arith.addf %205, %207 : vector<8x128xf32>
    %cst_66 = arith.constant 0.000000e+00 : f32
    %cst_67 = arith.constant 6.000000e+00 : f32
    %209 = vector.broadcast %cst_66 : f32 to vector<8x128xf32>
    %210 = arith.maximumf %209, %208 : vector<8x128xf32>
    %211 = vector.broadcast %cst_67 : f32 to vector<8x128xf32>
    %212 = arith.minimumf %211, %210 : vector<8x128xf32>
    %c0_68 = arith.constant 0 : index
    %c0_69 = arith.constant 0 : index
    %c0_70 = arith.constant 0 : index
    %213 = vector.load %arg17[%c0_68, %c0_69, %c0_70] : memref<9x1x128xf32, #tpu.memory_space<vmem>>, vector<9x1x128xf32>
    %c0_71 = arith.constant 0 : index
    %c0_72 = arith.constant 0 : index
    %214 = vector.load %arg19[%c0_71, %c0_72] : memref<8x8xbf16, #tpu.memory_space<vmem>>, vector<8x8xbf16>
    %215 = arith.truncf %212 : vector<8x128xf32> to vector<8x128xbf16>
    %cst_73 = arith.constant dense<0.000000e+00> : vector<8x128xf32>
    %216 = tpu.matmul %214, %215, %cst_73 {dimension_numbers = #tpu.dot_dimension_numbers<[1], [0], [0], [1], [0, 0, 1, 1], [], []>} : vector<8x8xbf16>, vector<8x128xbf16>, vector<8x128xf32> -> vector<8x128xf32>
    %217 = vector.extract_strided_slice %216 {offsets = [0, 0], sizes = [2, 128], strides = [1, 1]} : vector<8x128xf32> to vector<2x128xf32>
    %218 = vector.extract_strided_slice %213 {offsets = [4, 0, 0], sizes = [1, 1, 128], strides = [1, 1, 1]} : vector<9x1x128xf32> to vector<1x1x128xf32>
    %219 = vector.shape_cast %218 : vector<1x1x128xf32> to vector<1x128xf32>
    %220 = vector.broadcast %219 : vector<1x128xf32> to vector<2x128xf32>
    %221 = arith.mulf %217, %220 : vector<2x128xf32>
    %222 = vector.extract_strided_slice %216 {offsets = [2, 0], sizes = [2, 128], strides = [1, 1]} : vector<8x128xf32> to vector<2x128xf32>
    %223 = vector.extract_strided_slice %213 {offsets = [5, 0, 0], sizes = [1, 1, 128], strides = [1, 1, 1]} : vector<9x1x128xf32> to vector<1x1x128xf32>
    %224 = vector.shape_cast %223 : vector<1x1x128xf32> to vector<1x128xf32>
    %225 = vector.broadcast %224 : vector<1x128xf32> to vector<2x128xf32>
    %226 = arith.mulf %222, %225 : vector<2x128xf32>
    %227 = arith.addf %221, %226 : vector<2x128xf32>
    %228 = vector.extract_strided_slice %216 {offsets = [4, 0], sizes = [2, 128], strides = [1, 1]} : vector<8x128xf32> to vector<2x128xf32>
    %229 = vector.extract_strided_slice %213 {offsets = [7, 0, 0], sizes = [1, 1, 128], strides = [1, 1, 1]} : vector<9x1x128xf32> to vector<1x1x128xf32>
    %230 = vector.shape_cast %229 : vector<1x1x128xf32> to vector<1x128xf32>
    %231 = vector.broadcast %230 : vector<1x128xf32> to vector<2x128xf32>
    %232 = arith.mulf %228, %231 : vector<2x128xf32>
    %233 = arith.addf %227, %232 : vector<2x128xf32>
    %234 = vector.extract_strided_slice %216 {offsets = [6, 0], sizes = [2, 128], strides = [1, 1]} : vector<8x128xf32> to vector<2x128xf32>
    %235 = vector.extract_strided_slice %213 {offsets = [8, 0, 0], sizes = [1, 1, 128], strides = [1, 1, 1]} : vector<9x1x128xf32> to vector<1x1x128xf32>
    %236 = vector.shape_cast %235 : vector<1x1x128xf32> to vector<1x128xf32>
    %237 = vector.broadcast %236 : vector<1x128xf32> to vector<2x128xf32>
    %238 = arith.mulf %234, %237 : vector<2x128xf32>
    %239 = arith.addf %233, %238 : vector<2x128xf32>
    %c0_74 = arith.constant 0 : index
    %c0_75 = arith.constant 0 : index
    %240 = vector.load %arg18[%c0_74, %c0_75] : memref<1x128xf32, #tpu.memory_space<vmem>>, vector<1x128xf32>
    %241 = vector.broadcast %240 : vector<1x128xf32> to vector<2x128xf32>
    %242 = arith.addf %239, %241 : vector<2x128xf32>
    %cst_76 = arith.constant 0.000000e+00 : f32
    %cst_77 = arith.constant 6.000000e+00 : f32
    %243 = vector.broadcast %cst_76 : f32 to vector<2x128xf32>
    %244 = arith.maximumf %243, %242 : vector<2x128xf32>
    %245 = vector.broadcast %cst_77 : f32 to vector<2x128xf32>
    %246 = arith.minimumf %245, %244 : vector<2x128xf32>
    %247 = arith.truncf %246 : vector<2x128xf32> to vector<2x128xbf16>
    %c5_i32_78 = arith.constant 5 : i32
    %248 = tpu.memref_slice %arg40[%c5_i32_78] : memref<8x!tpu.dma_semaphore, #tpu.memory_space<semaphore_mem>> -> memref<1x!tpu.dma_semaphore, #tpu.memory_space<semaphore_mem>>
    %249 = tpu.memref_squeeze %248 : memref<1x!tpu.dma_semaphore, #tpu.memory_space<semaphore_mem>> -> memref<!tpu.dma_semaphore, #tpu.memory_space<semaphore_mem>>
    tpu.wait_dma2 semaphore(%249 : memref<!tpu.dma_semaphore, #tpu.memory_space<semaphore_mem>>) src(%arg20 : memref<128x256xbf16, #tpu.memory_space<any>>) dst(%arg37 : memref<128x256xbf16, #tpu.memory_space<vmem>>)
    %c0_79 = arith.constant 0 : index
    %c0_80 = arith.constant 0 : index
    %250 = vector.load %arg37[%c0_79, %c0_80] : memref<128x256xbf16, #tpu.memory_space<vmem>>, vector<128x256xbf16>
    %cst_81 = arith.constant dense<0.000000e+00> : vector<2x256xf32>
    %251 = tpu.matmul %247, %250, %cst_81 {dimension_numbers = #tpu.dot_dimension_numbers<[1], [0], [0], [1], [0, 0, 1, 1], [], []>} : vector<2x128xbf16>, vector<128x256xbf16>, vector<2x256xf32> -> vector<2x256xf32>
    %c0_82 = arith.constant 0 : index
    %c0_83 = arith.constant 0 : index
    %252 = vector.load %arg21[%c0_82, %c0_83] : memref<1x256xf32, #tpu.memory_space<vmem>>, vector<1x256xf32>
    %253 = vector.broadcast %252 : vector<1x256xf32> to vector<2x256xf32>
    %254 = arith.addf %251, %253 : vector<2x256xf32>
    %cst_84 = arith.constant 0.000000e+00 : f32
    %cst_85 = arith.constant 6.000000e+00 : f32
    %255 = vector.broadcast %cst_84 : f32 to vector<2x256xf32>
    %256 = arith.maximumf %255, %254 : vector<2x256xf32>
    %257 = vector.broadcast %cst_85 : f32 to vector<2x256xf32>
    %258 = arith.minimumf %257, %256 : vector<2x256xf32>
    %c0_86 = arith.constant 0 : index
    %c0_87 = arith.constant 0 : index
    %259 = vector.load %arg30[%c0_86, %c0_87] : memref<2x256xf32, #tpu.memory_space<vmem>>, vector<2x256xf32>
    tpu.vector_store %arg30[%c0_86, %c0_87], %258 {strides = array<i32>} : memref<2x256xf32, #tpu.memory_space<vmem>>, vector<2x256xf32>,
    %260 = arith.truncf %258 : vector<2x256xf32> to vector<2x256xbf16>
    %c6_i32_88 = arith.constant 6 : i32
    %261 = tpu.memref_slice %arg40[%c6_i32_88] : memref<8x!tpu.dma_semaphore, #tpu.memory_space<semaphore_mem>> -> memref<1x!tpu.dma_semaphore, #tpu.memory_space<semaphore_mem>>
    %262 = tpu.memref_squeeze %261 : memref<1x!tpu.dma_semaphore, #tpu.memory_space<semaphore_mem>> -> memref<!tpu.dma_semaphore, #tpu.memory_space<semaphore_mem>>
    tpu.wait_dma2 semaphore(%262 : memref<!tpu.dma_semaphore, #tpu.memory_space<semaphore_mem>>) src(%arg22 : memref<256x64xbf16, #tpu.memory_space<any>>) dst(%arg38 : memref<256x64xbf16, #tpu.memory_space<vmem>>)
    %c0_89 = arith.constant 0 : index
    %c0_90 = arith.constant 0 : index
    %263 = vector.load %arg38[%c0_89, %c0_90] : memref<256x64xbf16, #tpu.memory_space<vmem>>, vector<256x64xbf16>
    %cst_91 = arith.constant dense<0.000000e+00> : vector<2x64xf32>
    %264 = tpu.matmul %260, %263, %cst_91 {dimension_numbers = #tpu.dot_dimension_numbers<[1], [0], [0], [1], [0, 0, 1, 1], [], []>} : vector<2x256xbf16>, vector<256x64xbf16>, vector<2x64xf32> -> vector<2x64xf32>
    %c0_92 = arith.constant 0 : index
    %c0_93 = arith.constant 0 : index
    %265 = vector.load %arg23[%c0_92, %c0_93] : memref<1x64xf32, #tpu.memory_space<vmem>>, vector<1x64xf32>
    %266 = vector.broadcast %265 : vector<1x64xf32> to vector<2x64xf32>
    %267 = arith.addf %264, %266 : vector<2x64xf32>
    %cst_94 = arith.constant 0.000000e+00 : f32
    %cst_95 = arith.constant 6.000000e+00 : f32
    %268 = vector.broadcast %cst_94 : f32 to vector<2x64xf32>
    %269 = arith.maximumf %268, %267 : vector<2x64xf32>
    %270 = vector.broadcast %cst_95 : f32 to vector<2x64xf32>
    %271 = arith.minimumf %270, %269 : vector<2x64xf32>
    %c0_96 = arith.constant 0 : index
    %c0_97 = arith.constant 0 : index
    %c0_98 = arith.constant 0 : index
    %272 = vector.load %arg24[%c0_96, %c0_97, %c0_98] : memref<9x1x64xf32, #tpu.memory_space<vmem>>, vector<9x1x64xf32>
    %273 = vector.extract_strided_slice %272 {offsets = [4, 0, 0], sizes = [1, 1, 64], strides = [1, 1, 1]} : vector<9x1x64xf32> to vector<1x1x64xf32>
    %274 = vector.shape_cast %273 : vector<1x1x64xf32> to vector<1x64xf32>
    %275 = vector.broadcast %274 : vector<1x64xf32> to vector<2x64xf32>
    %276 = arith.mulf %271, %275 : vector<2x64xf32>
    %c0_99 = arith.constant 0 : index
    %c0_100 = arith.constant 0 : index
    %277 = vector.load %arg25[%c0_99, %c0_100] : memref<1x64xf32, #tpu.memory_space<vmem>>, vector<1x64xf32>
    %278 = vector.broadcast %277 : vector<1x64xf32> to vector<2x64xf32>
    %279 = arith.addf %276, %278 : vector<2x64xf32>
    %cst_101 = arith.constant 0.000000e+00 : f32
    %cst_102 = arith.constant 6.000000e+00 : f32
    %280 = vector.broadcast %cst_101 : f32 to vector<2x64xf32>
    %281 = arith.maximumf %280, %279 : vector<2x64xf32>
    %282 = vector.broadcast %cst_102 : f32 to vector<2x64xf32>
    %283 = arith.minimumf %282, %281 : vector<2x64xf32>
    %284 = arith.truncf %283 : vector<2x64xf32> to vector<2x64xbf16>
    %c7_i32_103 = arith.constant 7 : i32
    %285 = tpu.memref_slice %arg40[%c7_i32_103] : memref<8x!tpu.dma_semaphore, #tpu.memory_space<semaphore_mem>> -> memref<1x!tpu.dma_semaphore, #tpu.memory_space<semaphore_mem>>
    %286 = tpu.memref_squeeze %285 : memref<1x!tpu.dma_semaphore, #tpu.memory_space<semaphore_mem>> -> memref<!tpu.dma_semaphore, #tpu.memory_space<semaphore_mem>>
    tpu.wait_dma2 semaphore(%286 : memref<!tpu.dma_semaphore, #tpu.memory_space<semaphore_mem>>) src(%arg26 : memref<64x128xbf16, #tpu.memory_space<any>>) dst(%arg39 : memref<64x128xbf16, #tpu.memory_space<vmem>>)
    %c0_104 = arith.constant 0 : index
    %c0_105 = arith.constant 0 : index
    %287 = vector.load %arg39[%c0_104, %c0_105] : memref<64x128xbf16, #tpu.memory_space<vmem>>, vector<64x128xbf16>
    %cst_106 = arith.constant dense<0.000000e+00> : vector<2x128xf32>
    %288 = tpu.matmul %284, %287, %cst_106 {dimension_numbers = #tpu.dot_dimension_numbers<[1], [0], [0], [1], [0, 0, 1, 1], [], []>} : vector<2x64xbf16>, vector<64x128xbf16>, vector<2x128xf32> -> vector<2x128xf32>
    %c0_107 = arith.constant 0 : index
    %c0_108 = arith.constant 0 : index
    %289 = vector.load %arg27[%c0_107, %c0_108] : memref<1x128xf32, #tpu.memory_space<vmem>>, vector<1x128xf32>
    %290 = vector.broadcast %289 : vector<1x128xf32> to vector<2x128xf32>
    %291 = arith.addf %288, %290 : vector<2x128xf32>
    %cst_109 = arith.constant 0.000000e+00 : f32
    %cst_110 = arith.constant 6.000000e+00 : f32
    %292 = vector.broadcast %cst_109 : f32 to vector<2x128xf32>
    %293 = arith.maximumf %292, %291 : vector<2x128xf32>
    %294 = vector.broadcast %cst_110 : f32 to vector<2x128xf32>
    %295 = arith.minimumf %294, %293 : vector<2x128xf32>
    %c0_111 = arith.constant 0 : index
    %c0_112 = arith.constant 0 : index
    %296 = vector.load %arg31[%c0_111, %c0_112] : memref<2x128xf32, #tpu.memory_space<vmem>>, vector<2x128xf32>
    tpu.vector_store %arg31[%c0_111, %c0_112], %295 {strides = array<i32>} : memref<2x128xf32, #tpu.memory_space<vmem>>, vector<2x128xf32>,
    return
  }
}

</mosaic_0001>

<bundles_post_ra>
// kernel: tpu_custom_call.1
= control target key start
LH: loop header
LB: loop body
LE: loop exit
PB: predicated region body
PF: predicated region fallthrough
CT: control target
= control target key end

     0   :  { %s6909_s6 = smov 1   ;;  %s6910_s10 = smov 2   ;;  %s8511_s0 = inlined_call_operand.smem [shape: u32[32], index: -1, kind: input, shape index: {}] }
   0x1   :  { %s6957_s5 = sld [smem:[%s8511_s0]]   ;;  %s6911_s14 = smov 3  }
   0x2   :  { %s6962_s9 = sld [smem:[%s8511_s0 + %s6909_s6]]   ;;  %s6912_s18 = smov 4  }
   0x3   :  { %s6967_s13 = sld [smem:[%s8511_s0 + %s6910_s10]]   ;;  %s6913_s22 = smov 5  }
   0x4   :  { %s6972_s17 = sld [smem:[%s8511_s0 + %s6911_s14]]   ;;  %s6914_s26 = smov 6  }
   0x5   :  { %s6977_s21 = sld [smem:[%s8511_s0 + %s6912_s18]]   ;;  %s6915_s30 = smov 7  }
   0x6   :  { %s6982_s25 = sld [smem:[%s8511_s0 + %s6913_s22]]   ;;  %s6916_s4 = smov 8  }
   0x7   :  { %s6987_s29 = sld [smem:[%s8511_s0 + %s6914_s26]]   ;;  %s6917_s10 = smov 9  }
   0x8   :  { %s6992_s3 = sld [smem:[%s8511_s0 + %s6915_s30]]   ;;  %s6918_s15 = smov 10  }
   0x9   :  { %s6997_s8 = sld [smem:[%s8511_s0 + %s6916_s4]]   ;;  %s6919_s20 = smov 11  }
   0xa   :  { %s7002_s14 = sld [smem:[%s8511_s0 + %s6917_s10]]   ;;  %s6920_s26 = smov 12  }
   0xb   :  { %s7007_s19 = sld [smem:[%s8511_s0 + %s6918_s15]]   ;;  %s6921_s1 = smov 13  }
   0xc   :  { %s7012_s24 = sld [smem:[%s8511_s0 + %s6919_s20]]   ;;  %s6922_s7 = smov 14  }
   0xd   :  { %s7017_s30 = sld [smem:[%s8511_s0 + %s6920_s26]]   ;;  %s6923_s15 = smov 15  }
   0xe   :  { %s7022_s6 = sld [smem:[%s8511_s0 + %s6921_s1]]   ;;  %s6924_s22 = smov 16  }
   0xf   :  { %s7027_s12 = sld [smem:[%s8511_s0 + %s6922_s7]]   ;;  %s6925_s28 = smov 17  }
  0x10   :  { %8530 = sst [smem:[#allocation37_spill]] %s7002_s14  ;;  %s6926_s7 = smov 18  }
  0x11   :  { %8531 = sst [smem:[#allocation38_spill]] %s7007_s19 }
  0x12   :  { %8532 = sst [smem:[#allocation39_spill]] %s7012_s24 }
  0x13   :  { %8533 = sst [smem:[#allocation40_spill]] %s7017_s30 }
  0x14   :  { %s7032_s20 = sld [smem:[%s8511_s0 + %s6923_s15]]   ;;  %s6927_s15 = smov 19  }
  0x15   :  { %8534 = sst [smem:[#allocation41_spill]] %s7027_s12 }
  0x16   :  { %s7037_s27 = sld [smem:[%s8511_s0 + %s6924_s22]]   ;;  %s6928_s22 = smov 20  }
  0x17   :  { %s7042_s4 = sld [smem:[%s8511_s0 + %s6925_s28]]   ;;  %s6929_s28 = smov 21  }
  0x18   :  { %s7047_s12 = sld [smem:[%s8511_s0 + %s6926_s7]]   ;;  %s6930_s7 = smov 22  }
  0x19   :  { %s7052_s24 = sld [smem:[%s8511_s0 + %s6927_s15]]   ;;  %s6931_s15 = smov 23  }
  0x1c   :  { %8535 = sst [smem:[#allocation42_spill]] %s7037_s27 }
  0x1d   :  { %8536 = sst [smem:[#allocation43_spill]] %s7042_s4 }
  0x1e   :  { %8537 = sst [smem:[#allocation44_spill]] %s7047_s12 }
  0x1f   :  { %8538 = sst [smem:[#allocation45_spill]] %s7052_s24 }
  0x20   :  { %s7057_s27 = sld [smem:[%s8511_s0 + %s6928_s22]]   ;;  %s6932_s22 = smov 24  }
  0x21   :  { %s7062_s4 = sld [smem:[%s8511_s0 + %s6929_s28]]   ;;  %s6933_s28 = smov 25  }
  0x22   :  { %s7067_s12 = sld [smem:[%s8511_s0 + %s6930_s7]]   ;;  %s6934_s7 = smov 26  }
  0x23   :  { %s7072_s24 = sld [smem:[%s8511_s0 + %s6931_s15]]   ;;  %s6935_s15 = smov 27  }
  0x24   :  { %s7077_s19 = sld [smem:[%s8511_s0 + %s6932_s22]]   ;;  %s6936_s22 = smov 28  }
  0x25   :  { %s7087_s30 = sld [smem:[%s8511_s0 + %s6934_s7]]   ;;  %s6938_s7 = smov 30  }
  0x26   :  { %s7107_s14 = sld [smem:[%s8511_s0 + %s6938_s7]]  }
  0x27   :  { %8539 = sst [smem:[#allocation46_spill]] %s7062_s4 }
  0x28   :  { %s7082_s4 = sld [smem:[%s8511_s0 + %s6933_s28]]   ;;  %s6937_s28 = smov 29  }
  0x29   :  { %8540 = sst [smem:[#allocation47_spill]] %s7072_s24 }
  0x2a   :  { %8541 = sst [smem:[#allocation48_spill]] %s7077_s19 }
  0x2b   :  { %s7092_s24 = sld [smem:[%s8511_s0 + %s6935_s15]]   ;;  %s6939_s15 = smov 31  }
  0x2c   :  { %s7097_s19 = sld [smem:[%s8511_s0 + %s6936_s22]]  }
  0x2e   :  { %8542 = sst [smem:[#allocation49_spill]] %s7082_s4 }
  0x2f   :  { %s7102_s4 = sld [smem:[%s8511_s0 + %s6937_s28]]  }
  0x31   :  { %8543 = sst [smem:[#allocation50_spill]] %s7092_s24 }
  0x32   :  { %s7112_s24 = sld [smem:[%s8511_s0 + %s6939_s15]]  }
  0x33   :  { %69 = vsyncpa [#allocation12], 0 }
  0x34   :  { %70 = vsyncpa [#allocation14], 0 }
  0x35   :  { %71 = vsyncpa [#allocation17], 0  ;;  %v7115_v0 = vld [vmem:[%s6982_s25] sm:$0xff]  ;;  %v7118_v1 = vld [vmem:[%s6982_s25 + $0x8] sm:$0xff] }
  0x36   :  { %v7121_v2 = vld [vmem:[%s6982_s25 + $0x10] sm:$0xff]  ;;  %v7124_v3 = vld [vmem:[%s6982_s25 + $0x18] sm:$0xff]  ;;  %v7127_v4 = vld [vmem:[%s6982_s25 + $0x20] sm:$0xff] }
  0x37   :  { %v7130_v5 = vld [vmem:[%s6982_s25 + $0x28] sm:$0xff]  ;;  %v7133_v6 = vld [vmem:[%s6982_s25 + $0x30] sm:$0xff]  ;;  %v7136_v7 = vld [vmem:[%s6982_s25 + $0x38] sm:$0xff] }
  0x38   :  { %v7139_v8 = vld [vmem:[%s6982_s25 + $0x40] sm:$0xff]  ;;  %v7142_v9 = vld [vmem:[%s6982_s25 + $0x48] sm:$0xff]  ;;  %v7145_v10 = vld [vmem:[%s6982_s25 + $0x50] sm:$0xff] }
  0x39   :  { %v7148_v11 = vld [vmem:[%s6982_s25 + $0x58] sm:$0xff]  ;;  %v7151_v12 = vld [vmem:[%s6982_s25 + $0x60] sm:$0xff]  ;;  %v7154_v13 = vld [vmem:[%s6982_s25 + $0x68] sm:$0xff] }
  0x3a   :  { %v7157_v14 = vld [vmem:[%s6982_s25 + $0x70] sm:$0xff]  ;;  %v7160_v15 = vld [vmem:[%s6982_s25 + $0x78] sm:$0xff]  ;;  %v7163_v16 = vld [vmem:[%s6982_s25 + $0x80] sm:$0xff] }
  0x3b   :  { %8544 = vst [vmem:[#allocation51_spill] sm:$0xff] %v7157_v14  ;;  %8545 = vst [vmem:[#allocation52_spill] sm:$0xff] %v7160_v15  ;;  %v7166_v17 = vld [vmem:[%s6982_s25 + $0x88] sm:$0xff] }
  0x3c   :  { %8546 = vst [vmem:[#allocation53_spill] sm:$0xff] %v7163_v16  ;;  %8547 = vst [vmem:[#allocation54_spill] sm:$0xff] %v7166_v17 }
  0x3d   :  { %188 = vsyncadd [#allocation10], 2304  ;;  %v207_v18 = vld [vmem:[%s6987_s29] sm:$0xf]  ;;  %v209_v19 = vld [vmem:[%s6987_s29 + $0x10] sm:$0xf] }
  0x3e   :  { %208 = vst [vmem:[#allocation3] sm:$0xf] %v207_v18  ;;  %210 = vst [vmem:[#allocation3 + $0x4] sm:$0xf] %v209_v19  ;;  %v211_v20 = vld [vmem:[%s6987_s29 + $0x4] sm:$0xf] }
  0x3f   :  { %v213_v21 = vld [vmem:[%s6987_s29 + $0x14] sm:$0xf]  ;;  %v215_v22 = vld [vmem:[%s6987_s29 + $0x8] sm:$0xf]  ;;  %212 = vst [vmem:[#allocation3 + $0x8] sm:$0xf] %v211_v20 }
  0x40   :  { %214 = vst [vmem:[#allocation3 + $0xc] sm:$0xf] %v213_v21  ;;  %216 = vst [vmem:[#allocation3 + $0x10] sm:$0xf] %v215_v22  ;;  %v217_v23 = vld [vmem:[%s6987_s29 + $0x18] sm:$0xf] }
  0x41   :  { %v219_v24 = vld [vmem:[%s6987_s29 + $0xc] sm:$0xf]  ;;  %v221_v25 = vld [vmem:[%s6987_s29 + $0x1c] sm:$0xf]  ;;  %218 = vst [vmem:[#allocation3 + $0x14] sm:$0xf] %v217_v23 }
  0x42   :  { %220 = vst [vmem:[#allocation3 + $0x18] sm:$0xf] %v219_v24  ;;  %222 = vst [vmem:[#allocation3 + $0x1c] sm:$0xf] %v221_v25  ;;  %v223_v26 = vld [vmem:[%s6987_s29 + $0x20] sm:$0xf] }
  0x43   :  { %v225_v27 = vld [vmem:[%s6987_s29 + $0x30] sm:$0xf]  ;;  %v227_v28 = vld [vmem:[%s6987_s29 + $0x24] sm:$0xf]  ;;  %224 = vst [vmem:[#allocation3 + $0x20] sm:$0xf] %v223_v26 }
  0x44   :  { %226 = vst [vmem:[#allocation3 + $0x24] sm:$0xf] %v225_v27  ;;  %228 = vst [vmem:[#allocation3 + $0x28] sm:$0xf] %v227_v28  ;;  %v229_v29 = vld [vmem:[%s6987_s29 + $0x34] sm:$0xf] }
  0x45   :  { %v231_v30 = vld [vmem:[%s6987_s29 + $0x28] sm:$0xf]  ;;  %v233_v31 = vld [vmem:[%s6987_s29 + $0x38] sm:$0xf]  ;;  %230 = vst [vmem:[#allocation3 + $0x2c] sm:$0xf] %v229_v29 }
  0x46   :  { %232 = vst [vmem:[#allocation3 + $0x30] sm:$0xf] %v231_v30  ;;  %234 = vst [vmem:[#allocation3 + $0x34] sm:$0xf] %v233_v31  ;;  %v235_v32 = vld [vmem:[%s6987_s29 + $0x2c] sm:$0xf] }
  0x47   :  { %v237_v33 = vld [vmem:[%s6987_s29 + $0x3c] sm:$0xf]  ;;  %v239_v34 = vld [vmem:[%s6987_s29 + $0x40] sm:$0xf]  ;;  %236 = vst [vmem:[#allocation3 + $0x38] sm:$0xf] %v235_v32 }
  0x48   :  { %238 = vst [vmem:[#allocation3 + $0x3c] sm:$0xf] %v237_v33  ;;  %240 = vst [vmem:[#allocation3 + $0x40] sm:$0xf] %v239_v34  ;;  %v241_v35 = vld [vmem:[%s6987_s29 + $0x50] sm:$0xf] }
  0x49   :  { %v243_v36 = vld [vmem:[%s6987_s29 + $0x44] sm:$0xf]  ;;  %v245_v37 = vld [vmem:[%s6987_s29 + $0x54] sm:$0xf]  ;;  %242 = vst [vmem:[#allocation3 + $0x44] sm:$0xf] %v241_v35 }
  0x4a   :  { %244 = vst [vmem:[#allocation3 + $0x48] sm:$0xf] %v243_v36  ;;  %246 = vst [vmem:[#allocation3 + $0x4c] sm:$0xf] %v245_v37  ;;  %v247_v38 = vld [vmem:[%s6987_s29 + $0x48] sm:$0xf] }
  0x4b   :  { %v249_v39 = vld [vmem:[%s6987_s29 + $0x58] sm:$0xf]  ;;  %v251_v40 = vld [vmem:[%s6987_s29 + $0x4c] sm:$0xf]  ;;  %248 = vst [vmem:[#allocation3 + $0x50] sm:$0xf] %v247_v38 }
  0x4c   :  { %250 = vst [vmem:[#allocation3 + $0x54] sm:$0xf] %v249_v39  ;;  %252 = vst [vmem:[#allocation3 + $0x58] sm:$0xf] %v251_v40  ;;  %v253_v41 = vld [vmem:[%s6987_s29 + $0x5c] sm:$0xf] }
  0x4d   :  { %v255_v42 = vld [vmem:[%s6987_s29 + $0x60] sm:$0xf]  ;;  %v257_v43 = vld [vmem:[%s6987_s29 + $0x70] sm:$0xf]  ;;  %254 = vst [vmem:[#allocation3 + $0x5c] sm:$0xf] %v253_v41 }
  0x4e   :  { %256 = vst [vmem:[#allocation3 + $0x60] sm:$0xf] %v255_v42  ;;  %258 = vst [vmem:[#allocation3 + $0x64] sm:$0xf] %v257_v43  ;;  %v259_v44 = vld [vmem:[%s6987_s29 + $0x64] sm:$0xf] }
  0x4f   :  { %v261_v45 = vld [vmem:[%s6987_s29 + $0x74] sm:$0xf]  ;;  %v263_v46 = vld [vmem:[%s6987_s29 + $0x68] sm:$0xf]  ;;  %260 = vst [vmem:[#allocation3 + $0x68] sm:$0xf] %v259_v44 }
  0x50   :  { %262 = vst [vmem:[#allocation3 + $0x6c] sm:$0xf] %v261_v45  ;;  %264 = vst [vmem:[#allocation3 + $0x70] sm:$0xf] %v263_v46  ;;  %v265_v47 = vld [vmem:[%s6987_s29 + $0x78] sm:$0xf] }
  0x51   :  { %v267_v48 = vld [vmem:[%s6987_s29 + $0x6c] sm:$0xf]  ;;  %v269_v49 = vld [vmem:[%s6987_s29 + $0x7c] sm:$0xf]  ;;  %266 = vst [vmem:[#allocation3 + $0x74] sm:$0xf] %v265_v47 }
  0x52   :  { %268 = vst [vmem:[#allocation3 + $0x78] sm:$0xf] %v267_v48  ;;  %270 = vst [vmem:[#allocation3 + $0x7c] sm:$0xf] %v269_v49  ;;  %v271_v50 = vld [vmem:[%s6987_s29 + $0x80] sm:$0xf] }
  0x53   :  { %v273_v51 = vld [vmem:[%s6987_s29 + $0x90] sm:$0xf]  ;;  %v275_v52 = vld [vmem:[%s6987_s29 + $0x84] sm:$0xf]  ;;  %272 = vst [vmem:[#allocation3 + $0x80] sm:$0xf] %v271_v50 }
  0x54   :  { %274 = vst [vmem:[#allocation3 + $0x84] sm:$0xf] %v273_v51  ;;  %276 = vst [vmem:[#allocation3 + $0x88] sm:$0xf] %v275_v52  ;;  %v277_v53 = vld [vmem:[%s6987_s29 + $0x94] sm:$0xf] }
  0x55   :  { %v279_v54 = vld [vmem:[%s6987_s29 + $0x88] sm:$0xf]  ;;  %v281_v55 = vld [vmem:[%s6987_s29 + $0x98] sm:$0xf]  ;;  %278 = vst [vmem:[#allocation3 + $0x8c] sm:$0xf] %v277_v53 }
  0x56   :  { %280 = vst [vmem:[#allocation3 + $0x90] sm:$0xf] %v279_v54  ;;  %282 = vst [vmem:[#allocation3 + $0x94] sm:$0xf] %v281_v55  ;;  %v283_v56 = vld [vmem:[%s6987_s29 + $0x8c] sm:$0xf] }
  0x57   :  { %v285_v57 = vld [vmem:[%s6987_s29 + $0x9c] sm:$0xf]  ;;  %v287_v58 = vld [vmem:[%s6987_s29 + $0xa0] sm:$0xf]  ;;  %284 = vst [vmem:[#allocation3 + $0x98] sm:$0xf] %v283_v56 }
  0x58   :  { %286 = vst [vmem:[#allocation3 + $0x9c] sm:$0xf] %v285_v57  ;;  %288 = vst [vmem:[#allocation3 + $0xa0] sm:$0xf] %v287_v58  ;;  %v289_v59 = vld [vmem:[%s6987_s29 + $0xb0] sm:$0xf] }
  0x59   :  { %v291_v60 = vld [vmem:[%s6987_s29 + $0xa4] sm:$0xf]  ;;  %v293_v61 = vld [vmem:[%s6987_s29 + $0xb4] sm:$0xf]  ;;  %290 = vst [vmem:[#allocation3 + $0xa4] sm:$0xf] %v289_v59 }
  0x5a   :  { %292 = vst [vmem:[#allocation3 + $0xa8] sm:$0xf] %v291_v60  ;;  %294 = vst [vmem:[#allocation3 + $0xac] sm:$0xf] %v293_v61  ;;  %v295_v62 = vld [vmem:[%s6987_s29 + $0xa8] sm:$0xf] }
  0x5b   :  { %v297_v63 = vld [vmem:[%s6987_s29 + $0xb8] sm:$0xf]  ;;  %v299_v18 = vld [vmem:[%s6987_s29 + $0xac] sm:$0xf]  ;;  %296 = vst [vmem:[#allocation3 + $0xb0] sm:$0xf] %v295_v62 }
  0x5c   :  { %298 = vst [vmem:[#allocation3 + $0xb4] sm:$0xf] %v297_v63  ;;  %300 = vst [vmem:[#allocation3 + $0xb8] sm:$0xf] %v299_v18  ;;  %v301_v19 = vld [vmem:[%s6987_s29 + $0xbc] sm:$0xf] }
  0x5d   :  { %v303_v20 = vld [vmem:[%s6987_s29 + $0xc0] sm:$0xf]  ;;  %v305_v21 = vld [vmem:[%s6987_s29 + $0xd0] sm:$0xf]  ;;  %302 = vst [vmem:[#allocation3 + $0xbc] sm:$0xf] %v301_v19 }
  0x5e   :  { %304 = vst [vmem:[#allocation3 + $0xc0] sm:$0xf] %v303_v20  ;;  %306 = vst [vmem:[#allocation3 + $0xc4] sm:$0xf] %v305_v21  ;;  %v307_v22 = vld [vmem:[%s6987_s29 + $0xc4] sm:$0xf] }
  0x5f   :  { %v309_v23 = vld [vmem:[%s6987_s29 + $0xd4] sm:$0xf]  ;;  %v311_v24 = vld [vmem:[%s6987_s29 + $0xc8] sm:$0xf]  ;;  %308 = vst [vmem:[#allocation3 + $0xc8] sm:$0xf] %v307_v22 }
  0x60   :  { %310 = vst [vmem:[#allocation3 + $0xcc] sm:$0xf] %v309_v23  ;;  %312 = vst [vmem:[#allocation3 + $0xd0] sm:$0xf] %v311_v24  ;;  %v313_v25 = vld [vmem:[%s6987_s29 + $0xd8] sm:$0xf] }
  0x61   :  { %v315_v26 = vld [vmem:[%s6987_s29 + $0xcc] sm:$0xf]  ;;  %v317_v27 = vld [vmem:[%s6987_s29 + $0xdc] sm:$0xf]  ;;  %314 = vst [vmem:[#allocation3 + $0xd4] sm:$0xf] %v313_v25 }
  0x62   :  { %316 = vst [vmem:[#allocation3 + $0xd8] sm:$0xf] %v315_v26  ;;  %318 = vst [vmem:[#allocation3 + $0xdc] sm:$0xf] %v317_v27  ;;  %v319_v28 = vld [vmem:[%s6987_s29 + $0xe0] sm:$0xf] }
  0x63   :  { %v321_v29 = vld [vmem:[%s6987_s29 + $0xf0] sm:$0xf]  ;;  %v323_v30 = vld [vmem:[%s6987_s29 + $0xe4] sm:$0xf]  ;;  %320 = vst [vmem:[#allocation3 + $0xe0] sm:$0xf] %v319_v28 }
  0x64   :  { %322 = vst [vmem:[#allocation3 + $0xe4] sm:$0xf] %v321_v29  ;;  %324 = vst [vmem:[#allocation3 + $0xe8] sm:$0xf] %v323_v30  ;;  %v325_v31 = vld [vmem:[%s6987_s29 + $0xf4] sm:$0xf] }
  0x65   :  { %v327_v32 = vld [vmem:[%s6987_s29 + $0xe8] sm:$0xf]  ;;  %v329_v33 = vld [vmem:[%s6987_s29 + $0xf8] sm:$0xf]  ;;  %326 = vst [vmem:[#allocation3 + $0xec] sm:$0xf] %v325_v31 }
  0x66   :  { %328 = vst [vmem:[#allocation3 + $0xf0] sm:$0xf] %v327_v32  ;;  %330 = vst [vmem:[#allocation3 + $0xf4] sm:$0xf] %v329_v33  ;;  %v331_v34 = vld [vmem:[%s6987_s29 + $0xec] sm:$0xf] }
  0x67   :  { %v333_v35 = vld [vmem:[%s6987_s29 + $0xfc] sm:$0xf]  ;;  %v335_v36 = vld [vmem:[%s6987_s29 + $0x100] sm:$0xf]  ;;  %332 = vst [vmem:[#allocation3 + $0xf8] sm:$0xf] %v331_v34 }
  0x68   :  { %334 = vst [vmem:[#allocation3 + $0xfc] sm:$0xf] %v333_v35  ;;  %336 = vst [vmem:[#allocation3 + $0x100] sm:$0xf] %v335_v36  ;;  %v337_v37 = vld [vmem:[%s6987_s29 + $0x110] sm:$0xf] }
  0x69   :  { %v339_v38 = vld [vmem:[%s6987_s29 + $0x104] sm:$0xf]  ;;  %v341_v39 = vld [vmem:[%s6987_s29 + $0x114] sm:$0xf]  ;;  %338 = vst [vmem:[#allocation3 + $0x104] sm:$0xf] %v337_v37 }
  0x6a   :  { %340 = vst [vmem:[#allocation3 + $0x108] sm:$0xf] %v339_v38  ;;  %342 = vst [vmem:[#allocation3 + $0x10c] sm:$0xf] %v341_v39  ;;  %v343_v40 = vld [vmem:[%s6987_s29 + $0x108] sm:$0xf] }
  0x6b   :  { %v345_v41 = vld [vmem:[%s6987_s29 + $0x118] sm:$0xf]  ;;  %v347_v42 = vld [vmem:[%s6987_s29 + $0x10c] sm:$0xf]  ;;  %344 = vst [vmem:[#allocation3 + $0x110] sm:$0xf] %v343_v40 }
  0x6c   :  { %346 = vst [vmem:[#allocation3 + $0x114] sm:$0xf] %v345_v41  ;;  %348 = vst [vmem:[#allocation3 + $0x118] sm:$0xf] %v347_v42  ;;  %v349_v43 = vld [vmem:[%s6987_s29 + $0x11c] sm:$0xf] }
  0x6d   :  { %v351_v44 = vld [vmem:[%s6987_s29 + $0x120] sm:$0xf]  ;;  %v353_v45 = vld [vmem:[%s6987_s29 + $0x130] sm:$0xf]  ;;  %350 = vst [vmem:[#allocation3 + $0x11c] sm:$0xf] %v349_v43 }
  0x6e   :  { %352 = vst [vmem:[#allocation3 + $0x120] sm:$0xf] %v351_v44  ;;  %354 = vst [vmem:[#allocation3 + $0x124] sm:$0xf] %v353_v45  ;;  %v355_v46 = vld [vmem:[%s6987_s29 + $0x124] sm:$0xf] }
  0x6f   :  { %v357_v47 = vld [vmem:[%s6987_s29 + $0x134] sm:$0xf]  ;;  %v359_v48 = vld [vmem:[%s6987_s29 + $0x128] sm:$0xf]  ;;  %356 = vst [vmem:[#allocation3 + $0x128] sm:$0xf] %v355_v46 }
  0x70   :  { %358 = vst [vmem:[#allocation3 + $0x12c] sm:$0xf] %v357_v47  ;;  %360 = vst [vmem:[#allocation3 + $0x130] sm:$0xf] %v359_v48  ;;  %v361_v49 = vld [vmem:[%s6987_s29 + $0x138] sm:$0xf] }
  0x71   :  { %v363_v50 = vld [vmem:[%s6987_s29 + $0x12c] sm:$0xf]  ;;  %v365_v51 = vld [vmem:[%s6987_s29 + $0x13c] sm:$0xf]  ;;  %362 = vst [vmem:[#allocation3 + $0x134] sm:$0xf] %v361_v49 }
  0x72   :  { %364 = vst [vmem:[#allocation3 + $0x138] sm:$0xf] %v363_v50  ;;  %366 = vst [vmem:[#allocation3 + $0x13c] sm:$0xf] %v365_v51  ;;  %v367_v52 = vld [vmem:[%s6987_s29 + $0x140] sm:$0xf] }
  0x73   :  { %v369_v53 = vld [vmem:[%s6987_s29 + $0x150] sm:$0xf]  ;;  %v371_v54 = vld [vmem:[%s6987_s29 + $0x144] sm:$0xf]  ;;  %368 = vst [vmem:[#allocation3 + $0x140] sm:$0xf] %v367_v52 }
  0x74   :  { %370 = vst [vmem:[#allocation3 + $0x144] sm:$0xf] %v369_v53  ;;  %372 = vst [vmem:[#allocation3 + $0x148] sm:$0xf] %v371_v54  ;;  %v373_v55 = vld [vmem:[%s6987_s29 + $0x154] sm:$0xf] }
  0x75   :  { %v375_v56 = vld [vmem:[%s6987_s29 + $0x148] sm:$0xf]  ;;  %v377_v57 = vld [vmem:[%s6987_s29 + $0x158] sm:$0xf]  ;;  %374 = vst [vmem:[#allocation3 + $0x14c] sm:$0xf] %v373_v55 }
  0x76   :  { %376 = vst [vmem:[#allocation3 + $0x150] sm:$0xf] %v375_v56  ;;  %378 = vst [vmem:[#allocation3 + $0x154] sm:$0xf] %v377_v57  ;;  %v379_v58 = vld [vmem:[%s6987_s29 + $0x14c] sm:$0xf] }
  0x77   :  { %v381_v59 = vld [vmem:[%s6987_s29 + $0x15c] sm:$0xf]  ;;  %v383_v60 = vld [vmem:[%s6987_s29 + $0x160] sm:$0xf]  ;;  %380 = vst [vmem:[#allocation3 + $0x158] sm:$0xf] %v379_v58 }
  0x78   :  { %382 = vst [vmem:[#allocation3 + $0x15c] sm:$0xf] %v381_v59  ;;  %384 = vst [vmem:[#allocation3 + $0x160] sm:$0xf] %v383_v60  ;;  %v385_v61 = vld [vmem:[%s6987_s29 + $0x170] sm:$0xf] }
  0x79   :  { %v387_v62 = vld [vmem:[%s6987_s29 + $0x164] sm:$0xf]  ;;  %v389_v63 = vld [vmem:[%s6987_s29 + $0x174] sm:$0xf]  ;;  %386 = vst [vmem:[#allocation3 + $0x164] sm:$0xf] %v385_v61 }
  0x7a   :  { %388 = vst [vmem:[#allocation3 + $0x168] sm:$0xf] %v387_v62  ;;  %390 = vst [vmem:[#allocation3 + $0x16c] sm:$0xf] %v389_v63  ;;  %v391_v18 = vld [vmem:[%s6987_s29 + $0x168] sm:$0xf] }
  0x7b   :  { %v393_v19 = vld [vmem:[%s6987_s29 + $0x178] sm:$0xf]  ;;  %v395_v20 = vld [vmem:[%s6987_s29 + $0x16c] sm:$0xf]  ;;  %392 = vst [vmem:[#allocation3 + $0x170] sm:$0xf] %v391_v18 }
  0x7c   :  { %394 = vst [vmem:[#allocation3 + $0x174] sm:$0xf] %v393_v19  ;;  %396 = vst [vmem:[#allocation3 + $0x178] sm:$0xf] %v395_v20  ;;  %v397_v21 = vld [vmem:[%s6987_s29 + $0x17c] sm:$0xf] }
  0x7d   :  { %v399_v22 = vld [vmem:[%s6987_s29 + $0x180] sm:$0xf]  ;;  %v401_v23 = vld [vmem:[%s6987_s29 + $0x190] sm:$0xf]  ;;  %398 = vst [vmem:[#allocation3 + $0x17c] sm:$0xf] %v397_v21 }
  0x7e   :  { %400 = vst [vmem:[#allocation3 + $0x180] sm:$0xf] %v399_v22  ;;  %402 = vst [vmem:[#allocation3 + $0x184] sm:$0xf] %v401_v23  ;;  %v403_v24 = vld [vmem:[%s6987_s29 + $0x184] sm:$0xf] }
  0x7f   :  { %v405_v25 = vld [vmem:[%s6987_s29 + $0x194] sm:$0xf]  ;;  %v407_v26 = vld [vmem:[%s6987_s29 + $0x188] sm:$0xf]  ;;  %404 = vst [vmem:[#allocation3 + $0x188] sm:$0xf] %v403_v24 }
  0x80   :  { %406 = vst [vmem:[#allocation3 + $0x18c] sm:$0xf] %v405_v25  ;;  %408 = vst [vmem:[#allocation3 + $0x190] sm:$0xf] %v407_v26  ;;  %v409_v27 = vld [vmem:[%s6987_s29 + $0x198] sm:$0xf] }
  0x81   :  { %v411_v28 = vld [vmem:[%s6987_s29 + $0x18c] sm:$0xf]  ;;  %v413_v29 = vld [vmem:[%s6987_s29 + $0x19c] sm:$0xf]  ;;  %410 = vst [vmem:[#allocation3 + $0x194] sm:$0xf] %v409_v27 }
  0x82   :  { %412 = vst [vmem:[#allocation3 + $0x198] sm:$0xf] %v411_v28  ;;  %414 = vst [vmem:[#allocation3 + $0x19c] sm:$0xf] %v413_v29  ;;  %v415_v30 = vld [vmem:[%s6987_s29 + $0x1a0] sm:$0xf] }
  0x83   :  { %v417_v31 = vld [vmem:[%s6987_s29 + $0x1b0] sm:$0xf]  ;;  %v419_v32 = vld [vmem:[%s6987_s29 + $0x1a4] sm:$0xf]  ;;  %416 = vst [vmem:[#allocation3 + $0x1a0] sm:$0xf] %v415_v30 }
  0x84   :  { %418 = vst [vmem:[#allocation3 + $0x1a4] sm:$0xf] %v417_v31  ;;  %420 = vst [vmem:[#allocation3 + $0x1a8] sm:$0xf] %v419_v32  ;;  %v421_v33 = vld [vmem:[%s6987_s29 + $0x1b4] sm:$0xf] }
  0x85   :  { %v423_v34 = vld [vmem:[%s6987_s29 + $0x1a8] sm:$0xf]  ;;  %v425_v35 = vld [vmem:[%s6987_s29 + $0x1b8] sm:$0xf]  ;;  %422 = vst [vmem:[#allocation3 + $0x1ac] sm:$0xf] %v421_v33 }
  0x86   :  { %424 = vst [vmem:[#allocation3 + $0x1b0] sm:$0xf] %v423_v34  ;;  %426 = vst [vmem:[#allocation3 + $0x1b4] sm:$0xf] %v425_v35  ;;  %v427_v36 = vld [vmem:[%s6987_s29 + $0x1ac] sm:$0xf] }
  0x87   :  { %v429_v37 = vld [vmem:[%s6987_s29 + $0x1bc] sm:$0xf]  ;;  %v431_v38 = vld [vmem:[%s6987_s29 + $0x1c0] sm:$0xf]  ;;  %428 = vst [vmem:[#allocation3 + $0x1b8] sm:$0xf] %v427_v36 }
  0x88   :  { %430 = vst [vmem:[#allocation3 + $0x1bc] sm:$0xf] %v429_v37  ;;  %432 = vst [vmem:[#allocation3 + $0x1c0] sm:$0xf] %v431_v38  ;;  %v433_v39 = vld [vmem:[%s6987_s29 + $0x1d0] sm:$0xf] }
  0x89   :  { %v435_v40 = vld [vmem:[%s6987_s29 + $0x1c4] sm:$0xf]  ;;  %v437_v41 = vld [vmem:[%s6987_s29 + $0x1d4] sm:$0xf]  ;;  %434 = vst [vmem:[#allocation3 + $0x1c4] sm:$0xf] %v433_v39 }
  0x8a   :  { %436 = vst [vmem:[#allocation3 + $0x1c8] sm:$0xf] %v435_v40  ;;  %438 = vst [vmem:[#allocation3 + $0x1cc] sm:$0xf] %v437_v41  ;;  %v439_v42 = vld [vmem:[%s6987_s29 + $0x1c8] sm:$0xf] }
  0x8b   :  { %v441_v43 = vld [vmem:[%s6987_s29 + $0x1d8] sm:$0xf]  ;;  %v443_v44 = vld [vmem:[%s6987_s29 + $0x1cc] sm:$0xf]  ;;  %440 = vst [vmem:[#allocation3 + $0x1d0] sm:$0xf] %v439_v42 }
  0x8c   :  { %442 = vst [vmem:[#allocation3 + $0x1d4] sm:$0xf] %v441_v43  ;;  %444 = vst [vmem:[#allocation3 + $0x1d8] sm:$0xf] %v443_v44  ;;  %v445_v45 = vld [vmem:[%s6987_s29 + $0x1dc] sm:$0xf] }
  0x8d   :  { %v447_v46 = vld [vmem:[%s6987_s29 + $0x1e0] sm:$0xf]  ;;  %v449_v47 = vld [vmem:[%s6987_s29 + $0x1f0] sm:$0xf]  ;;  %446 = vst [vmem:[#allocation3 + $0x1dc] sm:$0xf] %v445_v45 }
  0x8e   :  { %448 = vst [vmem:[#allocation3 + $0x1e0] sm:$0xf] %v447_v46  ;;  %450 = vst [vmem:[#allocation3 + $0x1e4] sm:$0xf] %v449_v47  ;;  %v451_v48 = vld [vmem:[%s6987_s29 + $0x1e4] sm:$0xf] }
  0x8f   :  { %v453_v49 = vld [vmem:[%s6987_s29 + $0x1f4] sm:$0xf]  ;;  %v455_v50 = vld [vmem:[%s6987_s29 + $0x1e8] sm:$0xf]  ;;  %452 = vst [vmem:[#allocation3 + $0x1e8] sm:$0xf] %v451_v48 }
  0x90   :  { %454 = vst [vmem:[#allocation3 + $0x1ec] sm:$0xf] %v453_v49  ;;  %456 = vst [vmem:[#allocation3 + $0x1f0] sm:$0xf] %v455_v50  ;;  %v457_v51 = vld [vmem:[%s6987_s29 + $0x1f8] sm:$0xf] }
  0x91   :  { %v459_v52 = vld [vmem:[%s6987_s29 + $0x1ec] sm:$0xf]  ;;  %v461_v53 = vld [vmem:[%s6987_s29 + $0x1fc] sm:$0xf]  ;;  %458 = vst [vmem:[#allocation3 + $0x1f4] sm:$0xf] %v457_v51 }
  0x92   :  { %460 = vst [vmem:[#allocation3 + $0x1f8] sm:$0xf] %v459_v52  ;;  %462 = vst [vmem:[#allocation3 + $0x1fc] sm:$0xf] %v461_v53 }
  0x93   :  { %749 = vsyncadd [#allocation10 + $0x1], 8192  ;;  %v7297_v54 = vld [vmem:[%s6997_s8] sm:$0xff]  ;;  %v7300_v55 = vld [vmem:[%s6997_s8 + $0x8] sm:$0xff] }
  0x94   :  { %8548 = vst [vmem:[#allocation55_spill] sm:$0xff] %v7297_v54  ;;  %8549 = vst [vmem:[#allocation56_spill] sm:$0xff] %v7300_v55  ;;  %v7303_v56 = vld [vmem:[%s6997_s8 + $0x10] sm:$0xff]  ;;  %v7306_v57 = vld [vmem:[%s6997_s8 + $0x18] sm:$0xff] }
  0x95   :  { %8550 = vst [vmem:[#allocation57_spill] sm:$0xff] %v7303_v56  ;;  %8551 = vst [vmem:[#allocation58_spill] sm:$0xff] %v7306_v57  ;;  %v7309_v58 = vld [vmem:[%s6997_s8 + $0x20] sm:$0xff]  ;;  %v7312_v59 = vld [vmem:[%s6997_s8 + $0x28] sm:$0xff] }
  0x96   :  { %8552 = vst [vmem:[#allocation59_spill] sm:$0xff] %v7309_v58  ;;  %8553 = vst [vmem:[#allocation60_spill] sm:$0xff] %v7312_v59  ;;  %v7315_v60 = vld [vmem:[%s6997_s8 + $0x30] sm:$0xff]  ;;  %v7318_v61 = vld [vmem:[%s6997_s8 + $0x38] sm:$0xff] }
  0x97   :  { %8554 = vst [vmem:[#allocation61_spill] sm:$0xff] %v7315_v60  ;;  %8555 = vst [vmem:[#allocation62_spill] sm:$0xff] %v7318_v61  ;;  %v7321_v62 = vld [vmem:[%s6997_s8 + $0x40] sm:$0xff]  ;;  %v7324_v63 = vld [vmem:[%s6997_s8 + $0x48] sm:$0xff] }
  0x98   :  { %8556 = vst [vmem:[#allocation63_spill] sm:$0xff] %v7321_v62  ;;  %8557 = vst [vmem:[#allocation64_spill] sm:$0xff] %v7324_v63  ;;  %v7327_v18 = vld [vmem:[%s6997_s8 + $0x50] sm:$0xff]  ;;  %v7330_v19 = vld [vmem:[%s6997_s8 + $0x58] sm:$0xff] }
  0x99   :  { %8558 = vst [vmem:[#allocation65_spill] sm:$0xff] %v7327_v18  ;;  %8559 = vst [vmem:[#allocation66_spill] sm:$0xff] %v7330_v19  ;;  %v7333_v20 = vld [vmem:[%s6997_s8 + $0x60] sm:$0xff]  ;;  %v7336_v21 = vld [vmem:[%s6997_s8 + $0x68] sm:$0xff] }
  0x9a   :  { %8560 = vst [vmem:[#allocation67_spill] sm:$0xff] %v7333_v20  ;;  %8561 = vst [vmem:[#allocation68_spill] sm:$0xff] %v7336_v21  ;;  %v7339_v22 = vld [vmem:[%s6997_s8 + $0x70] sm:$0xff]  ;;  %v7342_v23 = vld [vmem:[%s6997_s8 + $0x78] sm:$0xff] }
  0x9b   :  { %8562 = vst [vmem:[#allocation69_spill] sm:$0xff] %v7339_v22  ;;  %8563 = vst [vmem:[#allocation70_spill] sm:$0xff] %v7342_v23  ;;  %v7345_v24 = vld [vmem:[%s6997_s8 + $0x80] sm:$0xff]  ;;  %v7348_v25 = vld [vmem:[%s6997_s8 + $0x88] sm:$0xff] }
  0x9c   :  { %8564 = vst [vmem:[#allocation71_spill] sm:$0xff] %v7345_v24  ;;  %8565 = vst [vmem:[#allocation72_spill] sm:$0xff] %v7348_v25  ;;  %v7351_v26 = vld [vmem:[%s6997_s8 + $0x90] sm:$0xff]  ;;  %v7354_v27 = vld [vmem:[%s6997_s8 + $0x98] sm:$0xff] }
  0x9d   :  { %8566 = vst [vmem:[#allocation73_spill] sm:$0xff] %v7351_v26  ;;  %8567 = vst [vmem:[#allocation74_spill] sm:$0xff] %v7354_v27  ;;  %v7357_v28 = vld [vmem:[%s6997_s8 + $0xa0] sm:$0xff]  ;;  %v7360_v29 = vld [vmem:[%s6997_s8 + $0xa8] sm:$0xff] }
  0x9e   :  { %8568 = vst [vmem:[#allocation75_spill] sm:$0xff] %v7357_v28  ;;  %8569 = vst [vmem:[#allocation76_spill] sm:$0xff] %v7360_v29  ;;  %v7363_v30 = vld [vmem:[%s6997_s8 + $0xb0] sm:$0xff]  ;;  %v7366_v31 = vld [vmem:[%s6997_s8 + $0xb8] sm:$0xff] }
  0x9f   :  { %8570 = vst [vmem:[#allocation77_spill] sm:$0xff] %v7363_v30  ;;  %8571 = vst [vmem:[#allocation78_spill] sm:$0xff] %v7366_v31  ;;  %v7369_v32 = vld [vmem:[%s6997_s8 + $0xc0] sm:$0xff]  ;;  %v7372_v33 = vld [vmem:[%s6997_s8 + $0xc8] sm:$0xff] }
  0xa0   :  { %8572 = vst [vmem:[#allocation79_spill] sm:$0xff] %v7369_v32  ;;  %8573 = vst [vmem:[#allocation80_spill] sm:$0xff] %v7372_v33  ;;  %v7375_v34 = vld [vmem:[%s6997_s8 + $0xd0] sm:$0xff]  ;;  %v7378_v35 = vld [vmem:[%s6997_s8 + $0xd8] sm:$0xff] }
  0xa1   :  { %8574 = vst [vmem:[#allocation81_spill] sm:$0xff] %v7375_v34  ;;  %8575 = vst [vmem:[#allocation82_spill] sm:$0xff] %v7378_v35  ;;  %v7381_v36 = vld [vmem:[%s6997_s8 + $0xe0] sm:$0xff]  ;;  %v7384_v37 = vld [vmem:[%s6997_s8 + $0xe8] sm:$0xff] }
  0xa2   :  { %8576 = vst [vmem:[#allocation83_spill] sm:$0xff] %v7381_v36  ;;  %8577 = vst [vmem:[#allocation84_spill] sm:$0xff] %v7384_v37  ;;  %v7387_v38 = vld [vmem:[%s6997_s8 + $0xf0] sm:$0xff]  ;;  %v7390_v39 = vld [vmem:[%s6997_s8 + $0xf8] sm:$0xff] }
  0xa3   :  { %8578 = vst [vmem:[#allocation85_spill] sm:$0xff] %v7387_v38  ;;  %8579 = vst [vmem:[#allocation86_spill] sm:$0xff] %v7390_v39 }
  0xa4   :  { %854 = vsyncadd [#allocation10 + $0x2], 4096  ;;  %v873_v40 = vld [vmem:[%s7022_s6] sm:$0xf]  ;;  %v875_v41 = vld [vmem:[%s7022_s6 + $0x8] sm:$0xf] }
  0xa5   :  { %874 = vst [vmem:[#allocation5] sm:$0xf] %v873_v40  ;;  %876 = vst [vmem:[#allocation5 + $0x4] sm:$0xf] %v875_v41  ;;  %v877_v42 = vld [vmem:[%s7022_s6 + $0x4] sm:$0xf] }
  0xa6   :  { %v879_v43 = vld [vmem:[%s7022_s6 + $0xc] sm:$0xf]  ;;  %v881_v44 = vld [vmem:[%s7022_s6 + $0x10] sm:$0xf]  ;;  %878 = vst [vmem:[#allocation5 + $0x8] sm:$0xf] %v877_v42 }
  0xa7   :  { %880 = vst [vmem:[#allocation5 + $0xc] sm:$0xf] %v879_v43  ;;  %882 = vst [vmem:[#allocation5 + $0x10] sm:$0xf] %v881_v44  ;;  %v883_v45 = vld [vmem:[%s7022_s6 + $0x18] sm:$0xf] }
  0xa8   :  { %v885_v46 = vld [vmem:[%s7022_s6 + $0x14] sm:$0xf]  ;;  %v887_v47 = vld [vmem:[%s7022_s6 + $0x1c] sm:$0xf]  ;;  %884 = vst [vmem:[#allocation5 + $0x14] sm:$0xf] %v883_v45 }
  0xa9   :  { %886 = vst [vmem:[#allocation5 + $0x18] sm:$0xf] %v885_v46  ;;  %888 = vst [vmem:[#allocation5 + $0x1c] sm:$0xf] %v887_v47  ;;  %v889_v48 = vld [vmem:[%s7022_s6 + $0x20] sm:$0xf] }
  0xaa   :  { %v891_v49 = vld [vmem:[%s7022_s6 + $0x28] sm:$0xf]  ;;  %v893_v50 = vld [vmem:[%s7022_s6 + $0x24] sm:$0xf]  ;;  %890 = vst [vmem:[#allocation5 + $0x20] sm:$0xf] %v889_v48 }
  0xab   :  { %892 = vst [vmem:[#allocation5 + $0x24] sm:$0xf] %v891_v49  ;;  %894 = vst [vmem:[#allocation5 + $0x28] sm:$0xf] %v893_v50  ;;  %v895_v51 = vld [vmem:[%s7022_s6 + $0x2c] sm:$0xf] }
  0xac   :  { %v897_v52 = vld [vmem:[%s7022_s6 + $0x30] sm:$0xf]  ;;  %v899_v53 = vld [vmem:[%s7022_s6 + $0x38] sm:$0xf]  ;;  %896 = vst [vmem:[#allocation5 + $0x2c] sm:$0xf] %v895_v51 }
  0xad   :  { %898 = vst [vmem:[#allocation5 + $0x30] sm:$0xf] %v897_v52  ;;  %900 = vst [vmem:[#allocation5 + $0x34] sm:$0xf] %v899_v53  ;;  %v901_v40 = vld [vmem:[%s7022_s6 + $0x34] sm:$0xf] }
  0xae   :  { %v903_v41 = vld [vmem:[%s7022_s6 + $0x3c] sm:$0xf]  ;;  %v905_v42 = vld [vmem:[%s7022_s6 + $0x40] sm:$0xf]  ;;  %902 = vst [vmem:[#allocation5 + $0x38] sm:$0xf] %v901_v40 }
  0xaf   :  { %904 = vst [vmem:[#allocation5 + $0x3c] sm:$0xf] %v903_v41  ;;  %906 = vst [vmem:[#allocation5 + $0x40] sm:$0xf] %v905_v42  ;;  %v907_v43 = vld [vmem:[%s7022_s6 + $0x48] sm:$0xf] }
  0xb0   :  { %v909_v44 = vld [vmem:[%s7022_s6 + $0x44] sm:$0xf]  ;;  %v911_v45 = vld [vmem:[%s7022_s6 + $0x4c] sm:$0xf]  ;;  %908 = vst [vmem:[#allocation5 + $0x44] sm:$0xf] %v907_v43 }
  0xb1   :  { %910 = vst [vmem:[#allocation5 + $0x48] sm:$0xf] %v909_v44  ;;  %912 = vst [vmem:[#allocation5 + $0x4c] sm:$0xf] %v911_v45  ;;  %v913_v46 = vld [vmem:[%s7022_s6 + $0x50] sm:$0xf] }
  0xb2   :  { %v915_v47 = vld [vmem:[%s7022_s6 + $0x58] sm:$0xf]  ;;  %v917_v48 = vld [vmem:[%s7022_s6 + $0x54] sm:$0xf]  ;;  %914 = vst [vmem:[#allocation5 + $0x50] sm:$0xf] %v913_v46 }
  0xb3   :  { %916 = vst [vmem:[#allocation5 + $0x54] sm:$0xf] %v915_v47  ;;  %918 = vst [vmem:[#allocation5 + $0x58] sm:$0xf] %v917_v48  ;;  %v919_v49 = vld [vmem:[%s7022_s6 + $0x5c] sm:$0xf] }
  0xb4   :  { %v921_v50 = vld [vmem:[%s7022_s6 + $0x60] sm:$0xf]  ;;  %v923_v51 = vld [vmem:[%s7022_s6 + $0x68] sm:$0xf]  ;;  %920 = vst [vmem:[#allocation5 + $0x5c] sm:$0xf] %v919_v49 }
  0xb5   :  { %922 = vst [vmem:[#allocation5 + $0x60] sm:$0xf] %v921_v50  ;;  %924 = vst [vmem:[#allocation5 + $0x64] sm:$0xf] %v923_v51  ;;  %v925_v52 = vld [vmem:[%s7022_s6 + $0x64] sm:$0xf] }
  0xb6   :  { %v927_v53 = vld [vmem:[%s7022_s6 + $0x6c] sm:$0xf]  ;;  %v929_v40 = vld [vmem:[%s7022_s6 + $0x70] sm:$0xf]  ;;  %926 = vst [vmem:[#allocation5 + $0x68] sm:$0xf] %v925_v52 }
  0xb7   :  { %928 = vst [vmem:[#allocation5 + $0x6c] sm:$0xf] %v927_v53  ;;  %930 = vst [vmem:[#allocation5 + $0x70] sm:$0xf] %v929_v40  ;;  %v931_v41 = vld [vmem:[%s7022_s6 + $0x78] sm:$0xf] }
  0xb8   :  { %v933_v42 = vld [vmem:[%s7022_s6 + $0x74] sm:$0xf]  ;;  %v935_v43 = vld [vmem:[%s7022_s6 + $0x7c] sm:$0xf]  ;;  %932 = vst [vmem:[#allocation5 + $0x74] sm:$0xf] %v931_v41 }
  0xb9   :  { %934 = vst [vmem:[#allocation5 + $0x78] sm:$0xf] %v933_v42  ;;  %936 = vst [vmem:[#allocation5 + $0x7c] sm:$0xf] %v935_v43 }
  0xba   :  { %1031 = vsyncadd [#allocation10 + $0x3], 2048  ;;  %v7425_v44 = vld [vmem:[%s7032_s20] sm:$0xff]  ;;  %v7428_v45 = vld [vmem:[%s7032_s20 + $0x8] sm:$0xff] }
  0xbb   :  { %8580 = vst [vmem:[#allocation87_spill] sm:$0xff] %v7425_v44  ;;  %8581 = vst [vmem:[#allocation88_spill] sm:$0xff] %v7428_v45  ;;  %v7431_v46 = vld [vmem:[%s7032_s20 + $0x10] sm:$0xff]  ;;  %v7434_v47 = vld [vmem:[%s7032_s20 + $0x18] sm:$0xff] }
  0xbc   :  { %8582 = vst [vmem:[#allocation89_spill] sm:$0xff] %v7431_v46  ;;  %8583 = vst [vmem:[#allocation90_spill] sm:$0xff] %v7434_v47  ;;  %v7437_v48 = vld [vmem:[%s7032_s20 + $0x20] sm:$0xff]  ;;  %v7440_v49 = vld [vmem:[%s7032_s20 + $0x28] sm:$0xff] }
  0xbd   :  { %8584 = vst [vmem:[#allocation91_spill] sm:$0xff] %v7437_v48  ;;  %8585 = vst [vmem:[#allocation92_spill] sm:$0xff] %v7440_v49  ;;  %v7443_v50 = vld [vmem:[%s7032_s20 + $0x30] sm:$0xff]  ;;  %v7446_v51 = vld [vmem:[%s7032_s20 + $0x38] sm:$0xff] }
  0xbe   :  { %8586 = vst [vmem:[#allocation93_spill] sm:$0xff] %v7443_v50  ;;  %8587 = vst [vmem:[#allocation94_spill] sm:$0xff] %v7446_v51  ;;  %v7449_v52 = vld [vmem:[%s7032_s20 + $0x40] sm:$0xff]  ;;  %v7452_v53 = vld [vmem:[%s7032_s20 + $0x48] sm:$0xff] }
  0xbf   :  { %8588 = vst [vmem:[#allocation95_spill] sm:$0xff] %v7449_v52  ;;  %8589 = vst [vmem:[#allocation96_spill] sm:$0xff] %v7452_v53  ;;  %v7455_v40 = vld [vmem:[%s7032_s20 + $0x50] sm:$0xff]  ;;  %v7458_v41 = vld [vmem:[%s7032_s20 + $0x58] sm:$0xff] }
  0xc0   :  { %8590 = vst [vmem:[#allocation97_spill] sm:$0xff] %v7455_v40  ;;  %8591 = vst [vmem:[#allocation98_spill] sm:$0xff] %v7458_v41  ;;  %v7461_v42 = vld [vmem:[%s7032_s20 + $0x60] sm:$0xff]  ;;  %v7464_v43 = vld [vmem:[%s7032_s20 + $0x68] sm:$0xff] }
  0xc1   :  { %8592 = vst [vmem:[#allocation99_spill] sm:$0xff] %v7461_v42  ;;  %8593 = vst [vmem:[#allocation100_spill] sm:$0xff] %v7464_v43  ;;  %v7467_v47 = vld [vmem:[%s7032_s20 + $0x70] sm:$0xff]  ;;  %v7470_v48 = vld [vmem:[%s7032_s20 + $0x78] sm:$0xff] }
  0xc2   :  { %8594 = vst [vmem:[#allocation101_spill] sm:$0xff] %v7467_v47  ;;  %8595 = vst [vmem:[#allocation102_spill] sm:$0xff] %v7470_v48 }
  0xc3   :  { %1104 = vsyncadd [#allocation10 + $0x4], 2048  ;;  %v1123_v51 = vld [vmem:[%s7057_s27] sm:$0xf]  ;;  %v1125_v50 = vld [vmem:[%s7057_s27 + $0x8] sm:$0xf] }
  0xc4   :  { %1124 = vst [vmem:[#allocation7] sm:$0xf] %v1123_v51  ;;  %1126 = vst [vmem:[#allocation7 + $0x4] sm:$0xf] %v1125_v50  ;;  %v1127_v49 = vld [vmem:[%s7057_s27 + $0x4] sm:$0xf] }
  0xc5   :  { %v1129_v47 = vld [vmem:[%s7057_s27 + $0xc] sm:$0xf]  ;;  %v1131_v43 = vld [vmem:[%s7057_s27 + $0x10] sm:$0xf]  ;;  %1128 = vst [vmem:[#allocation7 + $0x8] sm:$0xf] %v1127_v49 }
  0xc6   :  { %1130 = vst [vmem:[#allocation7 + $0xc] sm:$0xf] %v1129_v47  ;;  %1132 = vst [vmem:[#allocation7 + $0x10] sm:$0xf] %v1131_v43  ;;  %v1133_v48 = vld [vmem:[%s7057_s27 + $0x18] sm:$0xf] }
  0xc7   :  { %v1135_v42 = vld [vmem:[%s7057_s27 + $0x14] sm:$0xf]  ;;  %v1137_v41 = vld [vmem:[%s7057_s27 + $0x1c] sm:$0xf]  ;;  %1134 = vst [vmem:[#allocation7 + $0x14] sm:$0xf] %v1133_v48 }
  0xc8   :  { %1136 = vst [vmem:[#allocation7 + $0x18] sm:$0xf] %v1135_v42  ;;  %1138 = vst [vmem:[#allocation7 + $0x1c] sm:$0xf] %v1137_v41  ;;  %v1139_v51 = vld [vmem:[%s7057_s27 + $0x20] sm:$0xf] }
  0xc9   :  { %v1141_v50 = vld [vmem:[%s7057_s27 + $0x28] sm:$0xf]  ;;  %v1143_v46 = vld [vmem:[%s7057_s27 + $0x24] sm:$0xf]  ;;  %1140 = vst [vmem:[#allocation7 + $0x20] sm:$0xf] %v1139_v51 }
  0xca   :  { %1142 = vst [vmem:[#allocation7 + $0x24] sm:$0xf] %v1141_v50  ;;  %1144 = vst [vmem:[#allocation7 + $0x28] sm:$0xf] %v1143_v46  ;;  %v1145_v47 = vld [vmem:[%s7057_s27 + $0x2c] sm:$0xf] }
  0xcb   :  { %v1147_v49 = vld [vmem:[%s7057_s27 + $0x30] sm:$0xf]  ;;  %v1149_v43 = vld [vmem:[%s7057_s27 + $0x38] sm:$0xf]  ;;  %1146 = vst [vmem:[#allocation7 + $0x2c] sm:$0xf] %v1145_v47 }
  0xcc   :  { %1148 = vst [vmem:[#allocation7 + $0x30] sm:$0xf] %v1147_v49  ;;  %1150 = vst [vmem:[#allocation7 + $0x34] sm:$0xf] %v1149_v43  ;;  %v1151_v48 = vld [vmem:[%s7057_s27 + $0x34] sm:$0xf] }
  0xcd   :  { %v1153_v41 = vld [vmem:[%s7057_s27 + $0x3c] sm:$0xf]  ;;  %v1155_v42 = vld [vmem:[%s7057_s27 + $0x40] sm:$0xf]  ;;  %1152 = vst [vmem:[#allocation7 + $0x38] sm:$0xf] %v1151_v48 }
  0xce   :  { %1154 = vst [vmem:[#allocation7 + $0x3c] sm:$0xf] %v1153_v41  ;;  %1156 = vst [vmem:[#allocation7 + $0x40] sm:$0xf] %v1155_v42  ;;  %v1157_v51 = vld [vmem:[%s7057_s27 + $0x48] sm:$0xf] }
  0xcf   :  { %v1159_v46 = vld [vmem:[%s7057_s27 + $0x44] sm:$0xf]  ;;  %v1161_v50 = vld [vmem:[%s7057_s27 + $0x4c] sm:$0xf]  ;;  %1158 = vst [vmem:[#allocation7 + $0x44] sm:$0xf] %v1157_v51 }
  0xd0   :  { %1160 = vst [vmem:[#allocation7 + $0x48] sm:$0xf] %v1159_v46  ;;  %1162 = vst [vmem:[#allocation7 + $0x4c] sm:$0xf] %v1161_v50  ;;  %v1163_v47 = vld [vmem:[%s7057_s27 + $0x50] sm:$0xf] }
  0xd1   :  { %v1165_v49 = vld [vmem:[%s7057_s27 + $0x58] sm:$0xf]  ;;  %v1167_v43 = vld [vmem:[%s7057_s27 + $0x54] sm:$0xf]  ;;  %1164 = vst [vmem:[#allocation7 + $0x50] sm:$0xf] %v1163_v47 }
  0xd2   :  { %1166 = vst [vmem:[#allocation7 + $0x54] sm:$0xf] %v1165_v49  ;;  %1168 = vst [vmem:[#allocation7 + $0x58] sm:$0xf] %v1167_v43  ;;  %v1169_v48 = vld [vmem:[%s7057_s27 + $0x5c] sm:$0xf] }
  0xd3   :  { %v1171_v41 = vld [vmem:[%s7057_s27 + $0x60] sm:$0xf]  ;;  %v1173_v42 = vld [vmem:[%s7057_s27 + $0x68] sm:$0xf]  ;;  %1170 = vst [vmem:[#allocation7 + $0x5c] sm:$0xf] %v1169_v48 }
  0xd4   :  { %1172 = vst [vmem:[#allocation7 + $0x60] sm:$0xf] %v1171_v41  ;;  %1174 = vst [vmem:[#allocation7 + $0x64] sm:$0xf] %v1173_v42  ;;  %v1175_v51 = vld [vmem:[%s7057_s27 + $0x64] sm:$0xf] }
  0xd5   :  { %v1177_v40 = vld [vmem:[%s7057_s27 + $0x6c] sm:$0xf]  ;;  %v1179_v46 = vld [vmem:[%s7057_s27 + $0x70] sm:$0xf]  ;;  %1176 = vst [vmem:[#allocation7 + $0x68] sm:$0xf] %v1175_v51 }
  0xd6   :  { %1178 = vst [vmem:[#allocation7 + $0x6c] sm:$0xf] %v1177_v40  ;;  %1180 = vst [vmem:[#allocation7 + $0x70] sm:$0xf] %v1179_v46  ;;  %v1181_v50 = vld [vmem:[%s7057_s27 + $0x78] sm:$0xf] }
  0xd7   :  { %v1183_v45 = vld [vmem:[%s7057_s27 + $0x74] sm:$0xf]  ;;  %v1185_v53 = vld [vmem:[%s7057_s27 + $0x7c] sm:$0xf]  ;;  %1182 = vst [vmem:[#allocation7 + $0x74] sm:$0xf] %v1181_v50 }
  0xd8   :  { %1184 = vst [vmem:[#allocation7 + $0x78] sm:$0xf] %v1183_v45  ;;  %1186 = vst [vmem:[#allocation7 + $0x7c] sm:$0xf] %v1185_v53 }
  0xd9   :  { %1281 = vsyncadd [#allocation10 + $0x5], 2048  ;;  %v7505_v40 = vld [vmem:[%s7067_s12] sm:$0xff]  ;;  %v7508_v45 = vld [vmem:[%s7067_s12 + $0x8] sm:$0xff] }
  0xda   :  { %8596 = vst [vmem:[#allocation103_spill] sm:$0xff] %v7505_v40  ;;  %8597 = vst [vmem:[#allocation104_spill] sm:$0xff] %v7508_v45  ;;  %v7511_v53 = vld [vmem:[%s7067_s12 + $0x10] sm:$0xff]  ;;  %v7514_v47 = vld [vmem:[%s7067_s12 + $0x18] sm:$0xff] }
  0xdb   :  { %8598 = vst [vmem:[#allocation105_spill] sm:$0xff] %v7511_v53  ;;  %8599 = vst [vmem:[#allocation106_spill] sm:$0xff] %v7514_v47  ;;  %v7517_v49 = vld [vmem:[%s7067_s12 + $0x20] sm:$0xff]  ;;  %v7520_v43 = vld [vmem:[%s7067_s12 + $0x28] sm:$0xff] }
  0xdc   :  { %8600 = vst [vmem:[#allocation107_spill] sm:$0xff] %v7517_v49  ;;  %8601 = vst [vmem:[#allocation108_spill] sm:$0xff] %v7520_v43  ;;  %v7523_v48 = vld [vmem:[%s7067_s12 + $0x30] sm:$0xff]  ;;  %v7526_v41 = vld [vmem:[%s7067_s12 + $0x38] sm:$0xff] }
  0xdd   :  { %8602 = vst [vmem:[#allocation109_spill] sm:$0xff] %v7523_v48  ;;  %8603 = vst [vmem:[#allocation110_spill] sm:$0xff] %v7526_v41  ;;  %v7529_v42 = vld [vmem:[%s7067_s12 + $0x40] sm:$0xff]  ;;  %v7532_v51 = vld [vmem:[%s7067_s12 + $0x48] sm:$0xff] }
  0xde   :  { %8604 = vst [vmem:[#allocation111_spill] sm:$0xff] %v7529_v42  ;;  %8605 = vst [vmem:[#allocation112_spill] sm:$0xff] %v7532_v51  ;;  %v7535_v46 = vld [vmem:[%s7067_s12 + $0x50] sm:$0xff]  ;;  %v7538_v50 = vld [vmem:[%s7067_s12 + $0x58] sm:$0xff] }
  0xdf   :  { %8606 = vst [vmem:[#allocation113_spill] sm:$0xff] %v7535_v46  ;;  %8607 = vst [vmem:[#allocation114_spill] sm:$0xff] %v7538_v50  ;;  %v7541_v45 = vld [vmem:[%s7067_s12 + $0x60] sm:$0xff]  ;;  %v7544_v53 = vld [vmem:[%s7067_s12 + $0x68] sm:$0xff] }
  0xe0   :  { %8608 = vst [vmem:[#allocation115_spill] sm:$0xff] %v7541_v45  ;;  %8609 = vst [vmem:[#allocation116_spill] sm:$0xff] %v7544_v53  ;;  %v7547_v47 = vld [vmem:[%s7067_s12 + $0x70] sm:$0xff]  ;;  %v7550_v49 = vld [vmem:[%s7067_s12 + $0x78] sm:$0xff] }
  0xe1   :  { %8610 = vst [vmem:[#allocation117_spill] sm:$0xff] %v7547_v47  ;;  %8611 = vst [vmem:[#allocation118_spill] sm:$0xff] %v7550_v49 }
  0xe2   :  { %1354 = vsyncadd [#allocation10 + $0x6], 2048  ;;  %v7553_v41 = vld [vmem:[%s7087_s30] sm:$0xff]  ;;  %v7556_v48 = vld [vmem:[%s7087_s30 + $0x8] sm:$0xff] }
  0xe3   :  { %8612 = vst [vmem:[#allocation119_spill] sm:$0xff] %v7553_v41  ;;  %8613 = vst [vmem:[#allocation120_spill] sm:$0xff] %v7556_v48  ;;  %v7559_v47 = vld [vmem:[%s7087_s30 + $0x10] sm:$0xff]  ;;  %v7562_v49 = vld [vmem:[%s7087_s30 + $0x18] sm:$0xff] }
  0xe4   :  { %8614 = vst [vmem:[#allocation121_spill] sm:$0xff] %v7559_v47  ;;  %8615 = vst [vmem:[#allocation122_spill] sm:$0xff] %v7562_v49  ;;  %v6044_v43 = vld [vmem:[%s6957_s5 + $0x580] sm:$0xff]  ;;  %v6045_v53 = vld [vmem:[%s6957_s5 + $0x588] sm:$0xff] }
  0xe5   :  { %v1580_v45 = vld [vmem:[%s6957_s5 + $0x80] sm:$0xff]  ;;  %v3298_v50 = vpack.c.bf16 %v6045_v53, %v6044_v43  ;;  %v1581_v46 = vld [vmem:[%s6957_s5 + $0x88] sm:$0xff]  ;;  %v6046_v51 = vld [vmem:[%s6957_s5 + $0x590] sm:$0xff] }
  0xe6   :  { %v6047_v40 = vld [vmem:[%s6957_s5 + $0x598] sm:$0xff]  ;;  %v1732_v42 = vpack.c.bf16 %v1581_v46, %v1580_v45  ;;  %v1582_v41 = vld [vmem:[%s6957_s5 + $0x90] sm:$0xff]  ;;  %v6048_v44 = vld [vmem:[%s6957_s5 + $0x5a0] sm:$0xff] }
  0xe7   :  { %v1583_v48 = vld [vmem:[%s6957_s5 + $0x98] sm:$0xff]  ;;  %3386 = vxpose.xlu1.c.b16.start [1/8] (narrow) %v3298_v50, 64  ;;  %v3299_v47 = vpack.c.bf16 %v6047_v40, %v6046_v51  ;;  %v6049_v52 = vld [vmem:[%s6957_s5 + $0x5a8] sm:$0xff]  ;;  %v1584_v31 = vld [vmem:[%s6957_s5 + $0xa0] sm:$0xff] }
  0xe8   :  { %1820 = vxpose.xlu0.c.b16.start [1/8] (narrow) %v1732_v42, 64  ;;  %v1733_v49 = vpack.c.bf16 %v1583_v48, %v1582_v41  ;;  %v1585_v53 = vld [vmem:[%s6957_s5 + $0xa8] sm:$0xff]  ;;  %v3300_v43 = vpack.c.bf16 %v6049_v52, %v6048_v44  ;;  %v6050_v46 = vld [vmem:[%s6957_s5 + $0x5b0] sm:$0xff]  ;;  %v6051_v61 = vld [vmem:[%s6957_s5 + $0x5b8] sm:$0xff] }
  0xe9   :  { %v1734_v45 = vpack.c.bf16 %v1585_v53, %v1584_v31  ;;  %v1586_v50 = vld [vmem:[%s6957_s5 + $0xb0] sm:$0xff]  ;;  %v1587_v40 = vld [vmem:[%s6957_s5 + $0xb8] sm:$0xff]  ;;  %v3301_v48 = vpack.c.bf16 %v6051_v61, %v6050_v46  ;;  %v6052_v42 = vld [vmem:[%s6957_s5 + $0x5c0] sm:$0xff] }
  0xea   :  { %v1735_v41 = vpack.c.bf16 %v1587_v40, %v1586_v50  ;;  %v6053_v51 = vld [vmem:[%s6957_s5 + $0x5c8] sm:$0xff]  ;;  %v6055_v53 = vld [vmem:[%s6957_s5 + $0x5d8] sm:$0xff]  ;;  %v6056_v50 = vld [vmem:[%s6957_s5 + $0x5e0] sm:$0xff] }
  0xeb   :  { %3387 = vxpose.xlu1.c.b16.cont [2/8] (narrow) %v3299_v47, 64  ;;  %v1588_v47 = vld [vmem:[%s6957_s5 + $0xc0] sm:$0xff]  ;;  %v1589_v44 = vld [vmem:[%s6957_s5 + $0xc8] sm:$0xff]  ;;  %v3302_v31 = vpack.c.bf16 %v6053_v51, %v6052_v42  ;;  %v1591_v61 = vld [vmem:[%s6957_s5 + $0xd8] sm:$0xff] }
  0xec   :  { %1821 = vxpose.xlu0.c.b16.cont [2/8] (narrow) %v1733_v49, 64  ;;  %v1736_v52 = vpack.c.bf16 %v1589_v44, %v1588_v47  ;;  %v6054_v49 = vld [vmem:[%s6957_s5 + $0x5d0] sm:$0xff]  ;;  %v6057_v40 = vld [vmem:[%s6957_s5 + $0x5e8] sm:$0xff]  ;;  %v1592_v39 = vld [vmem:[%s6957_s5 + $0xe0] sm:$0xff] }
  0xed   :  { %v1593_v23 = vld [vmem:[%s6957_s5 + $0xe8] sm:$0xff]  ;;  %v3304_v30 = vpack.c.bf16 %v6057_v40, %v6056_v50  ;;  %v6059_v42 = vld [vmem:[%s6957_s5 + $0x5f8] sm:$0xff] }
  0xef   :  { %3388 = vxpose.xlu1.c.b16.cont [3/8] (narrow) %v3300_v43, 64  ;;  %v1590_v43 = vld [vmem:[%s6957_s5 + $0xd0] sm:$0xff] }
  0xf0   :  { %1822 = vxpose.xlu0.c.b16.cont [3/8] (narrow) %v1734_v45, 64  ;;  %v3303_v45 = vpack.c.bf16 %v6055_v53, %v6054_v49  ;;  %v1737_v46 = vpack.c.bf16 %v1591_v61, %v1590_v43 }
  0xf3   :  { %3389 = vxpose.xlu1.c.b16.cont [4/8] (narrow) %v3301_v48, 64  ;;  %v6058_v48 = vld [vmem:[%s6957_s5 + $0x5f0] sm:$0xff] }
  0xf4   :  { %1823 = vxpose.xlu0.c.b16.cont [4/8] (narrow) %v1735_v41, 64  ;;  %v1738_v41 = vpack.c.bf16 %v1593_v23, %v1592_v39 }
  0xf7   :  { %3390 = vxpose.xlu1.c.b16.cont [5/8] (narrow) %v3302_v31, 64 }
  0xf8   :  { %1824 = vxpose.xlu0.c.b16.cont [5/8] (narrow) %v1736_v52, 64 }
  0xfb   :  { %3391 = vxpose.xlu1.c.b16.cont [6/8] (narrow) %v3303_v45, 64 }
  0xfc   :  { %1825 = vxpose.xlu0.c.b16.cont [6/8] (narrow) %v1737_v46, 64 }
  0xfd   :  { %1403 = vsyncadd [#allocation10 + $0x7], 512  ;;  %v1594_v51 = vld [vmem:[%s6957_s5 + $0xf0] sm:$0xff]  ;;  %v1595_v47 = vld [vmem:[%s6957_s5 + $0xf8] sm:$0xff]  ;;  %v3305_v52 = vpack.c.bf16 %v6059_v42, %v6058_v48 }
  0xfe   :  { %v6554_v44 = vld [vmem:[%s6962_s9 + $0x4] ss:$8 sps:$4 sm:$0xff]   ;;  %v6556_v31 = vld [vmem:[%s6962_s9] ss:$8 sps:$4 sm:$0xff]   ;;  %v6557_v23 = vld [vmem:[%s6962_s9 + $0x14] ss:$8 sps:$4 sm:$0xff]   ;;  %v1739_v39 = vpack.c.bf16 %v1595_v47, %v1594_v51 }
  0xff   :  { %3392 = vxpose.xlu1.c.b16.cont [7/8] (narrow) %v3304_v30, 64  ;;  %2764 = vmatprep.subr.bf16.mxu0 %v6554_v44  ;;  %v6028_v49 = vld [vmem:[%s6957_s5 + $0x500] sm:$0xff]  ;;  %v6029_v53 = vld [vmem:[%s6957_s5 + $0x508] sm:$0xff]  ;;  %v6559_v45 = vld [vmem:[%s6962_s9 + $0x10] ss:$8 sps:$4 sm:$0xff]  }
 0x100   :  { %1826 = vxpose.xlu0.c.b16.cont [7/8] (narrow) %v1738_v41, 64  ;;  %v1564_v43 = vld [vmem:[%s6957_s5] sm:$0xff]  ;;  %3530 = vmatprep.subr.bf16.mxu1 %v6554_v44  ;;  %v1565_v61 = vld [vmem:[%s6957_s5 + $0x8] sm:$0xff]  ;;  %v3290_v46 = vpack.c.bf16 %v6029_v53, %v6028_v49  ;;  %v6030_v50 = vld [vmem:[%s6957_s5 + $0x510] sm:$0xff] }
 0x101   :  { %2765 = vmatpush1.bf16.msra.mxu0 %v6556_v31  ;;  %3531 = vmatpush1.bf16.msra.mxu1 %v6556_v31  ;;  %v6560_v30 = vld [vmem:[%s6962_s9 + $0x24] ss:$8 sps:$4 sm:$0xff]   ;;  %v1724_v40 = vpack.c.bf16 %v1565_v61, %v1564_v43  ;;  %v6031_v48 = vld [vmem:[%s6957_s5 + $0x518] sm:$0xff]  ;;  %v1566_v42 = vld [vmem:[%s6957_s5 + $0x10] sm:$0xff] }
 0x102   :  { %2766 = vmatprep.subr.bf16.mxu0 %v6557_v23  ;;  %3532 = vmatprep.subr.bf16.mxu1 %v6557_v23  ;;  %v1567_v41 = vld [vmem:[%s6957_s5 + $0x18] sm:$0xff]  ;;  %v6562_v51 = vld [vmem:[%s6962_s9 + $0x20] ss:$8 sps:$4 sm:$0xff]   ;;  %v3291_v44 = vpack.c.bf16 %v6031_v48, %v6030_v50  ;;  %v6566_v43 = vld [vmem:[%s6962_s9 + $0x44] ss:$8 sps:$4 sm:$0xff]  }
 0x103   :  { %3393 = vxpose.xlu1.c.b16.end [8/8] (narrow) %v3305_v52, 64  ;;  %v6563_v47 = vld [vmem:[%s6962_s9 + $0x34] ss:$8 sps:$4 sm:$0xff]   ;;  %v1725_v31 = vpack.c.bf16 %v1567_v41, %v1566_v42  ;;  %v6032_v52 = vld [vmem:[%s6957_s5 + $0x520] sm:$0xff]  ;;  %v6033_v23 = vld [vmem:[%s6957_s5 + $0x528] sm:$0xff] }
 0x104   :  { %1827 = vxpose.xlu0.c.b16.end [8/8] (narrow) %v1739_v39, 64  ;;  %v1568_v39 = vld [vmem:[%s6957_s5 + $0x20] sm:$0xff]  ;;  %v1569_v49 = vld [vmem:[%s6957_s5 + $0x28] sm:$0xff]  ;;  %v6565_v53 = vld [vmem:[%s6962_s9 + $0x30] ss:$8 sps:$4 sm:$0xff]   ;;  %v3292_v61 = vpack.c.bf16 %v6033_v23, %v6032_v52 }
 0x105   :  { %2767 = vmatpush1.bf16.msra.mxu0 %v6559_v45  ;;  %3533 = vmatpush1.bf16.msra.mxu1 %v6559_v45  ;;  %v6034_v45 = vld [vmem:[%s6957_s5 + $0x530] sm:$0xff]  ;;  %v6568_v48 = vld [vmem:[%s6962_s9 + $0x40] ss:$8 sps:$4 sm:$0xff]   ;;  %v6115_v38 = vld [vmem:[%s6957_s5 + $0x7b8] sm:$0xff] }
 0x106   :  { %2768 = vmatprep.subr.bf16.mxu0 %v6560_v30  ;;  %3534 = vmatprep.subr.bf16.mxu1 %v6560_v30  ;;  %v1726_v30 = vpack.c.bf16 %v1569_v49, %v1568_v39  ;;  %v1570_v50 = vld [vmem:[%s6957_s5 + $0x30] sm:$0xff]  ;;  %v1573_v52 = vld [vmem:[%s6957_s5 + $0x48] sm:$0xff]  ;;  %v1651_v22 = vld [vmem:[%s6957_s5 + $0x2b8] sm:$0xff] }
 0x107   :  { %3370 = vxpose.xlu1.c.b16.start [1/8] (narrow) %v3290_v46, 64  ;;  %v6035_v46 = vld [vmem:[%s6957_s5 + $0x538] sm:$0xff]  ;;  %v6572_v39 = vld [vmem:[%s6962_s9 + $0x64] ss:$8 sps:$4 sm:$0xff]   ;;  %v6114_v60 = vld [vmem:[%s6957_s5 + $0x7b0] sm:$0xff] }
 0x108   :  { %1804 = vxpose.xlu0.c.b16.start [1/8] (narrow) %v1724_v40, 64  ;;  %v1571_v40 = vld [vmem:[%s6957_s5 + $0x38] sm:$0xff]  ;;  %v3293_v41 = vpack.c.bf16 %v6035_v46, %v6034_v45  ;;  %v1574_v45 = vld [vmem:[%s6957_s5 + $0x50] sm:$0xff]  ;;  %v6574_v46 = vld [vmem:[%s6962_s9 + $0x60] ss:$8 sps:$4 sm:$0xff]  }
 0x109   :  { %2769 = vmatpush1.bf16.msra.mxu0 %v6562_v51  ;;  %3535 = vmatpush1.bf16.msra.mxu1 %v6562_v51  ;;  %v6569_v42 = vld [vmem:[%s6962_s9 + $0x54] ss:$8 sps:$4 sm:$0xff]   ;;  %v1727_v51 = vpack.c.bf16 %v1571_v40, %v1570_v50  ;;  %v6571_v23 = vld [vmem:[%s6962_s9 + $0x50] ss:$8 sps:$4 sm:$0xff]   ;;  %v6650_v29 = vld [vmem:[%s6962_s9 + $0x200] ss:$8 sps:$4 sm:$0xff]  }
 0x10a   :  { %2770 = vmatprep.subr.bf16.mxu0 %v6563_v47  ;;  %3536 = vmatprep.subr.bf16.mxu1 %v6563_v47  ;;  %v6036_v47 = vld [vmem:[%s6957_s5 + $0x540] sm:$0xff]  ;;  %v6575_v50 = vld [vmem:[%s6962_s9 + $0x74] ss:$8 sps:$4 sm:$0xff]  }
 0x10b   :  { %3371 = vxpose.xlu1.c.b16.cont [2/8] (narrow) %v3291_v44, 64  ;;  %v6037_v44 = vld [vmem:[%s6957_s5 + $0x548] sm:$0xff]  ;;  %v1683_v59 = vld [vmem:[%s6957_s5 + $0x3b8] sm:$0xff] }
 0x10c   :  { %1805 = vxpose.xlu0.c.b16.cont [2/8] (narrow) %v1725_v31, 64  ;;  %v1572_v31 = vld [vmem:[%s6957_s5 + $0x40] sm:$0xff]  ;;  %v3294_v49 = vpack.c.bf16 %v6037_v44, %v6036_v47  ;;  %v1577_v47 = vld [vmem:[%s6957_s5 + $0x68] sm:$0xff]  ;;  %v6577_v44 = vld [vmem:[%s6962_s9 + $0x70] ss:$8 sps:$4 sm:$0xff]  }
 0x10d   :  { %2771 = vmatpush1.bf16.msra.mxu0 %v6565_v53  ;;  %3537 = vmatpush1.bf16.msra.mxu1 %v6565_v53  ;;  %v6038_v53 = vld [vmem:[%s6957_s5 + $0x550] sm:$0xff] }
 0x10e   :  { %2772 = vmatprep.subr.bf16.mxu0 %v6566_v43  ;;  %3538 = vmatprep.subr.bf16.mxu1 %v6566_v43  ;;  %v1728_v43 = vpack.c.bf16 %v1573_v52, %v1572_v31  ;;  %v6578_v31 = vld [vmem:[%s6962_s9 + $0x84] ss:$8 sps:$4 sm:$0xff]  }
 0x10f   :  { %3372 = vxpose.xlu1.c.b16.cont [3/8] (narrow) %v3292_v61, 64  ;;  %v6039_v61 = vld [vmem:[%s6957_s5 + $0x558] sm:$0xff] }
 0x110   :  { %1806 = vxpose.xlu0.c.b16.cont [3/8] (narrow) %v1726_v30, 64  ;;  %v1575_v30 = vld [vmem:[%s6957_s5 + $0x58] sm:$0xff]  ;;  %v3295_v40 = vpack.c.bf16 %v6039_v61, %v6038_v53  ;;  %v1578_v53 = vld [vmem:[%s6957_s5 + $0x70] sm:$0xff]  ;;  %v6580_v61 = vld [vmem:[%s6962_s9 + $0x80] ss:$8 sps:$4 sm:$0xff]  }
 0x111   :  { %2773 = vmatpush1.bf16.msra.mxu0 %v6568_v48  ;;  %3539 = vmatpush1.bf16.msra.mxu1 %v6568_v48  ;;  %v1729_v48 = vpack.c.bf16 %v1575_v30, %v1574_v45  ;;  %v6581_v45 = vld [vmem:[%s6962_s9 + $0x94] ss:$8 sps:$4 sm:$0xff]  }
 0x112   :  { %2774 = vmatprep.subr.bf16.mxu0 %v6569_v42  ;;  %3540 = vmatprep.subr.bf16.mxu1 %v6569_v42  ;;  %v6040_v42 = vld [vmem:[%s6957_s5 + $0x560] sm:$0xff] }
 0x113   :  { %3373 = vxpose.xlu1.c.b16.cont [4/8] (narrow) %v3293_v41, 64  ;;  %v6041_v41 = vld [vmem:[%s6957_s5 + $0x568] sm:$0xff] }
 0x114   :  { %1807 = vxpose.xlu0.c.b16.cont [4/8] (narrow) %v1727_v51, 64  ;;  %v1576_v51 = vld [vmem:[%s6957_s5 + $0x60] sm:$0xff]  ;;  %v3296_v52 = vpack.c.bf16 %v6041_v41, %v6040_v42  ;;  %v1613_v42 = vld [vmem:[%s6957_s5 + $0x188] sm:$0xff]  ;;  %v6583_v41 = vld [vmem:[%s6962_s9 + $0x90] ss:$8 sps:$4 sm:$0xff]  }
 0x115   :  { %2775 = vmatpush1.bf16.msra.mxu0 %v6571_v23  ;;  %3541 = vmatpush1.bf16.msra.mxu1 %v6571_v23  ;;  %v6042_v23 = vld [vmem:[%s6957_s5 + $0x570] sm:$0xff] }
 0x116   :  { %2776 = vmatprep.subr.bf16.mxu0 %v6572_v39  ;;  %3542 = vmatprep.subr.bf16.mxu1 %v6572_v39  ;;  %v1730_v39 = vpack.c.bf16 %v1577_v47, %v1576_v51  ;;  %v6584_v51 = vld [vmem:[%s6962_s9 + $0xa4] ss:$8 sps:$4 sm:$0xff]  }
 0x117   :  { %3374 = vxpose.xlu1.c.b16.cont [5/8] (narrow) %v3294_v49, 64  ;;  %v6043_v49 = vld [vmem:[%s6957_s5 + $0x578] sm:$0xff] }
 0x118   :  { %1808 = vxpose.xlu0.c.b16.cont [5/8] (narrow) %v1728_v43, 64  ;;  %v1579_v43 = vld [vmem:[%s6957_s5 + $0x78] sm:$0xff]  ;;  %v3297_v30 = vpack.c.bf16 %v6043_v49, %v6042_v23  ;;  %v1614_v23 = vld [vmem:[%s6957_s5 + $0x190] sm:$0xff]  ;;  %v6586_v49 = vld [vmem:[%s6962_s9 + $0xa0] ss:$8 sps:$4 sm:$0xff]  }
 0x119   :  { %2777 = vmatpush1.bf16.msra.mxu0 %v6574_v46  ;;  %3543 = vmatpush1.bf16.msra.mxu1 %v6574_v46  ;;  %v1731_v46 = vpack.c.bf16 %v1579_v43, %v1578_v53  ;;  %v6587_v53 = vld [vmem:[%s6962_s9 + $0xb4] ss:$8 sps:$4 sm:$0xff]  }
 0x11a   :  { %2778 = vmatprep.subr.bf16.mxu0 %v6575_v50  ;;  %3544 = vmatprep.subr.bf16.mxu1 %v6575_v50  ;;  %v6076_v50 = vld [vmem:[%s6957_s5 + $0x680] sm:$0xff] }
 0x11b   :  { %3375 = vxpose.xlu1.c.b16.cont [6/8] (narrow) %v3295_v40, 64  ;;  %v6077_v40 = vld [vmem:[%s6957_s5 + $0x688] sm:$0xff] }
 0x11c   :  { %1809 = vxpose.xlu0.c.b16.cont [6/8] (narrow) %v1729_v48, 64  ;;  %v1612_v48 = vld [vmem:[%s6957_s5 + $0x180] sm:$0xff]  ;;  %v3314_v47 = vpack.c.bf16 %v6077_v40, %v6076_v50  ;;  %v1617_v50 = vld [vmem:[%s6957_s5 + $0x1a8] sm:$0xff]  ;;  %v6589_v40 = vld [vmem:[%s6962_s9 + $0xb0] ss:$8 sps:$4 sm:$0xff]  }
 0x11d   :  { %2779 = vmatpush1.bf16.msra.mxu0 %v6577_v44  ;;  %3545 = vmatpush1.bf16.msra.mxu1 %v6577_v44  ;;  %v6078_v44 = vld [vmem:[%s6957_s5 + $0x690] sm:$0xff] }
 0x11e   :  { %2780 = vmatprep.subr.bf16.mxu0 %v6578_v31  ;;  %3546 = vmatprep.subr.bf16.mxu1 %v6578_v31  ;;  %v1748_v31 = vpack.c.bf16 %v1613_v42, %v1612_v48  ;;  %v6590_v48 = vld [vmem:[%s6962_s9 + $0xc4] ss:$8 sps:$4 sm:$0xff]  }
 0x11f   :  { %3376 = vxpose.xlu1.c.b16.cont [7/8] (narrow) %v3296_v52, 64  ;;  %v6079_v52 = vld [vmem:[%s6957_s5 + $0x698] sm:$0xff] }
 0x120   :  { %1810 = vxpose.xlu0.c.b16.cont [7/8] (narrow) %v1730_v39, 64  ;;  %v1615_v39 = vld [vmem:[%s6957_s5 + $0x198] sm:$0xff]  ;;  %v3315_v43 = vpack.c.bf16 %v6079_v52, %v6078_v44  ;;  %v1618_v44 = vld [vmem:[%s6957_s5 + $0x1b0] sm:$0xff]  ;;  %v6592_v52 = vld [vmem:[%s6962_s9 + $0xc0] ss:$8 sps:$4 sm:$0xff]  }
 0x121   :  { %2781 = vmatpush1.bf16.msra.mxu0 %v6580_v61  ;;  %3547 = vmatpush1.bf16.msra.mxu1 %v6580_v61  ;;  %v1749_v61 = vpack.c.bf16 %v1615_v39, %v1614_v23  ;;  %v6593_v23 = vld [vmem:[%s6962_s9 + $0xd4] ss:$8 sps:$4 sm:$0xff]  }
 0x122   :  { %2782 = vmatprep.subr.bf16.mxu0 %v6581_v45  ;;  %3548 = vmatprep.subr.bf16.mxu1 %v6581_v45  ;;  %v6080_v45 = vld [vmem:[%s6957_s5 + $0x6a0] sm:$0xff] }
 0x123   :  { %3377 = vxpose.xlu1.c.b16.end [8/8] (narrow) %v3297_v30, 64  ;;  %v6081_v30 = vld [vmem:[%s6957_s5 + $0x6a8] sm:$0xff] }
 0x124   :  { %1811 = vxpose.xlu0.c.b16.end [8/8] (narrow) %v1731_v46, 64  ;;  %v1616_v46 = vld [vmem:[%s6957_s5 + $0x1a0] sm:$0xff]  ;;  %v3316_v42 = vpack.c.bf16 %v6081_v30, %v6080_v45  ;;  %v1621_v45 = vld [vmem:[%s6957_s5 + $0x1c8] sm:$0xff]  ;;  %v6595_v30 = vld [vmem:[%s6962_s9 + $0xd0] ss:$8 sps:$4 sm:$0xff]  }
 0x125   :  { %2783 = vmatpush1.bf16.msra.mxu0 %v6583_v41  ;;  %3549 = vmatpush1.bf16.msra.mxu1 %v6583_v41  ;;  %v6082_v41 = vld [vmem:[%s6957_s5 + $0x6b0] sm:$0xff] }
 0x126   :  { %2784 = vmatprep.subr.bf16.mxu0 %v6584_v51  ;;  %3550 = vmatprep.subr.bf16.mxu1 %v6584_v51  ;;  %v1750_v51 = vpack.c.bf16 %v1617_v50, %v1616_v46  ;;  %v6596_v46 = vld [vmem:[%s6962_s9 + $0xe4] ss:$8 sps:$4 sm:$0xff]  }
 0x127   :  { %3418 = vxpose.xlu1.c.b16.start [1/8] (narrow) %v3314_v47, 64  ;;  %v6083_v47 = vld [vmem:[%s6957_s5 + $0x6b8] sm:$0xff] }
 0x128   :  { %1852 = vxpose.xlu0.c.b16.start [1/8] (narrow) %v1748_v31, 64  ;;  %v1619_v31 = vld [vmem:[%s6957_s5 + $0x1b8] sm:$0xff]  ;;  %v3317_v39 = vpack.c.bf16 %v6083_v47, %v6082_v41  ;;  %v1622_v41 = vld [vmem:[%s6957_s5 + $0x1d0] sm:$0xff]  ;;  %v6598_v47 = vld [vmem:[%s6962_s9 + $0xe0] ss:$8 sps:$4 sm:$0xff]  }
 0x129   :  { %2785 = vmatpush1.bf16.msra.mxu0 %v6586_v49  ;;  %3551 = vmatpush1.bf16.msra.mxu1 %v6586_v49  ;;  %v1751_v49 = vpack.c.bf16 %v1619_v31, %v1618_v44  ;;  %v6599_v44 = vld [vmem:[%s6962_s9 + $0xf4] ss:$8 sps:$4 sm:$0xff]  }
 0x12a   :  { %2786 = vmatprep.subr.bf16.mxu0 %v6587_v53  ;;  %3552 = vmatprep.subr.bf16.mxu1 %v6587_v53  ;;  %v6084_v53 = vld [vmem:[%s6957_s5 + $0x6c0] sm:$0xff] }
 0x12b   :  { %3419 = vxpose.xlu1.c.b16.cont [2/8] (narrow) %v3315_v43, 64  ;;  %v6085_v43 = vld [vmem:[%s6957_s5 + $0x6c8] sm:$0xff] }
 0x12c   :  { %1853 = vxpose.xlu0.c.b16.cont [2/8] (narrow) %v1749_v61, 64  ;;  %v1620_v61 = vld [vmem:[%s6957_s5 + $0x1c0] sm:$0xff]  ;;  %v3318_v50 = vpack.c.bf16 %v6085_v43, %v6084_v53  ;;  %v1625_v53 = vld [vmem:[%s6957_s5 + $0x1e8] sm:$0xff]  ;;  %v6601_v43 = vld [vmem:[%s6962_s9 + $0xf0] ss:$8 sps:$4 sm:$0xff]  }
 0x12d   :  { %2787 = vmatpush1.bf16.msra.mxu0 %v6589_v40  ;;  %3553 = vmatpush1.bf16.msra.mxu1 %v6589_v40  ;;  %v6086_v40 = vld [vmem:[%s6957_s5 + $0x6d0] sm:$0xff] }
 0x12e   :  { %2788 = vmatprep.subr.bf16.mxu0 %v6590_v48  ;;  %3554 = vmatprep.subr.bf16.mxu1 %v6590_v48  ;;  %v1752_v48 = vpack.c.bf16 %v1621_v45, %v1620_v61  ;;  %v6604_v61 = vld [vmem:[%s6962_s9 + $0x104] ss:$8 sps:$4 sm:$0xff]  }
 0x12f   :  { %3420 = vxpose.xlu1.c.b16.cont [3/8] (narrow) %v3316_v42, 64  ;;  %v6087_v42 = vld [vmem:[%s6957_s5 + $0x6d8] sm:$0xff] }
 0x130   :  { %1854 = vxpose.xlu0.c.b16.cont [3/8] (narrow) %v1750_v51, 64  ;;  %v1623_v51 = vld [vmem:[%s6957_s5 + $0x1d8] sm:$0xff]  ;;  %v3319_v31 = vpack.c.bf16 %v6087_v42, %v6086_v40  ;;  %v1626_v40 = vld [vmem:[%s6957_s5 + $0x1f0] sm:$0xff] }
 0x131   :  { %2789 = vmatpush1.bf16.msra.mxu0 %v6592_v52  ;;  %3555 = vmatpush1.bf16.msra.mxu1 %v6592_v52  ;;  %v1753_v52 = vpack.c.bf16 %v1623_v51, %v1622_v41  ;;  %v6060_v51 = vld [vmem:[%s6957_s5 + $0x600] sm:$0xff] }
 0x132   :  { %2790 = vmatprep.subr.bf16.mxu0 %v6593_v23  ;;  %3556 = vmatprep.subr.bf16.mxu1 %v6593_v23  ;;  %v6088_v23 = vld [vmem:[%s6957_s5 + $0x6e0] sm:$0xff] }
 0x133   :  { %3421 = vxpose.xlu1.c.b16.cont [4/8] (narrow) %v3317_v39, 64  ;;  %v6089_v39 = vld [vmem:[%s6957_s5 + $0x6e8] sm:$0xff] }
 0x134   :  { %1855 = vxpose.xlu0.c.b16.cont [4/8] (narrow) %v1751_v49, 64  ;;  %v1624_v49 = vld [vmem:[%s6957_s5 + $0x1e0] sm:$0xff]  ;;  %v3320_v45 = vpack.c.bf16 %v6089_v39, %v6088_v23  ;;  %v6062_v23 = vld [vmem:[%s6957_s5 + $0x610] sm:$0xff] }
 0x135   :  { %2791 = vmatpush1.bf16.msra.mxu0 %v6595_v30  ;;  %3557 = vmatpush1.bf16.msra.mxu1 %v6595_v30  ;;  %v6090_v30 = vld [vmem:[%s6957_s5 + $0x6f0] sm:$0xff] }
 0x136   :  { %2792 = vmatprep.subr.bf16.mxu0 %v6596_v46  ;;  %3558 = vmatprep.subr.bf16.mxu1 %v6596_v46  ;;  %v1754_v46 = vpack.c.bf16 %v1625_v53, %v1624_v49  ;;  %v6063_v49 = vld [vmem:[%s6957_s5 + $0x618] sm:$0xff]  ;;  %v1598_v53 = vld [vmem:[%s6957_s5 + $0x110] sm:$0xff] }
 0x137   :  { %3422 = vxpose.xlu1.c.b16.cont [5/8] (narrow) %v3318_v50, 64  ;;  %v6091_v50 = vld [vmem:[%s6957_s5 + $0x6f8] sm:$0xff] }
 0x138   :  { %1856 = vxpose.xlu0.c.b16.cont [5/8] (narrow) %v1752_v48, 64  ;;  %v1627_v48 = vld [vmem:[%s6957_s5 + $0x1f8] sm:$0xff]  ;;  %v3321_v42 = vpack.c.bf16 %v6091_v50, %v6090_v30  ;;  %v6064_v30 = vld [vmem:[%s6957_s5 + $0x620] sm:$0xff] }
 0x139   :  { %2793 = vmatpush1.bf16.msra.mxu0 %v6598_v47  ;;  %3559 = vmatpush1.bf16.msra.mxu1 %v6598_v47  ;;  %v1755_v41 = vpack.c.bf16 %v1627_v48, %v1626_v40  ;;  %v6061_v47 = vld [vmem:[%s6957_s5 + $0x608] sm:$0xff]  ;;  %v1600_v50 = vld [vmem:[%s6957_s5 + $0x120] sm:$0xff] }
 0x13a   :  { %2794 = vmatprep.subr.bf16.mxu0 %v6599_v44  ;;  %3560 = vmatprep.subr.bf16.mxu1 %v6599_v44  ;;  %v1596_v44 = vld [vmem:[%s6957_s5 + $0x100] sm:$0xff]  ;;  %v1601_v40 = vld [vmem:[%s6957_s5 + $0x128] sm:$0xff] }
 0x13b   :  { %3423 = vxpose.xlu1.c.b16.cont [6/8] (narrow) %v3319_v31, 64  ;;  %v1597_v31 = vld [vmem:[%s6957_s5 + $0x108] sm:$0xff] }
 0x13c   :  { %1857 = vxpose.xlu0.c.b16.cont [6/8] (narrow) %v1753_v52, 64  ;;  %v3306_v52 = vpack.c.bf16 %v6061_v47, %v6060_v51  ;;  %v1740_v39 = vpack.c.bf16 %v1597_v31, %v1596_v44  ;;  %v6067_v51 = vld [vmem:[%s6957_s5 + $0x638] sm:$0xff]  ;;  %v1602_v47 = vld [vmem:[%s6957_s5 + $0x130] sm:$0xff] }
 0x13d   :  { %2795 = vmatpush1.bf16.msra.mxu0 %v6601_v43  ;;  %3561 = vmatpush1.bf16.msra.mxu1 %v6601_v43  ;;  %v1599_v43 = vld [vmem:[%s6957_s5 + $0x118] sm:$0xff] }
 0x13e   :  { %2837 = vmatprep.subr.bf16.mxu0 %v6604_v61  ;;  %3603 = vmatprep.subr.bf16.mxu1 %v6604_v61  ;;  %v3307_v61 = vpack.c.bf16 %v6063_v49, %v6062_v23  ;;  %v1603_v44 = vld [vmem:[%s6957_s5 + $0x138] sm:$0xff]  ;;  %v6068_v49 = vld [vmem:[%s6957_s5 + $0x640] sm:$0xff] }
 0x13f   :  { %3424 = vxpose.xlu1.c.b16.cont [7/8] (narrow) %v3320_v45, 64  ;;  %v1741_v45 = vpack.c.bf16 %v1599_v43, %v1598_v53  ;;  %v6069_v53 = vld [vmem:[%s6957_s5 + $0x648] sm:$0xff]  ;;  %v1604_v43 = vld [vmem:[%s6957_s5 + $0x140] sm:$0xff] }
 0x140   :  { %1858 = vxpose.xlu0.c.b16.cont [7/8] (narrow) %v1754_v46, 64  ;;  %v6065_v46 = vld [vmem:[%s6957_s5 + $0x628] sm:$0xff] }
 0x141   :  { %v3308_v48 = vpack.c.bf16 %v6065_v46, %v6064_v30  ;;  %v6070_v30 = vld [vmem:[%s6957_s5 + $0x650] sm:$0xff] }
 0x143   :  { %3425 = vxpose.xlu1.c.b16.end [8/8] (narrow) %v3321_v42, 64  ;;  %v6066_v42 = vld [vmem:[%s6957_s5 + $0x630] sm:$0xff] }
 0x144   :  { %1859 = vxpose.xlu0.c.b16.end [8/8] (narrow) %v1755_v41, 64  ;;  %v1742_v41 = vpack.c.bf16 %v1601_v40, %v1600_v50  ;;  %v3309_v23 = vpack.c.bf16 %v6067_v51, %v6066_v42  ;;  %v6071_v50 = vld [vmem:[%s6957_s5 + $0x658] sm:$0xff]  ;;  %v1606_v40 = vld [vmem:[%s6957_s5 + $0x150] sm:$0xff]  ;;  %v6072_v51 = vld [vmem:[%s6957_s5 + $0x660] sm:$0xff] }
 0x145   :  { %v3311_v42 = vpack.c.bf16 %v6071_v50, %v6070_v30  ;;  %v6108_v50 = vld [vmem:[%s6957_s5 + $0x780] sm:$0xff] }
 0x147   :  { %3402 = vxpose.xlu1.c.b16.start [1/8] (narrow) %v3306_v52, 64 }
 0x148   :  { %1836 = vxpose.xlu0.c.b16.start [1/8] (narrow) %v1740_v39, 64  ;;  %v1743_v39 = vpack.c.bf16 %v1603_v44, %v1602_v47  ;;  %v6073_v47 = vld [vmem:[%s6957_s5 + $0x668] sm:$0xff]  ;;  %v1608_v44 = vld [vmem:[%s6957_s5 + $0x160] sm:$0xff] }
 0x14b   :  { %3403 = vxpose.xlu1.c.b16.cont [2/8] (narrow) %v3307_v61, 64  ;;  %v1605_v61 = vld [vmem:[%s6957_s5 + $0x148] sm:$0xff] }
 0x14c   :  { %1837 = vxpose.xlu0.c.b16.cont [2/8] (narrow) %v1741_v45, 64  ;;  %v3310_v45 = vpack.c.bf16 %v6069_v53, %v6068_v49  ;;  %v1744_v46 = vpack.c.bf16 %v1605_v61, %v1604_v43  ;;  %v6075_v43 = vld [vmem:[%s6957_s5 + $0x678] sm:$0xff]  ;;  %v1610_v61 = vld [vmem:[%s6957_s5 + $0x170] sm:$0xff] }
 0x14d   :  { %v3394_v31 = vpop.trf.xlu1 }
 0x14e   :  { %v1828_v52 = vpop.trf.xlu0  ;;  %3562 = vmatprep.mubr.bf16.mxu1 %v3394_v31  ;;  %v1609_v31 = vld [vmem:[%s6957_s5 + $0x168] sm:$0xff] }
 0x14f   :  { %3404 = vxpose.xlu1.c.b16.cont [3/8] (narrow) %v3308_v48, 64  ;;  %2796 = vmatprep.mubr.bf16.mxu0 %v1828_v52  ;;  %v1607_v48 = vld [vmem:[%s6957_s5 + $0x158] sm:$0xff]  ;;  %v3312_v52 = vpack.c.bf16 %v6073_v47, %v6072_v51  ;;  %v1746_v49 = vpack.c.bf16 %v1609_v31, %v1608_v44  ;;  %v1645_v51 = vld [vmem:[%s6957_s5 + $0x288] sm:$0xff]  ;;  %v6110_v44 = vld [vmem:[%s6957_s5 + $0x790] sm:$0xff] }
 0x150   :  { %1838 = vxpose.xlu0.c.b16.cont [3/8] (narrow) %v1742_v41, 64  ;;  %v1745_v41 = vpack.c.bf16 %v1607_v48, %v1606_v40  ;;  %v6109_v40 = vld [vmem:[%s6957_s5 + $0x788] sm:$0xff] }
 0x151   :  { %v3330_v47 = vpack.c.bf16 %v6109_v40, %v6108_v50  ;;  %v6112_v50 = vld [vmem:[%s6957_s5 + $0x7a0] sm:$0xff] }
 0x152   :  { %v1829_v53 = vpop.trf.xlu0  ;;  %v1648_v40 = vld [vmem:[%s6957_s5 + $0x2a0] sm:$0xff] }
 0x153   :  { %3405 = vxpose.xlu1.c.b16.cont [4/8] (narrow) %v3309_v23, 64  ;;  %v3395_v23 = vpop.trf.xlu1 }
 0x154   :  { %1839 = vxpose.xlu0.c.b16.cont [4/8] (narrow) %v1743_v39, 64  ;;  %v6074_v39 = vld [vmem:[%s6957_s5 + $0x670] sm:$0xff] }
 0x155   :  { %v3313_v30 = vpack.c.bf16 %v6075_v43, %v6074_v39  ;;  %v1646_v39 = vld [vmem:[%s6957_s5 + $0x290] sm:$0xff] }
 0x157   :  { %3406 = vxpose.xlu1.c.b16.cont [5/8] (narrow) %v3310_v45, 64  ;;  %v1611_v45 = vld [vmem:[%s6957_s5 + $0x178] sm:$0xff]  ;;  %v7727_v48 = vpop.trf.xlu1 }
 0x158   :  { %1840 = vxpose.xlu0.c.b16.cont [5/8] (narrow) %v1744_v46, 64  ;;  %v1747_v46 = vpack.c.bf16 %v1611_v45, %v1610_v61 }
 0x15b   :  { %3407 = vxpose.xlu1.c.b16.cont [6/8] (narrow) %v3311_v42, 64  ;;  %v1644_v42 = vld [vmem:[%s6957_s5 + $0x280] sm:$0xff]  ;;  %v7737_v43 = vpop.trf.xlu1 }
 0x15c   :  { %1841 = vxpose.xlu0.c.b16.cont [6/8] (narrow) %v1745_v41, 64  ;;  %v7731_v41 = vpop.trf.xlu0  ;;  %v1764_v31 = vpack.c.bf16 %v1645_v51, %v1644_v42  ;;  %v1649_v42 = vld [vmem:[%s6957_s5 + $0x2a8] sm:$0xff] }
 0x15f   :  { %3408 = vxpose.xlu1.c.b16.cont [7/8] (narrow) %v3312_v52, 64  ;;  %v6111_v52 = vld [vmem:[%s6957_s5 + $0x798] sm:$0xff] }
 0x160   :  { %1842 = vxpose.xlu0.c.b16.cont [7/8] (narrow) %v1746_v49, 64  ;;  %v1647_v49 = vld [vmem:[%s6957_s5 + $0x298] sm:$0xff]  ;;  %v3331_v61 = vpack.c.bf16 %v6111_v52, %v6110_v44  ;;  %v7739_v45 = vpop.trf.xlu0  ;;  %v6602_v52 = vld [vmem:[%s6962_s9 + $0x100] ss:$8 sps:$4 sm:$0xff]  }
 0x163   :  { %3409 = vxpose.xlu1.c.b16.end [8/8] (narrow) %v3313_v30, 64  ;;  %v1765_v30 = vpack.c.bf16 %v1647_v49, %v1646_v39  ;;  %v6607_v49 = vld [vmem:[%s6962_s9 + $0x114] ss:$8 sps:$4 sm:$0xff]  }
 0x164   :  { %1843 = vxpose.xlu0.c.b16.end [8/8] (narrow) %v1747_v46, 64  ;;  %v6113_v46 = vld [vmem:[%s6957_s5 + $0x7a8] sm:$0xff] }
 0x165   :  { %v3332_v51 = vpack.c.bf16 %v6113_v46, %v6112_v50  ;;  %v6610_v46 = vld [vmem:[%s6962_s9 + $0x124] ss:$8 sps:$4 sm:$0xff]  }
 0x167   :  { %3450 = vxpose.xlu1.c.b16.start [1/8] (narrow) %v3330_v47, 64  ;;  %v1766_v47 = vpack.c.bf16 %v1649_v42, %v1648_v40  ;;  %v6116_v40 = vld [vmem:[%s6957_s5 + $0x7c0] sm:$0xff]  ;;  %v6117_v42 = vld [vmem:[%s6957_s5 + $0x7c8] sm:$0xff] }
 0x168   :  { %1884 = vxpose.xlu0.c.b16.start [1/8] (narrow) %v1764_v31, 64  ;;  %v1650_v31 = vld [vmem:[%s6957_s5 + $0x2b0] sm:$0xff] }
 0x169   :  { %v1767_v50 = vpack.c.bf16 %v1651_v22, %v1650_v31  ;;  %v1655_v31 = vld [vmem:[%s6957_s5 + $0x2d8] sm:$0xff] }
 0x16b   :  { %3451 = vxpose.xlu1.c.b16.cont [2/8] (narrow) %v3331_v61, 64  ;;  %v3333_v61 = vpack.c.bf16 %v6115_v38, %v6114_v60  ;;  %v3334_v38 = vpack.c.bf16 %v6117_v42, %v6116_v40  ;;  %v6120_v40 = vld [vmem:[%s6957_s5 + $0x7e0] sm:$0xff]  ;;  %v6121_v42 = vld [vmem:[%s6957_s5 + $0x7e8] sm:$0xff] }
 0x16c   :  { %1885 = vxpose.xlu0.c.b16.cont [2/8] (narrow) %v1765_v30, 64  ;;  %v6605_v30 = vld [vmem:[%s6962_s9 + $0x110] ss:$8 sps:$4 sm:$0xff]  }
 0x16d   :  { %v3378_v44 = vpop.trf.xlu1 }
 0x16e   :  { %v1812_v39 = vpop.trf.xlu0  ;;  %3563 = vmatmul.mubr.bf16.vlgmr.msra.gmra.mrb[0].mxu1 %v3378_v44  ;;  %v1652_v44 = vld [vmem:[%s6957_s5 + $0x2c0] sm:$0xff] }
 0x16f   :  { %2797 = vmatmul.mubr.bf16.vlgmr.msra.gmra.mrb[0].mxu0 %v1812_v39  ;;  %3452 = vxpose.xlu1.c.b16.cont [3/8] (narrow) %v3332_v51, 64  ;;  %v1653_v39 = vld [vmem:[%s6957_s5 + $0x2c8] sm:$0xff]  ;;  %v6119_v51 = vld [vmem:[%s6957_s5 + $0x7d8] sm:$0xff] }
 0x170   :  { %1886 = vxpose.xlu0.c.b16.cont [3/8] (narrow) %v1766_v47, 64  ;;  %2806 = vmatprep.mubr.bf16.mxu0 %v1829_v53  ;;  %v1768_v53 = vpack.c.bf16 %v1653_v39, %v1652_v44  ;;  %v6608_v47 = vld [vmem:[%s6962_s9 + $0x120] ss:$8 sps:$4 sm:$0xff]  }
 0x171   :  { %2838 = vmatpush1.bf16.msra.mxu0 %v6602_v52  ;;  %3572 = vmatprep.mubr.bf16.mxu1 %v3395_v23  ;;  %v3379_v60 = vpop.trf.xlu1  ;;  %v6118_v23 = vld [vmem:[%s6957_s5 + $0x7d0] sm:$0xff]  ;;  %v1657_v44 = vld [vmem:[%s6957_s5 + $0x2e8] sm:$0xff] }
 0x172   :  { %3604 = vmatpush1.bf16.msra.mxu1 %v6602_v52  ;;  %2839 = vmatprep.subr.bf16.mxu0 %v6607_v49  ;;  %v1813_v22 = vpop.trf.xlu0  ;;  %v1654_v52 = vld [vmem:[%s6957_s5 + $0x2d0] sm:$0xff] }
 0x173   :  { %3605 = vmatprep.subr.bf16.mxu1 %v6607_v49  ;;  %3453 = vxpose.xlu1.c.b16.cont [4/8] (narrow) %v3333_v61, 64  ;;  %v6613_v49 = vld [vmem:[%s6962_s9 + $0x134] ss:$8 sps:$4 sm:$0xff]   ;;  %v3335_v61 = vpack.c.bf16 %v6119_v51, %v6118_v23 }
 0x174   :  { %1887 = vxpose.xlu0.c.b16.cont [4/8] (narrow) %v1767_v50, 64  ;;  %v6611_v50 = vld [vmem:[%s6962_s9 + $0x130] ss:$8 sps:$4 sm:$0xff]  }
 0x175   :  { %2840 = vmatpush1.bf16.msra.mxu0 %v6605_v30  ;;  %v6123_v23 = vld [vmem:[%s6957_s5 + $0x7f8] sm:$0xff]  ;;  %v1658_v51 = vld [vmem:[%s6957_s5 + $0x2f0] sm:$0xff] }
 0x176   :  { %3606 = vmatpush1.bf16.msra.mxu1 %v6605_v30  ;;  %2841 = vmatprep.subr.bf16.mxu0 %v6610_v46  ;;  %v1769_v30 = vpack.c.bf16 %v1655_v31, %v1654_v52  ;;  %v1814_v39 = vpop.trf.xlu0  ;;  %v6619_v52 = vld [vmem:[%s6962_s9 + $0x154] ss:$8 sps:$4 sm:$0xff]  }
 0x177   :  { %2807 = vmatmul.mubr.bf16.gmra.mrb[4].mxu0 %v1813_v22  ;;  %3573 = vmatmul.mubr.bf16.gmra.mrb[4].mxu1 %v3379_v60  ;;  %v3380_v60 = vpop.trf.xlu1  ;;  %v6614_v22 = vld [vmem:[%s6962_s9 + $0x140] ss:$8 sps:$4 sm:$0xff]  }
 0x178   :  { %3607 = vmatprep.subr.bf16.mxu1 %v6610_v46  ;;  %3454 = vxpose.xlu1.c.b16.cont [5/8] (narrow) %v3334_v38, 64  ;;  %v1656_v46 = vld [vmem:[%s6957_s5 + $0x2e0] sm:$0xff]  ;;  %v3336_v38 = vpack.c.bf16 %v6121_v42, %v6120_v40  ;;  %v1629_v42 = vld [vmem:[%s6957_s5 + $0x208] sm:$0xff] }
 0x179   :  { %1888 = vxpose.xlu0.c.b16.cont [5/8] (narrow) %v1768_v53, 64  ;;  %2816 = vmatprep.mubr.bf16.mxu0 %v7731_v41  ;;  %v6616_v41 = vld [vmem:[%s6962_s9 + $0x144] ss:$8 sps:$4 sm:$0xff]   ;;  %v6122_v53 = vld [vmem:[%s6957_s5 + $0x7f0] sm:$0xff] }
 0x17a   :  { %2842 = vmatpush1.bf16.msra.mxu0 %v6608_v47  ;;  %3582 = vmatprep.mubr.bf16.mxu1 %v7727_v48  ;;  %v1770_v48 = vpack.c.bf16 %v1657_v44, %v1656_v46  ;;  %v3337_v31 = vpack.c.bf16 %v6123_v23, %v6122_v53  ;;  %v1628_v40 = vld [vmem:[%s6957_s5 + $0x200] sm:$0xff]  ;;  %v6625_v53 = vld [vmem:[%s6962_s9 + $0x174] ss:$8 sps:$4 sm:$0xff]  }
 0x17b   :  { %3608 = vmatpush1.bf16.msra.mxu1 %v6608_v47  ;;  %2843 = vmatprep.subr.bf16.mxu0 %v6613_v49  ;;  %v1659_v47 = vld [vmem:[%s6957_s5 + $0x2f8] sm:$0xff]  ;;  %v6622_v46 = vld [vmem:[%s6962_s9 + $0x164] ss:$8 sps:$4 sm:$0xff]  }
 0x17c   :  { %3609 = vmatprep.subr.bf16.mxu1 %v6613_v49  ;;  %3455 = vxpose.xlu1.c.b16.cont [6/8] (narrow) %v3335_v61, 64  ;;  %v1771_v49 = vpack.c.bf16 %v1659_v47, %v1658_v51  ;;  %v6092_v61 = vld [vmem:[%s6957_s5 + $0x700] sm:$0xff] }
 0x17d   :  { %1889 = vxpose.xlu0.c.b16.cont [6/8] (narrow) %v1769_v30, 64  ;;  %v6617_v30 = vld [vmem:[%s6962_s9 + $0x150] ss:$8 sps:$4 sm:$0xff]   ;;  %v6096_v47 = vld [vmem:[%s6957_s5 + $0x720] sm:$0xff] }
 0x17e   :  { %2844 = vmatpush1.bf16.msra.mxu0 %v6611_v50 }
 0x17f   :  { %3610 = vmatpush1.bf16.msra.mxu1 %v6611_v50  ;;  %2817 = vmatmul.mubr.bf16.gmra.mrb[8].mxu0 %v1814_v39  ;;  %v6093_v50 = vld [vmem:[%s6957_s5 + $0x708] sm:$0xff]  ;;  %v1756_v39 = vpack.c.bf16 %v1629_v42, %v1628_v40 }
 0x180   :  { %2845 = vmatprep.subr.bf16.mxu0 %v6616_v41  ;;  %3583 = vmatmul.mubr.bf16.gmra.mrb[8].mxu1 %v3380_v60  ;;  %v3322_v44 = vpack.c.bf16 %v6093_v50, %v6092_v61  ;;  %v6095_v60 = vld [vmem:[%s6957_s5 + $0x718] sm:$0xff]  ;;  %v1633_v61 = vld [vmem:[%s6957_s5 + $0x228] sm:$0xff] }
 0x181   :  { %3611 = vmatprep.subr.bf16.mxu1 %v6616_v41  ;;  %3456 = vxpose.xlu1.c.b16.cont [7/8] (narrow) %v3336_v38, 64  ;;  %v6094_v41 = vld [vmem:[%s6957_s5 + $0x710] sm:$0xff]  ;;  %v6628_v50 = vld [vmem:[%s6962_s9 + $0x184] ss:$8 sps:$4 sm:$0xff]  }
 0x182   :  { %1890 = vxpose.xlu0.c.b16.cont [7/8] (narrow) %v1770_v48, 64  ;;  %2826 = vmatprep.mubr.bf16.mxu0 %v7739_v45  ;;  %v6620_v45 = vld [vmem:[%s6962_s9 + $0x160] ss:$8 sps:$4 sm:$0xff]   ;;  %v1630_v38 = vld [vmem:[%s6957_s5 + $0x210] sm:$0xff]  ;;  %v3381_v48 = vpop.trf.xlu1  ;;  %v3323_v23 = vpack.c.bf16 %v6095_v60, %v6094_v41  ;;  %v1635_v60 = vld [vmem:[%s6957_s5 + $0x238] sm:$0xff] }
 0x183   :  { %2846 = vmatpush1.bf16.msra.mxu0 %v6614_v22  ;;  %3592 = vmatprep.mubr.bf16.mxu1 %v7737_v43  ;;  %v1631_v43 = vld [vmem:[%s6957_s5 + $0x218] sm:$0xff]  ;;  %v6626_v41 = vld [vmem:[%s6962_s9 + $0x180] ss:$8 sps:$4 sm:$0xff]  }
 0x184   :  { %3612 = vmatpush1.bf16.msra.mxu1 %v6614_v22  ;;  %2847 = vmatprep.subr.bf16.mxu0 %v6619_v52  ;;  %v1815_v22 = vpop.trf.xlu0  ;;  %v1757_v51 = vpack.c.bf16 %v1631_v43, %v1630_v38  ;;  %v6631_v38 = vld [vmem:[%s6962_s9 + $0x194] ss:$8 sps:$4 sm:$0xff]  }
 0x185   :  { %3613 = vmatprep.subr.bf16.mxu1 %v6619_v52  ;;  %3457 = vxpose.xlu1.c.b16.end [8/8] (narrow) %v3337_v31, 64  ;;  %v6097_v52 = vld [vmem:[%s6957_s5 + $0x728] sm:$0xff]  ;;  %v6623_v31 = vld [vmem:[%s6962_s9 + $0x170] ss:$8 sps:$4 sm:$0xff]  }
 0x186   :  { %1891 = vxpose.xlu0.c.b16.end [8/8] (narrow) %v1771_v49, 64  ;;  %v1632_v49 = vld [vmem:[%s6957_s5 + $0x220] sm:$0xff] }
 0x187   :  { %2848 = vmatpush1.bf16.msra.mxu0 %v6617_v30  ;;  %v1758_v42 = vpack.c.bf16 %v1633_v61, %v1632_v49  ;;  %v6102_v61 = vld [vmem:[%s6957_s5 + $0x750] sm:$0xff] }
 0x188   :  { %3614 = vmatpush1.bf16.msra.mxu1 %v6617_v30  ;;  %2849 = vmatprep.subr.bf16.mxu0 %v6622_v46  ;;  %v3324_v30 = vpack.c.bf16 %v6097_v52, %v6096_v47  ;;  %v1637_v47 = vld [vmem:[%s6957_s5 + $0x248] sm:$0xff] }
 0x189   :  { %3615 = vmatprep.subr.bf16.mxu1 %v6622_v46  ;;  %3434 = vxpose.xlu1.c.b16.start [1/8] (narrow) %v3322_v44, 64  ;;  %v6098_v46 = vld [vmem:[%s6957_s5 + $0x730] sm:$0xff]  ;;  %v6099_v44 = vld [vmem:[%s6957_s5 + $0x738] sm:$0xff]  ;;  %v6634_v52 = vld [vmem:[%s6962_s9 + $0x1a4] ss:$8 sps:$4 sm:$0xff]  }
 0x18a   :  { %1868 = vxpose.xlu0.c.b16.start [1/8] (narrow) %v1756_v39, 64  ;;  %2827 = vmatmul.mubr.bf16.gmra.mrb[12].mxu0 %v1815_v22  ;;  %v3325_v43 = vpack.c.bf16 %v6099_v44, %v6098_v46  ;;  %v6100_v22 = vld [vmem:[%s6957_s5 + $0x740] sm:$0xff]  ;;  %v6637_v46 = vld [vmem:[%s6962_s9 + $0x1b4] ss:$8 sps:$4 sm:$0xff]  }
 0x18b   :  { %2850 = vmatpush1.bf16.msra.mxu0 %v6620_v45  ;;  %3593 = vmatmul.mubr.bf16.gmra.mrb[12].mxu1 %v3381_v48 }
 0x18c   :  { %3616 = vmatpush1.bf16.msra.mxu1 %v6620_v45  ;;  %2851 = vmatprep.subr.bf16.mxu0 %v6625_v53  ;;  %v1634_v45 = vld [vmem:[%s6957_s5 + $0x230] sm:$0xff] }
 0x18d   :  { %3617 = vmatprep.subr.bf16.mxu1 %v6625_v53  ;;  %3435 = vxpose.xlu1.c.b16.cont [2/8] (narrow) %v3323_v23, 64  ;;  %v3426_v40 = vpop.trf.xlu1  ;;  %v1759_v48 = vpack.c.bf16 %v1635_v60, %v1634_v45  ;;  %v6101_v53 = vld [vmem:[%s6957_s5 + $0x748] sm:$0xff]  ;;  %v6629_v23 = vld [vmem:[%s6962_s9 + $0x190] ss:$8 sps:$4 sm:$0xff]  }
 0x18e   :  { %1869 = vxpose.xlu0.c.b16.cont [2/8] (narrow) %v1757_v51, 64  ;;  %v1860_v39 = vpop.trf.xlu0  ;;  %3635 = vmatprep.mubr.bf16.mxu1 %v3426_v40  ;;  %v1636_v51 = vld [vmem:[%s6957_s5 + $0x240] sm:$0xff]  ;;  %v1638_v40 = vld [vmem:[%s6957_s5 + $0x250] sm:$0xff]  ;;  %v6105_v45 = vld [vmem:[%s6957_s5 + $0x768] sm:$0xff] }
 0x18f   :  { %2852 = vmatpush1.bf16.msra.mxu0 %v6623_v31  ;;  %2869 = vmatprep.mubr.bf16.mxu0 %v1860_v39  ;;  %v1760_v49 = vpack.c.bf16 %v1637_v47, %v1636_v51  ;;  %v6635_v60 = vld [vmem:[%s6962_s9 + $0x1b0] ss:$8 sps:$4 sm:$0xff]  }
 0x190   :  { %3618 = vmatpush1.bf16.msra.mxu1 %v6623_v31  ;;  %2853 = vmatprep.subr.bf16.mxu0 %v6628_v50  ;;  %v3326_v31 = vpack.c.bf16 %v6101_v53, %v6100_v22  ;;  %v6106_v47 = vld [vmem:[%s6957_s5 + $0x770] sm:$0xff] }
 0x191   :  { %3619 = vmatprep.subr.bf16.mxu1 %v6628_v50  ;;  %3436 = vxpose.xlu1.c.b16.cont [3/8] (narrow) %v3324_v30, 64  ;;  %v6103_v50 = vld [vmem:[%s6957_s5 + $0x758] sm:$0xff]  ;;  %v6632_v30 = vld [vmem:[%s6962_s9 + $0x1a0] ss:$8 sps:$4 sm:$0xff]   ;;  %v7823_v51 = vpop.trf.xlu1 }
 0x192   :  { %1870 = vxpose.xlu0.c.b16.cont [3/8] (narrow) %v1758_v42, 64  ;;  %v1639_v42 = vld [vmem:[%s6957_s5 + $0x258] sm:$0xff]  ;;  %v3327_v44 = vpack.c.bf16 %v6103_v50, %v6102_v61  ;;  %v7821_v53 = vpop.trf.xlu0 }
 0x193   :  { %2854 = vmatpush1.bf16.msra.mxu0 %v6626_v41  ;;  %v1761_v39 = vpack.c.bf16 %v1639_v42, %v1638_v40  ;;  %v1643_v61 = vld [vmem:[%s6957_s5 + $0x278] sm:$0xff]  ;;  %v6140_v42 = vld [vmem:[%s6957_s5 + $0x880] sm:$0xff] }
 0x194   :  { %3620 = vmatpush1.bf16.msra.mxu1 %v6626_v41  ;;  %2855 = vmatprep.subr.bf16.mxu0 %v6631_v38  ;;  %v6104_v41 = vld [vmem:[%s6957_s5 + $0x760] sm:$0xff]  ;;  %v6643_v50 = vld [vmem:[%s6962_s9 + $0x1d4] ss:$8 sps:$4 sm:$0xff]  }
 0x195   :  { %3621 = vmatprep.subr.bf16.mxu1 %v6631_v38  ;;  %3437 = vxpose.xlu1.c.b16.cont [4/8] (narrow) %v3325_v43, 64  ;;  %v1640_v38 = vld [vmem:[%s6957_s5 + $0x260] sm:$0xff]  ;;  %v1641_v43 = vld [vmem:[%s6957_s5 + $0x268] sm:$0xff]  ;;  %v3328_v22 = vpack.c.bf16 %v6105_v45, %v6104_v41 }
 0x196   :  { %1871 = vxpose.xlu0.c.b16.cont [4/8] (narrow) %v1759_v48, 64  ;;  %v6640_v48 = vld [vmem:[%s6962_s9 + $0x1c4] ss:$8 sps:$4 sm:$0xff]  }
 0x197   :  { %2856 = vmatpush1.bf16.msra.mxu0 %v6629_v23  ;;  %v1676_v41 = vld [vmem:[%s6957_s5 + $0x380] sm:$0xff]  ;;  %v1677_v45 = vld [vmem:[%s6957_s5 + $0x388] sm:$0xff] }
 0x198   :  { %3622 = vmatpush1.bf16.msra.mxu1 %v6629_v23  ;;  %2857 = vmatprep.subr.bf16.mxu0 %v6634_v52  ;;  %v1762_v23 = vpack.c.bf16 %v1641_v43, %v1640_v38  ;;  %v6646_v38 = vld [vmem:[%s6962_s9 + $0x1e4] ss:$8 sps:$4 sm:$0xff]  }
 0x199   :  { %3623 = vmatprep.subr.bf16.mxu1 %v6634_v52  ;;  %3438 = vxpose.xlu1.c.b16.cont [5/8] (narrow) %v3326_v31, 64  ;;  %v6107_v52 = vld [vmem:[%s6957_s5 + $0x778] sm:$0xff]  ;;  %v6638_v31 = vld [vmem:[%s6962_s9 + $0x1c0] ss:$8 sps:$4 sm:$0xff]  }
 0x19a   :  { %1872 = vxpose.xlu0.c.b16.cont [5/8] (narrow) %v1760_v49, 64  ;;  %v1642_v49 = vld [vmem:[%s6957_s5 + $0x270] sm:$0xff] }
 0x19b   :  { %2858 = vmatpush1.bf16.msra.mxu0 %v6632_v30  ;;  %v1763_v40 = vpack.c.bf16 %v1643_v61, %v1642_v49  ;;  %v6649_v49 = vld [vmem:[%s6962_s9 + $0x1f4] ss:$8 sps:$4 sm:$0xff]  }
 0x19c   :  { %3624 = vmatpush1.bf16.msra.mxu1 %v6632_v30  ;;  %2859 = vmatprep.subr.bf16.mxu0 %v6637_v46  ;;  %v3329_v30 = vpack.c.bf16 %v6107_v52, %v6106_v47  ;;  %v6644_v47 = vld [vmem:[%s6962_s9 + $0x1e0] ss:$8 sps:$4 sm:$0xff]   ;;  %v1678_v52 = vld [vmem:[%s6957_s5 + $0x390] sm:$0xff] }
 0x19d   :  { %3625 = vmatprep.subr.bf16.mxu1 %v6637_v46  ;;  %3439 = vxpose.xlu1.c.b16.cont [6/8] (narrow) %v3327_v44, 64  ;;  %v6141_v46 = vld [vmem:[%s6957_s5 + $0x888] sm:$0xff]  ;;  %v6641_v44 = vld [vmem:[%s6962_s9 + $0x1d0] ss:$8 sps:$4 sm:$0xff]  }
 0x19e   :  { %1873 = vxpose.xlu0.c.b16.cont [6/8] (narrow) %v1761_v39, 64  ;;  %v7834_v39 = vpop.trf.xlu0  ;;  %v3346_v43 = vpack.c.bf16 %v6141_v46, %v6140_v42  ;;  %v6144_v42 = vld [vmem:[%s6957_s5 + $0x8a0] sm:$0xff]  ;;  %v6145_v46 = vld [vmem:[%s6957_s5 + $0x8a8] sm:$0xff] }
 0x19f   :  { %2860 = vmatpush1.bf16.msra.mxu0 %v6635_v60 }
 0x1a0   :  { %3626 = vmatpush1.bf16.msra.mxu1 %v6635_v60  ;;  %2861 = vmatprep.subr.bf16.mxu0 %v6640_v48  ;;  %v7838_v60 = vpop.trf.xlu1 }
 0x1a1   :  { %3627 = vmatprep.subr.bf16.mxu1 %v6640_v48  ;;  %3440 = vxpose.xlu1.c.b16.cont [7/8] (narrow) %v3328_v22, 64  ;;  %v1780_v48 = vpack.c.bf16 %v1677_v45, %v1676_v41  ;;  %v6142_v22 = vld [vmem:[%s6957_s5 + $0x890] sm:$0xff]  ;;  %v1680_v45 = vld [vmem:[%s6957_s5 + $0x3a0] sm:$0xff] }
 0x1a2   :  { %1874 = vxpose.xlu0.c.b16.cont [7/8] (narrow) %v1762_v23, 64  ;;  %v6143_v23 = vld [vmem:[%s6957_s5 + $0x898] sm:$0xff]  ;;  %v7847_v61 = vpop.trf.xlu0 }
 0x1a3   :  { %2862 = vmatpush1.bf16.msra.mxu0 %v6638_v31  ;;  %v6647_v41 = vld [vmem:[%s6962_s9 + $0x1f0] ss:$8 sps:$4 sm:$0xff]  }
 0x1a4   :  { %3628 = vmatpush1.bf16.msra.mxu1 %v6638_v31  ;;  %2863 = vmatprep.subr.bf16.mxu0 %v6643_v50  ;;  %v1679_v31 = vld [vmem:[%s6957_s5 + $0x398] sm:$0xff] }
 0x1a5   :  { %3629 = vmatprep.subr.bf16.mxu1 %v6643_v50  ;;  %3441 = vxpose.xlu1.c.b16.end [8/8] (narrow) %v3329_v30, 64  ;;  %v3347_v50 = vpack.c.bf16 %v6143_v23, %v6142_v22  ;;  %v7849_v30 = vpop.trf.xlu1  ;;  %v6146_v23 = vld [vmem:[%s6957_s5 + $0x8b0] sm:$0xff] }
 0x1a6   :  { %1875 = vxpose.xlu0.c.b16.end [8/8] (narrow) %v1763_v40, 64  ;;  %v1781_v40 = vpack.c.bf16 %v1679_v31, %v1678_v52  ;;  %v6147_v52 = vld [vmem:[%s6957_s5 + $0x8b8] sm:$0xff] }
 0x1a7   :  { %2864 = vmatpush1.bf16.msra.mxu0 %v6641_v44 }
 0x1a8   :  { %3630 = vmatpush1.bf16.msra.mxu1 %v6641_v44  ;;  %2865 = vmatprep.subr.bf16.mxu0 %v6646_v38  ;;  %v1681_v44 = vld [vmem:[%s6957_s5 + $0x3a8] sm:$0xff] }
 0x1a9   :  { %3631 = vmatprep.subr.bf16.mxu1 %v6646_v38  ;;  %3482 = vxpose.xlu1.c.b16.start [1/8] (narrow) %v3346_v43, 64  ;;  %v6652_v38 = vld [vmem:[%s6962_s9 + $0x204] ss:$8 sps:$4 sm:$0xff]   ;;  %v3348_v43 = vpack.c.bf16 %v6145_v46, %v6144_v42  ;;  %v6653_v42 = vld [vmem:[%s6962_s9 + $0x210] ss:$8 sps:$4 sm:$0xff]  }
 0x1aa   :  { %1916 = vxpose.xlu0.c.b16.start [1/8] (narrow) %v1780_v48, 64  ;;  %v1782_v48 = vpack.c.bf16 %v1681_v44, %v1680_v45  ;;  %v6148_v46 = vld [vmem:[%s6957_s5 + $0x8c0] sm:$0xff] }
 0x1ab   :  { %2866 = vmatpush1.bf16.msra.mxu0 %v6644_v47  ;;  %v6658_v45 = vld [vmem:[%s6962_s9 + $0x224] ss:$8 sps:$4 sm:$0xff]  }
 0x1ac   :  { %3632 = vmatpush1.bf16.msra.mxu1 %v6644_v47  ;;  %2867 = vmatprep.subr.bf16.mxu0 %v6649_v49  ;;  %v1682_v47 = vld [vmem:[%s6957_s5 + $0x3b0] sm:$0xff]  ;;  %v1684_v44 = vld [vmem:[%s6957_s5 + $0x3c0] sm:$0xff] }
 0x1ad   :  { %3633 = vmatprep.subr.bf16.mxu1 %v6649_v49  ;;  %3483 = vxpose.xlu1.c.b16.cont [2/8] (narrow) %v3347_v50, 64  ;;  %v3410_v31 = vpop.trf.xlu1  ;;  %v6655_v49 = vld [vmem:[%s6962_s9 + $0x214] ss:$8 sps:$4 sm:$0xff]   ;;  %v3349_v50 = vpack.c.bf16 %v6147_v52, %v6146_v23 }
 0x1ae   :  { %1917 = vxpose.xlu0.c.b16.cont [2/8] (narrow) %v1781_v40, 64  ;;  %v1844_v22 = vpop.trf.xlu0  ;;  %v1783_v40 = vpack.c.bf16 %v1683_v59, %v1682_v47  ;;  %v1686_v23 = vld [vmem:[%s6957_s5 + $0x3d0] sm:$0xff]  ;;  %v1687_v52 = vld [vmem:[%s6957_s5 + $0x3d8] sm:$0xff] }
 0x1af   :  { %2868 = vmatpush1.bf16.msra.mxu0 %v6647_v41 }
 0x1b0   :  { %3634 = vmatpush1.bf16.msra.mxu1 %v6647_v41  ;;  %2910 = vmatprep.subr.bf16.mxu0 %v6652_v38  ;;  %v6149_v41 = vld [vmem:[%s6957_s5 + $0x8c8] sm:$0xff] }
 0x1b1   :  { %3676 = vmatprep.subr.bf16.mxu1 %v6652_v38  ;;  %3484 = vxpose.xlu1.c.b16.cont [3/8] (narrow) %v3348_v43, 64  ;;  %v1685_v38 = vld [vmem:[%s6957_s5 + $0x3c8] sm:$0xff] }
 0x1b2   :  { %2870 = vmatmul.mubr.bf16.vlgmr.msra.gmra.mrb[0].mxu0 %v1844_v22  ;;  %1918 = vxpose.xlu0.c.b16.cont [3/8] (narrow) %v1782_v48, 64  ;;  %v1845_v59 = vpop.trf.xlu0  ;;  %v1784_v43 = vpack.c.bf16 %v1685_v38, %v1684_v44  ;;  %v6150_v48 = vld [vmem:[%s6957_s5 + $0x8d0] sm:$0xff]  ;;  %v6151_v22 = vld [vmem:[%s6957_s5 + $0x8d8] sm:$0xff] }
 0x1b3   :  { %3636 = vmatmul.mubr.bf16.vlgmr.msra.gmra.mrb[0].mxu1 %v3410_v31  ;;  %2879 = vmatprep.mubr.bf16.mxu0 %v7821_v53  ;;  %v3350_v53 = vpack.c.bf16 %v6149_v41, %v6148_v46  ;;  %v6661_v31 = vld [vmem:[%s6962_s9 + $0x234] ss:$8 sps:$4 sm:$0xff]   ;;  %v3351_v47 = vpack.c.bf16 %v6151_v22, %v6150_v48  ;;  %v1688_v46 = vld [vmem:[%s6957_s5 + $0x3e0] sm:$0xff]  ;;  %v1689_v41 = vld [vmem:[%s6957_s5 + $0x3e8] sm:$0xff] }
 0x1b4   :  { %2911 = vmatpush1.bf16.msra.mxu0 %v6650_v29  ;;  %3645 = vmatprep.mubr.bf16.mxu1 %v7823_v51  ;;  %v3411_v51 = vpop.trf.xlu1  ;;  %v1786_v38 = vpack.c.bf16 %v1689_v41, %v1688_v46  ;;  %v1691_v48 = vld [vmem:[%s6957_s5 + $0x3f8] sm:$0xff]  ;;  %v6126_v46 = vld [vmem:[%s6957_s5 + $0x810] sm:$0xff] }
 0x1b5   :  { %3677 = vmatpush1.bf16.msra.mxu1 %v6650_v29  ;;  %2912 = vmatprep.subr.bf16.mxu0 %v6655_v49  ;;  %v6656_v29 = vld [vmem:[%s6962_s9 + $0x220] ss:$8 sps:$4 sm:$0xff]   ;;  %v6667_v22 = vld [vmem:[%s6962_s9 + $0x254] ss:$8 sps:$4 sm:$0xff]  }
 0x1b6   :  { %3678 = vmatprep.subr.bf16.mxu1 %v6655_v49  ;;  %3485 = vxpose.xlu1.c.b16.cont [4/8] (narrow) %v3349_v50, 64  ;;  %v1785_v49 = vpack.c.bf16 %v1687_v52, %v1686_v23  ;;  %v6659_v50 = vld [vmem:[%s6962_s9 + $0x230] ss:$8 sps:$4 sm:$0xff]   ;;  %v6124_v52 = vld [vmem:[%s6957_s5 + $0x800] sm:$0xff] }
 0x1b7   :  { %1919 = vxpose.xlu0.c.b16.cont [4/8] (narrow) %v1783_v40, 64  ;;  %v6152_v40 = vld [vmem:[%s6957_s5 + $0x8e0] sm:$0xff]  ;;  %v6127_v41 = vld [vmem:[%s6957_s5 + $0x818] sm:$0xff] }
 0x1b8   :  { %2913 = vmatpush1.bf16.msra.mxu0 %v6653_v42  ;;  %v3412_v44 = vpop.trf.xlu1 }
 0x1b9   :  { %3679 = vmatpush1.bf16.msra.mxu1 %v6653_v42  ;;  %2914 = vmatprep.subr.bf16.mxu0 %v6658_v45  ;;  %v6153_v42 = vld [vmem:[%s6957_s5 + $0x8e8] sm:$0xff] }
 0x1ba   :  { %2880 = vmatmul.mubr.bf16.gmra.mrb[4].mxu0 %v1845_v59  ;;  %3680 = vmatprep.subr.bf16.mxu1 %v6658_v45  ;;  %v1846_v45 = vpop.trf.xlu0  ;;  %v6154_v59 = vld [vmem:[%s6957_s5 + $0x8f0] sm:$0xff] }
 0x1bb   :  { %3646 = vmatmul.mubr.bf16.gmra.mrb[4].mxu1 %v3411_v51  ;;  %3486 = vxpose.xlu1.c.b16.cont [5/8] (narrow) %v3350_v53, 64  ;;  %v6155_v53 = vld [vmem:[%s6957_s5 + $0x8f8] sm:$0xff]  ;;  %v6662_v51 = vld [vmem:[%s6962_s9 + $0x240] ss:$8 sps:$4 sm:$0xff]  }
 0x1bc   :  { %1920 = vxpose.xlu0.c.b16.cont [5/8] (narrow) %v1784_v43, 64  ;;  %2889 = vmatprep.mubr.bf16.mxu0 %v7834_v39  ;;  %v6664_v39 = vld [vmem:[%s6962_s9 + $0x244] ss:$8 sps:$4 sm:$0xff]   ;;  %v1690_v43 = vld [vmem:[%s6957_s5 + $0x3f0] sm:$0xff] }
 0x1bd   :  { %2915 = vmatpush1.bf16.msra.mxu0 %v6656_v29  ;;  %3655 = vmatprep.mubr.bf16.mxu1 %v7838_v60  ;;  %v3352_v60 = vpack.c.bf16 %v6153_v42, %v6152_v40  ;;  %v1787_v23 = vpack.c.bf16 %v1691_v48, %v1690_v43  ;;  %v6670_v40 = vld [vmem:[%s6962_s9 + $0x264] ss:$8 sps:$4 sm:$0xff]   ;;  %v6671_v48 = vld [vmem:[%s6962_s9 + $0x270] ss:$8 sps:$4 sm:$0xff]  }
 0x1be   :  { %3681 = vmatpush1.bf16.msra.mxu1 %v6656_v29  ;;  %2916 = vmatprep.subr.bf16.mxu0 %v6661_v31  ;;  %v3353_v29 = vpack.c.bf16 %v6155_v53, %v6154_v59  ;;  %v3339_v59 = vpack.c.bf16 %v6127_v41, %v6126_v46  ;;  %v6129_v43 = vld [vmem:[%s6957_s5 + $0x828] sm:$0xff]  ;;  %v1667_v46 = vld [vmem:[%s6957_s5 + $0x338] sm:$0xff] }
 0x1bf   :  { %3682 = vmatprep.subr.bf16.mxu1 %v6661_v31  ;;  %3487 = vxpose.xlu1.c.b16.cont [6/8] (narrow) %v3351_v47, 64  ;;  %v6125_v31 = vld [vmem:[%s6957_s5 + $0x808] sm:$0xff]  ;;  %v6665_v47 = vld [vmem:[%s6962_s9 + $0x250] ss:$8 sps:$4 sm:$0xff]   ;;  %v6679_v41 = vld [vmem:[%s6962_s9 + $0x294] ss:$8 sps:$4 sm:$0xff]  }
 0x1c0   :  { %1921 = vxpose.xlu0.c.b16.cont [6/8] (narrow) %v1785_v49, 64  ;;  %v1660_v49 = vld [vmem:[%s6957_s5 + $0x300] sm:$0xff] }
 0x1c1   :  { %2917 = vmatpush1.bf16.msra.mxu0 %v6659_v50 }
 0x1c2   :  { %3683 = vmatpush1.bf16.msra.mxu1 %v6659_v50  ;;  %2890 = vmatmul.mubr.bf16.gmra.mrb[8].mxu0 %v1846_v45  ;;  %v1661_v50 = vld [vmem:[%s6957_s5 + $0x308] sm:$0xff] }
 0x1c3   :  { %2918 = vmatprep.subr.bf16.mxu0 %v6664_v39  ;;  %3656 = vmatmul.mubr.bf16.gmra.mrb[8].mxu1 %v3412_v44  ;;  %v1772_v42 = vpack.c.bf16 %v1661_v50, %v1660_v49  ;;  %v6668_v45 = vld [vmem:[%s6962_s9 + $0x260] ss:$8 sps:$4 sm:$0xff]   ;;  %v1663_v44 = vld [vmem:[%s6957_s5 + $0x318] sm:$0xff]  ;;  %v6130_v50 = vld [vmem:[%s6957_s5 + $0x830] sm:$0xff] }
 0x1c4   :  { %3684 = vmatprep.subr.bf16.mxu1 %v6664_v39  ;;  %3488 = vxpose.xlu1.c.b16.cont [7/8] (narrow) %v3352_v60, 64  ;;  %v1662_v39 = vld [vmem:[%s6957_s5 + $0x310] sm:$0xff]  ;;  %v1847_v60 = vpop.trf.xlu0 }
 0x1c5   :  { %1922 = vxpose.xlu0.c.b16.cont [7/8] (narrow) %v1786_v38, 64  ;;  %2899 = vmatprep.mubr.bf16.mxu0 %v7847_v61  ;;  %v3338_v61 = vpack.c.bf16 %v6125_v31, %v6124_v52  ;;  %v6673_v38 = vld [vmem:[%s6962_s9 + $0x274] ss:$8 sps:$4 sm:$0xff]   ;;  %v1773_v53 = vpack.c.bf16 %v1663_v44, %v1662_v39  ;;  %v6132_v39 = vld [vmem:[%s6957_s5 + $0x840] sm:$0xff]  ;;  %v6133_v44 = vld [vmem:[%s6957_s5 + $0x848] sm:$0xff] }
 0x1c6   :  { %2919 = vmatpush1.bf16.msra.mxu0 %v6662_v51  ;;  %3665 = vmatprep.mubr.bf16.mxu1 %v7849_v30  ;;  %v3413_v30 = vpop.trf.xlu1 }
 0x1c7   :  { %3685 = vmatpush1.bf16.msra.mxu1 %v6662_v51  ;;  %2920 = vmatprep.subr.bf16.mxu0 %v6667_v22  ;;  %v6128_v51 = vld [vmem:[%s6957_s5 + $0x820] sm:$0xff] }
 0x1c8   :  { %3686 = vmatprep.subr.bf16.mxu1 %v6667_v22  ;;  %3489 = vxpose.xlu1.c.b16.end [8/8] (narrow) %v3353_v29, 64  ;;  %v1664_v22 = vld [vmem:[%s6957_s5 + $0x320] sm:$0xff]  ;;  %v1665_v29 = vld [vmem:[%s6957_s5 + $0x328] sm:$0xff]  ;;  %v3340_v31 = vpack.c.bf16 %v6129_v43, %v6128_v51  ;;  %v3342_v51 = vpack.c.bf16 %v6133_v44, %v6132_v39 }
 0x1c9   :  { %1923 = vxpose.xlu0.c.b16.end [8/8] (narrow) %v1787_v23, 64  ;;  %v6676_v23 = vld [vmem:[%s6962_s9 + $0x284] ss:$8 sps:$4 sm:$0xff]   ;;  %v1774_v49 = vpack.c.bf16 %v1665_v29, %v1664_v22  ;;  %v6135_v22 = vld [vmem:[%s6957_s5 + $0x858] sm:$0xff]  ;;  %v6680_v29 = vld [vmem:[%s6962_s9 + $0x2a0] ss:$8 sps:$4 sm:$0xff]  }
 0x1ca   :  { %2921 = vmatpush1.bf16.msra.mxu0 %v6665_v47 }
 0x1cb   :  { %3687 = vmatpush1.bf16.msra.mxu1 %v6665_v47  ;;  %2922 = vmatprep.subr.bf16.mxu0 %v6670_v40 }
 0x1cc   :  { %3688 = vmatprep.subr.bf16.mxu1 %v6670_v40  ;;  %3466 = vxpose.xlu1.c.b16.start [1/8] (narrow) %v3338_v61, 64  ;;  %v6131_v40 = vld [vmem:[%s6957_s5 + $0x838] sm:$0xff]  ;;  %v6674_v61 = vld [vmem:[%s6962_s9 + $0x280] ss:$8 sps:$4 sm:$0xff]  }
 0x1cd   :  { %1900 = vxpose.xlu0.c.b16.start [1/8] (narrow) %v1772_v42, 64  ;;  %2900 = vmatmul.mubr.bf16.gmra.mrb[12].mxu0 %v1847_v60  ;;  %v1666_v42 = vld [vmem:[%s6957_s5 + $0x330] sm:$0xff] }
 0x1ce   :  { %2923 = vmatpush1.bf16.msra.mxu0 %v6668_v45  ;;  %3666 = vmatmul.mubr.bf16.gmra.mrb[12].mxu1 %v3413_v30  ;;  %v3341_v30 = vpack.c.bf16 %v6131_v40, %v6130_v50  ;;  %v6677_v60 = vld [vmem:[%s6962_s9 + $0x290] ss:$8 sps:$4 sm:$0xff]   ;;  %v6136_v50 = vld [vmem:[%s6957_s5 + $0x860] sm:$0xff]  ;;  %v6137_v40 = vld [vmem:[%s6957_s5 + $0x868] sm:$0xff] }
 0x1cf   :  { %3689 = vmatpush1.bf16.msra.mxu1 %v6668_v45  ;;  %2924 = vmatprep.subr.bf16.mxu0 %v6673_v38  ;;  %v3458_v52 = vpop.trf.xlu1  ;;  %v1775_v45 = vpack.c.bf16 %v1667_v46, %v1666_v42  ;;  %v1672_v42 = vld [vmem:[%s6957_s5 + $0x360] sm:$0xff]  ;;  %v1673_v46 = vld [vmem:[%s6957_s5 + $0x368] sm:$0xff] }
 0x1d0   :  { %3690 = vmatprep.subr.bf16.mxu1 %v6673_v38  ;;  %3467 = vxpose.xlu1.c.b16.cont [2/8] (narrow) %v3339_v59, 64  ;;  %v1892_v47 = vpop.trf.xlu0  ;;  %v1668_v38 = vld [vmem:[%s6957_s5 + $0x340] sm:$0xff]  ;;  %v1669_v59 = vld [vmem:[%s6957_s5 + $0x348] sm:$0xff]  ;;  %v1778_v39 = vpack.c.bf16 %v1673_v46, %v1672_v42  ;;  %v6174_v46 = vld [vmem:[%s6957_s5 + $0x990] sm:$0xff] }
 0x1d1   :  { %1901 = vxpose.xlu0.c.b16.cont [2/8] (narrow) %v1773_v53, 64  ;;  %2942 = vmatprep.mubr.bf16.mxu0 %v1892_v47  ;;  %v6682_v53 = vld [vmem:[%s6962_s9 + $0x2a4] ss:$8 sps:$4 sm:$0xff]   ;;  %v1776_v43 = vpack.c.bf16 %v1669_v59, %v1668_v38  ;;  %v6139_v38 = vld [vmem:[%s6957_s5 + $0x878] sm:$0xff]  ;;  %v6686_v59 = vld [vmem:[%s6962_s9 + $0x2c0] ss:$8 sps:$4 sm:$0xff]  }
 0x1d2   :  { %2925 = vmatpush1.bf16.msra.mxu0 %v6671_v48  ;;  %3708 = vmatprep.mubr.bf16.mxu1 %v3458_v52  ;;  %v1671_v52 = vld [vmem:[%s6957_s5 + $0x358] sm:$0xff] }
 0x1d3   :  { %3691 = vmatpush1.bf16.msra.mxu1 %v6671_v48  ;;  %2926 = vmatprep.subr.bf16.mxu0 %v6676_v23  ;;  %v6134_v48 = vld [vmem:[%s6957_s5 + $0x850] sm:$0xff]  ;;  %v7937_v44 = vpop.trf.xlu1 }
 0x1d4   :  { %3692 = vmatprep.subr.bf16.mxu1 %v6676_v23  ;;  %3468 = vxpose.xlu1.c.b16.cont [3/8] (narrow) %v3340_v31, 64  ;;  %v1670_v23 = vld [vmem:[%s6957_s5 + $0x350] sm:$0xff]  ;;  %v3343_v47 = vpack.c.bf16 %v6135_v22, %v6134_v48 }
 0x1d5   :  { %1902 = vxpose.xlu0.c.b16.cont [3/8] (narrow) %v1774_v49, 64  ;;  %v6685_v31 = vld [vmem:[%s6962_s9 + $0x2b4] ss:$8 sps:$4 sm:$0xff]   ;;  %v1777_v49 = vpack.c.bf16 %v1671_v52, %v1670_v23  ;;  %v6173_v23 = vld [vmem:[%s6957_s5 + $0x988] sm:$0xff]  ;;  %v6689_v52 = vld [vmem:[%s6962_s9 + $0x2d0] ss:$8 sps:$4 sm:$0xff]  }
 0x1d6   :  { %2927 = vmatpush1.bf16.msra.mxu0 %v6674_v61 }
 0x1d7   :  { %3693 = vmatpush1.bf16.msra.mxu1 %v6674_v61  ;;  %2928 = vmatprep.subr.bf16.mxu0 %v6679_v41  ;;  %v6683_v61 = vld [vmem:[%s6962_s9 + $0x2b0] ss:$8 sps:$4 sm:$0xff]  }
 0x1d8   :  { %3694 = vmatprep.subr.bf16.mxu1 %v6679_v41  ;;  %3469 = vxpose.xlu1.c.b16.cont [4/8] (narrow) %v3341_v30, 64  ;;  %v6688_v41 = vld [vmem:[%s6962_s9 + $0x2c4] ss:$8 sps:$4 sm:$0xff]   ;;  %v3344_v30 = vpack.c.bf16 %v6137_v40, %v6136_v50  ;;  %v7952_v50 = vpop.trf.xlu1 }
 0x1d9   :  { %1903 = vxpose.xlu0.c.b16.cont [4/8] (narrow) %v1775_v45, 64  ;;  %v7935_v45 = vpop.trf.xlu0  ;;  %v6694_v40 = vld [vmem:[%s6962_s9 + $0x2e4] ss:$8 sps:$4 sm:$0xff]  }
 0x1da   :  { %2929 = vmatpush1.bf16.msra.mxu0 %v6677_v60 }
 0x1db   :  { %3695 = vmatpush1.bf16.msra.mxu1 %v6677_v60  ;;  %2930 = vmatprep.subr.bf16.mxu0 %v6682_v53  ;;  %v6138_v60 = vld [vmem:[%s6957_s5 + $0x870] sm:$0xff] }
 0x1dc   :  { %3696 = vmatprep.subr.bf16.mxu1 %v6682_v53  ;;  %3470 = vxpose.xlu1.c.b16.cont [5/8] (narrow) %v3342_v51, 64  ;;  %v1674_v53 = vld [vmem:[%s6957_s5 + $0x370] sm:$0xff]  ;;  %v1675_v51 = vld [vmem:[%s6957_s5 + $0x378] sm:$0xff]  ;;  %v3345_v48 = vpack.c.bf16 %v6139_v38, %v6138_v60 }
 0x1dd   :  { %1904 = vxpose.xlu0.c.b16.cont [5/8] (narrow) %v1776_v43, 64  ;;  %v6691_v43 = vld [vmem:[%s6962_s9 + $0x2d4] ss:$8 sps:$4 sm:$0xff]   ;;  %v1779_v22 = vpack.c.bf16 %v1675_v51, %v1674_v53  ;;  %v7963_v51 = vpop.trf.xlu1 }
 0x1de   :  { %2931 = vmatpush1.bf16.msra.mxu0 %v6680_v29  ;;  %v1711_v60 = vld [vmem:[%s6957_s5 + $0x498] sm:$0xff] }
 0x1df   :  { %3697 = vmatpush1.bf16.msra.mxu1 %v6680_v29  ;;  %2932 = vmatprep.subr.bf16.mxu0 %v6685_v31  ;;  %v6172_v29 = vld [vmem:[%s6957_s5 + $0x980] sm:$0xff]  ;;  %v6697_v38 = vld [vmem:[%s6962_s9 + $0x2f4] ss:$8 sps:$4 sm:$0xff]  }
 0x1e0   :  { %3698 = vmatprep.subr.bf16.mxu1 %v6685_v31  ;;  %3471 = vxpose.xlu1.c.b16.cont [6/8] (narrow) %v3343_v47, 64  ;;  %v7948_v31 = vpop.trf.xlu0  ;;  %v1708_v47 = vld [vmem:[%s6957_s5 + $0x480] sm:$0xff] }
 0x1e1   :  { %1905 = vxpose.xlu0.c.b16.cont [6/8] (narrow) %v1777_v49, 64  ;;  %v1709_v49 = vld [vmem:[%s6957_s5 + $0x488] sm:$0xff] }
 0x1e2   :  { %2933 = vmatpush1.bf16.msra.mxu0 %v6683_v61  ;;  %v1796_v42 = vpack.c.bf16 %v1709_v49, %v1708_v47  ;;  %v6700_v47 = vld [vmem:[%s6962_s9 + $0x304] ss:$8 sps:$4 sm:$0xff]  }
 0x1e3   :  { %3699 = vmatpush1.bf16.msra.mxu1 %v6683_v61  ;;  %2934 = vmatprep.subr.bf16.mxu0 %v6688_v41  ;;  %v3362_v61 = vpack.c.bf16 %v6173_v23, %v6172_v29  ;;  %v6695_v29 = vld [vmem:[%s6962_s9 + $0x2f0] ss:$8 sps:$4 sm:$0xff]   ;;  %v1712_v23 = vld [vmem:[%s6957_s5 + $0x4a0] sm:$0xff] }
 0x1e4   :  { %3700 = vmatprep.subr.bf16.mxu1 %v6688_v41  ;;  %3472 = vxpose.xlu1.c.b16.cont [7/8] (narrow) %v3344_v30, 64  ;;  %v6175_v41 = vld [vmem:[%s6957_s5 + $0x998] sm:$0xff]  ;;  %v6692_v30 = vld [vmem:[%s6962_s9 + $0x2e0] ss:$8 sps:$4 sm:$0xff]  }
 0x1e5   :  { %1906 = vxpose.xlu0.c.b16.cont [7/8] (narrow) %v1778_v39, 64  ;;  %v1710_v39 = vld [vmem:[%s6957_s5 + $0x490] sm:$0xff]  ;;  %v3363_v53 = vpack.c.bf16 %v6175_v41, %v6174_v46  ;;  %v6179_v46 = vld [vmem:[%s6957_s5 + $0x9b8] sm:$0xff] }
 0x1e6   :  { %2935 = vmatpush1.bf16.msra.mxu0 %v6686_v59 }
 0x1e7   :  { %3701 = vmatpush1.bf16.msra.mxu1 %v6686_v59  ;;  %2936 = vmatprep.subr.bf16.mxu0 %v6691_v43  ;;  %v7961_v59 = vpop.trf.xlu0 }
 0x1e8   :  { %3702 = vmatprep.subr.bf16.mxu1 %v6691_v43  ;;  %3473 = vxpose.xlu1.c.b16.end [8/8] (narrow) %v3345_v48, 64  ;;  %v1797_v43 = vpack.c.bf16 %v1711_v60, %v1710_v39  ;;  %v6176_v48 = vld [vmem:[%s6957_s5 + $0x9a0] sm:$0xff]  ;;  %v1715_v60 = vld [vmem:[%s6957_s5 + $0x4b8] sm:$0xff] }
 0x1e9   :  { %1907 = vxpose.xlu0.c.b16.end [8/8] (narrow) %v1779_v22, 64  ;;  %v6177_v22 = vld [vmem:[%s6957_s5 + $0x9a8] sm:$0xff] }
 0x1ea   :  { %2937 = vmatpush1.bf16.msra.mxu0 %v6689_v52  ;;  %v3364_v49 = vpack.c.bf16 %v6177_v22, %v6176_v48  ;;  %v6698_v39 = vld [vmem:[%s6962_s9 + $0x300] ss:$8 sps:$4 sm:$0xff]   ;;  %v6701_v48 = vld [vmem:[%s6962_s9 + $0x310] ss:$8 sps:$4 sm:$0xff]  }
 0x1eb   :  { %3703 = vmatpush1.bf16.msra.mxu1 %v6689_v52  ;;  %2938 = vmatprep.subr.bf16.mxu0 %v6694_v40  ;;  %v1713_v52 = vld [vmem:[%s6957_s5 + $0x4a8] sm:$0xff]  ;;  %v6180_v22 = vld [vmem:[%s6957_s5 + $0x9c0] sm:$0xff] }
 0x1ec   :  { %3704 = vmatprep.subr.bf16.mxu1 %v6694_v40  ;;  %3514 = vxpose.xlu1.c.b16.start [1/8] (narrow) %v3362_v61, 64  ;;  %v1798_v40 = vpack.c.bf16 %v1713_v52, %v1712_v23  ;;  %v6706_v23 = vld [vmem:[%s6962_s9 + $0x324] ss:$8 sps:$4 sm:$0xff]  }
 0x1ed   :  { %1948 = vxpose.xlu0.c.b16.start [1/8] (narrow) %v1796_v42, 64  ;;  %v6178_v42 = vld [vmem:[%s6957_s5 + $0x9b0] sm:$0xff]  ;;  %v1716_v52 = vld [vmem:[%s6957_s5 + $0x4c0] sm:$0xff] }
 0x1ee   :  { %2939 = vmatpush1.bf16.msra.mxu0 %v6692_v30 }
 0x1ef   :  { %3705 = vmatpush1.bf16.msra.mxu1 %v6692_v30  ;;  %2940 = vmatprep.subr.bf16.mxu0 %v6697_v38  ;;  %v3442_v41 = vpop.trf.xlu1  ;;  %v1714_v30 = vld [vmem:[%s6957_s5 + $0x4b0] sm:$0xff] }
 0x1f0   :  { %3706 = vmatprep.subr.bf16.mxu1 %v6697_v38  ;;  %3515 = vxpose.xlu1.c.b16.cont [2/8] (narrow) %v3363_v53, 64  ;;  %v1876_v61 = vpop.trf.xlu0  ;;  %v6703_v38 = vld [vmem:[%s6962_s9 + $0x314] ss:$8 sps:$4 sm:$0xff]   ;;  %v3365_v53 = vpack.c.bf16 %v6179_v46, %v6178_v42  ;;  %v6704_v46 = vld [vmem:[%s6962_s9 + $0x320] ss:$8 sps:$4 sm:$0xff]  }
 0x1f1   :  { %1949 = vxpose.xlu0.c.b16.cont [2/8] (narrow) %v1797_v43, 64  ;;  %v1799_v43 = vpack.c.bf16 %v1715_v60, %v1714_v30  ;;  %v6183_v42 = vld [vmem:[%s6957_s5 + $0x9d8] sm:$0xff] }
 0x1f2   :  { %2941 = vmatpush1.bf16.msra.mxu0 %v6695_v29  ;;  %v6709_v30 = vld [vmem:[%s6962_s9 + $0x334] ss:$8 sps:$4 sm:$0xff]  }
 0x1f3   :  { %3707 = vmatpush1.bf16.msra.mxu1 %v6695_v29  ;;  %2983 = vmatprep.subr.bf16.mxu0 %v6700_v47  ;;  %v6181_v29 = vld [vmem:[%s6957_s5 + $0x9c8] sm:$0xff] }
 0x1f4   :  { %3749 = vmatprep.subr.bf16.mxu1 %v6700_v47  ;;  %3516 = vxpose.xlu1.c.b16.cont [3/8] (narrow) %v3364_v49, 64  ;;  %v1717_v47 = vld [vmem:[%s6957_s5 + $0x4c8] sm:$0xff]  ;;  %v3366_v49 = vpack.c.bf16 %v6181_v29, %v6180_v22  ;;  %v1720_v22 = vld [vmem:[%s6957_s5 + $0x4e0] sm:$0xff] }
 0x1f5   :  { %2943 = vmatmul.mubr.bf16.vlgmr.msra.gmra.mrb[0].mxu0 %v1876_v61  ;;  %1950 = vxpose.xlu0.c.b16.cont [3/8] (narrow) %v1798_v40, 64  ;;  %v1800_v40 = vpack.c.bf16 %v1717_v47, %v1716_v52  ;;  %v6182_v61 = vld [vmem:[%s6957_s5 + $0x9d0] sm:$0xff]  ;;  %v1721_v29 = vld [vmem:[%s6957_s5 + $0x4e8] sm:$0xff] }
 0x1f6   :  { %3709 = vmatmul.mubr.bf16.vlgmr.msra.gmra.mrb[0].mxu1 %v3442_v41  ;;  %2952 = vmatprep.mubr.bf16.mxu0 %v7935_v45  ;;  %v1877_v45 = vpop.trf.xlu0  ;;  %v1718_v41 = vld [vmem:[%s6957_s5 + $0x4d0] sm:$0xff]  ;;  %v3367_v60 = vpack.c.bf16 %v6183_v42, %v6182_v61  ;;  %v1802_v47 = vpack.c.bf16 %v1721_v29, %v1720_v22  ;;  %v1723_v61 = vld [vmem:[%s6957_s5 + $0x4f8] sm:$0xff] }
 0x1f7   :  { %2984 = vmatpush1.bf16.msra.mxu0 %v6698_v39  ;;  %3718 = vmatprep.mubr.bf16.mxu1 %v7937_v44  ;;  %v3443_v44 = vpop.trf.xlu1  ;;  %v6715_v42 = vld [vmem:[%s6962_s9 + $0x354] ss:$8 sps:$4 sm:$0xff]  }
 0x1f8   :  { %3750 = vmatpush1.bf16.msra.mxu1 %v6698_v39  ;;  %2985 = vmatprep.subr.bf16.mxu0 %v6703_v38  ;;  %v1719_v39 = vld [vmem:[%s6957_s5 + $0x4d8] sm:$0xff]  ;;  %v6158_v22 = vld [vmem:[%s6957_s5 + $0x910] sm:$0xff] }
 0x1f9   :  { %3751 = vmatprep.subr.bf16.mxu1 %v6703_v38  ;;  %3517 = vxpose.xlu1.c.b16.cont [4/8] (narrow) %v3365_v53, 64  ;;  %v1801_v38 = vpack.c.bf16 %v1719_v39, %v1718_v41  ;;  %v6707_v53 = vld [vmem:[%s6962_s9 + $0x330] ss:$8 sps:$4 sm:$0xff]   ;;  %v6156_v39 = vld [vmem:[%s6957_s5 + $0x900] sm:$0xff] }
 0x1fa   :  { %1951 = vxpose.xlu0.c.b16.cont [4/8] (narrow) %v1799_v43, 64  ;;  %v6184_v43 = vld [vmem:[%s6957_s5 + $0x9e0] sm:$0xff]  ;;  %v6159_v29 = vld [vmem:[%s6957_s5 + $0x918] sm:$0xff] }
 0x1fb   :  { %2986 = vmatpush1.bf16.msra.mxu0 %v6701_v48  ;;  %v3444_v52 = vpop.trf.xlu1 }
 0x1fc   :  { %3752 = vmatpush1.bf16.msra.mxu1 %v6701_v48  ;;  %2987 = vmatprep.subr.bf16.mxu0 %v6706_v23  ;;  %v6185_v48 = vld [vmem:[%s6957_s5 + $0x9e8] sm:$0xff] }
 0x1fd   :  { %2953 = vmatmul.mubr.bf16.gmra.mrb[4].mxu0 %v1877_v45  ;;  %3753 = vmatprep.subr.bf16.mxu1 %v6706_v23  ;;  %v1878_v23 = vpop.trf.xlu0  ;;  %v6186_v45 = vld [vmem:[%s6957_s5 + $0x9f0] sm:$0xff] }
 0x1fe   :  { %3719 = vmatmul.mubr.bf16.gmra.mrb[4].mxu1 %v3443_v44  ;;  %3518 = vxpose.xlu1.c.b16.cont [5/8] (narrow) %v3366_v49, 64  ;;  %v6187_v49 = vld [vmem:[%s6957_s5 + $0x9f8] sm:$0xff]  ;;  %v6710_v44 = vld [vmem:[%s6962_s9 + $0x340] ss:$8 sps:$4 sm:$0xff]  }
 0x1ff   :  { %1952 = vxpose.xlu0.c.b16.cont [5/8] (narrow) %v1800_v40, 64  ;;  %2962 = vmatprep.mubr.bf16.mxu0 %v7948_v31  ;;  %v6712_v31 = vld [vmem:[%s6962_s9 + $0x344] ss:$8 sps:$4 sm:$0xff]   ;;  %v1722_v40 = vld [vmem:[%s6957_s5 + $0x4f0] sm:$0xff] }
 0x200   :  { %2988 = vmatpush1.bf16.msra.mxu0 %v6704_v46  ;;  %3728 = vmatprep.mubr.bf16.mxu1 %v7952_v50  ;;  %v3368_v50 = vpack.c.bf16 %v6185_v48, %v6184_v43  ;;  %v1803_v41 = vpack.c.bf16 %v1723_v61, %v1722_v40  ;;  %v6718_v43 = vld [vmem:[%s6962_s9 + $0x364] ss:$8 sps:$4 sm:$0xff]   ;;  %v6719_v61 = vld [vmem:[%s6962_s9 + $0x370] ss:$8 sps:$4 sm:$0xff]  }
 0x201   :  { %3754 = vmatpush1.bf16.msra.mxu1 %v6704_v46  ;;  %2989 = vmatprep.subr.bf16.mxu0 %v6709_v30  ;;  %v3369_v46 = vpack.c.bf16 %v6187_v49, %v6186_v45  ;;  %v3355_v45 = vpack.c.bf16 %v6159_v29, %v6158_v22  ;;  %v6161_v40 = vld [vmem:[%s6957_s5 + $0x928] sm:$0xff]  ;;  %v1699_v22 = vld [vmem:[%s6957_s5 + $0x438] sm:$0xff] }
 0x202   :  { %3755 = vmatprep.subr.bf16.mxu1 %v6709_v30  ;;  %3519 = vxpose.xlu1.c.b16.cont [6/8] (narrow) %v3367_v60, 64  ;;  %v6157_v30 = vld [vmem:[%s6957_s5 + $0x908] sm:$0xff]  ;;  %v6713_v60 = vld [vmem:[%s6962_s9 + $0x350] ss:$8 sps:$4 sm:$0xff]   ;;  %v6727_v29 = vld [vmem:[%s6962_s9 + $0x394] ss:$8 sps:$4 sm:$0xff]  }
 0x203   :  { %1953 = vxpose.xlu0.c.b16.cont [6/8] (narrow) %v1801_v38, 64  ;;  %v1692_v38 = vld [vmem:[%s6957_s5 + $0x400] sm:$0xff] }
 0x204   :  { %2990 = vmatpush1.bf16.msra.mxu0 %v6707_v53 }
 0x205   :  { %3756 = vmatpush1.bf16.msra.mxu1 %v6707_v53  ;;  %2963 = vmatmul.mubr.bf16.gmra.mrb[8].mxu0 %v1878_v23  ;;  %v1693_v53 = vld [vmem:[%s6957_s5 + $0x408] sm:$0xff] }
 0x206   :  { %2991 = vmatprep.subr.bf16.mxu0 %v6712_v31  ;;  %3729 = vmatmul.mubr.bf16.gmra.mrb[8].mxu1 %v3444_v52  ;;  %v1788_v48 = vpack.c.bf16 %v1693_v53, %v1692_v38  ;;  %v6716_v23 = vld [vmem:[%s6962_s9 + $0x360] ss:$8 sps:$4 sm:$0xff]   ;;  %v1695_v52 = vld [vmem:[%s6957_s5 + $0x418] sm:$0xff]  ;;  %v6162_v53 = vld [vmem:[%s6957_s5 + $0x930] sm:$0xff] }
 0x207   :  { %3757 = vmatprep.subr.bf16.mxu1 %v6712_v31  ;;  %3520 = vxpose.xlu1.c.b16.cont [7/8] (narrow) %v3368_v50, 64  ;;  %v1694_v31 = vld [vmem:[%s6957_s5 + $0x410] sm:$0xff]  ;;  %v1879_v50 = vpop.trf.xlu0 }
 0x208   :  { %1954 = vxpose.xlu0.c.b16.cont [7/8] (narrow) %v1802_v47, 64  ;;  %2972 = vmatprep.mubr.bf16.mxu0 %v7961_v59  ;;  %v3354_v59 = vpack.c.bf16 %v6157_v30, %v6156_v39  ;;  %v6721_v47 = vld [vmem:[%s6962_s9 + $0x374] ss:$8 sps:$4 sm:$0xff]   ;;  %v1789_v49 = vpack.c.bf16 %v1695_v52, %v1694_v31  ;;  %v6164_v31 = vld [vmem:[%s6957_s5 + $0x940] sm:$0xff]  ;;  %v6165_v52 = vld [vmem:[%s6957_s5 + $0x948] sm:$0xff] }
 0x209   :  { %2992 = vmatpush1.bf16.msra.mxu0 %v6710_v44  ;;  %3738 = vmatprep.mubr.bf16.mxu1 %v7963_v51  ;;  %v3445_v51 = vpop.trf.xlu1 }
 0x20a   :  { %3758 = vmatpush1.bf16.msra.mxu1 %v6710_v44  ;;  %2993 = vmatprep.subr.bf16.mxu0 %v6715_v42  ;;  %v6160_v44 = vld [vmem:[%s6957_s5 + $0x920] sm:$0xff] }
 0x20b   :  { %3759 = vmatprep.subr.bf16.mxu1 %v6715_v42  ;;  %3521 = vxpose.xlu1.c.b16.end [8/8] (narrow) %v3369_v46, 64  ;;  %v1696_v42 = vld [vmem:[%s6957_s5 + $0x420] sm:$0xff]  ;;  %v1697_v46 = vld [vmem:[%s6957_s5 + $0x428] sm:$0xff]  ;;  %v3356_v30 = vpack.c.bf16 %v6161_v40, %v6160_v44  ;;  %v3358_v44 = vpack.c.bf16 %v6165_v52, %v6164_v31 }
 0x20c   :  { %1955 = vxpose.xlu0.c.b16.end [8/8] (narrow) %v1803_v41, 64  ;;  %v6724_v41 = vld [vmem:[%s6962_s9 + $0x384] ss:$8 sps:$4 sm:$0xff]   ;;  %v1790_v38 = vpack.c.bf16 %v1697_v46, %v1696_v42  ;;  %v6167_v42 = vld [vmem:[%s6957_s5 + $0x958] sm:$0xff]  ;;  %v6728_v46 = vld [vmem:[%s6962_s9 + $0x3a0] ss:$8 sps:$4 sm:$0xff]  }
 0x20d   :  { %2994 = vmatpush1.bf16.msra.mxu0 %v6713_v60 }
 0x20e   :  { %3760 = vmatpush1.bf16.msra.mxu1 %v6713_v60  ;;  %2995 = vmatprep.subr.bf16.mxu0 %v6718_v43 }
 0x20f   :  { %3761 = vmatprep.subr.bf16.mxu1 %v6718_v43  ;;  %3498 = vxpose.xlu1.c.b16.start [1/8] (narrow) %v3354_v59, 64  ;;  %v6163_v43 = vld [vmem:[%s6957_s5 + $0x938] sm:$0xff]  ;;  %v6722_v59 = vld [vmem:[%s6962_s9 + $0x380] ss:$8 sps:$4 sm:$0xff]  }
 0x210   :  { %1932 = vxpose.xlu0.c.b16.start [1/8] (narrow) %v1788_v48, 64  ;;  %2973 = vmatmul.mubr.bf16.gmra.mrb[12].mxu0 %v1879_v50  ;;  %v1698_v48 = vld [vmem:[%s6957_s5 + $0x430] sm:$0xff] }
 0x211   :  { %2996 = vmatpush1.bf16.msra.mxu0 %v6716_v23  ;;  %3739 = vmatmul.mubr.bf16.gmra.mrb[12].mxu1 %v3445_v51  ;;  %v3357_v51 = vpack.c.bf16 %v6163_v43, %v6162_v53  ;;  %v6725_v50 = vld [vmem:[%s6962_s9 + $0x390] ss:$8 sps:$4 sm:$0xff]   ;;  %v6168_v53 = vld [vmem:[%s6957_s5 + $0x960] sm:$0xff]  ;;  %v6169_v43 = vld [vmem:[%s6957_s5 + $0x968] sm:$0xff] }
 0x212   :  { %3762 = vmatpush1.bf16.msra.mxu1 %v6716_v23  ;;  %2997 = vmatprep.subr.bf16.mxu0 %v6721_v47  ;;  %v3490_v39 = vpop.trf.xlu1  ;;  %v1791_v23 = vpack.c.bf16 %v1699_v22, %v1698_v48  ;;  %v1704_v48 = vld [vmem:[%s6957_s5 + $0x460] sm:$0xff]  ;;  %v1705_v22 = vld [vmem:[%s6957_s5 + $0x468] sm:$0xff] }
 0x213   :  { %3763 = vmatprep.subr.bf16.mxu1 %v6721_v47  ;;  %3499 = vxpose.xlu1.c.b16.cont [2/8] (narrow) %v3355_v45, 64  ;;  %v1924_v60 = vpop.trf.xlu0  ;;  %v1700_v47 = vld [vmem:[%s6957_s5 + $0x440] sm:$0xff]  ;;  %v1701_v45 = vld [vmem:[%s6957_s5 + $0x448] sm:$0xff]  ;;  %v1794_v31 = vpack.c.bf16 %v1705_v22, %v1704_v48 }
 0x214   :  { %1933 = vxpose.xlu0.c.b16.cont [2/8] (narrow) %v1789_v49, 64  ;;  %3015 = vmatprep.mubr.bf16.mxu0 %v1924_v60  ;;  %v6730_v49 = vld [vmem:[%s6962_s9 + $0x3a4] ss:$8 sps:$4 sm:$0xff]   ;;  %v1792_v40 = vpack.c.bf16 %v1701_v45, %v1700_v47  ;;  %v6171_v47 = vld [vmem:[%s6957_s5 + $0x978] sm:$0xff]  ;;  %v6734_v45 = vld [vmem:[%s6962_s9 + $0x3c0] ss:$8 sps:$4 sm:$0xff]  }
 0x215   :  { %2998 = vmatpush1.bf16.msra.mxu0 %v6719_v61  ;;  %3781 = vmatprep.mubr.bf16.mxu1 %v3490_v39  ;;  %v1703_v39 = vld [vmem:[%s6957_s5 + $0x458] sm:$0xff]  ;;  %v6748_v48 = vld [vmem:[%s6962_s9 + $0x404] ss:$8 sps:$4 sm:$0xff]  }
 0x216   :  { %3764 = vmatpush1.bf16.msra.mxu1 %v6719_v61  ;;  %2999 = vmatprep.subr.bf16.mxu0 %v6724_v41  ;;  %v6166_v61 = vld [vmem:[%s6957_s5 + $0x950] sm:$0xff]  ;;  %v3491_v52 = vpop.trf.xlu1 }
 0x217   :  { %3765 = vmatprep.subr.bf16.mxu1 %v6724_v41  ;;  %3500 = vxpose.xlu1.c.b16.cont [3/8] (narrow) %v3356_v30, 64  ;;  %v1702_v41 = vld [vmem:[%s6957_s5 + $0x450] sm:$0xff]  ;;  %v3359_v60 = vpack.c.bf16 %v6167_v42, %v6166_v61 }
 0x218   :  { %1934 = vxpose.xlu0.c.b16.cont [3/8] (narrow) %v1790_v38, 64  ;;  %v6733_v30 = vld [vmem:[%s6962_s9 + $0x3b4] ss:$8 sps:$4 sm:$0xff]   ;;  %v1793_v38 = vpack.c.bf16 %v1703_v39, %v1702_v41 }
 0x219   :  { %3000 = vmatpush1.bf16.msra.mxu0 %v6722_v59 }
 0x21a   :  { %3766 = vmatpush1.bf16.msra.mxu1 %v6722_v59  ;;  %3001 = vmatprep.subr.bf16.mxu0 %v6727_v29  ;;  %v6731_v59 = vld [vmem:[%s6962_s9 + $0x3b0] ss:$8 sps:$4 sm:$0xff]   ;;  %v3492_v39 = vpop.trf.xlu1 }
 0x21b   :  { %3767 = vmatprep.subr.bf16.mxu1 %v6727_v29  ;;  %3501 = vxpose.xlu1.c.b16.cont [4/8] (narrow) %v3357_v51, 64  ;;  %v6736_v29 = vld [vmem:[%s6962_s9 + $0x3c4] ss:$8 sps:$4 sm:$0xff]   ;;  %v3360_v51 = vpack.c.bf16 %v6169_v43, %v6168_v53 }
 0x21c   :  { %1935 = vxpose.xlu0.c.b16.cont [4/8] (narrow) %v1791_v23, 64  ;;  %v1925_v23 = vpop.trf.xlu0 }
 0x21d   :  { %3002 = vmatpush1.bf16.msra.mxu0 %v6725_v50 }
 0x21e   :  { %3768 = vmatpush1.bf16.msra.mxu1 %v6725_v50  ;;  %3003 = vmatprep.subr.bf16.mxu0 %v6730_v49  ;;  %v6170_v50 = vld [vmem:[%s6957_s5 + $0x970] sm:$0xff]  ;;  %v3493_v43 = vpop.trf.xlu1 }
 0x21f   :  { %3769 = vmatprep.subr.bf16.mxu1 %v6730_v49  ;;  %3502 = vxpose.xlu1.c.b16.cont [5/8] (narrow) %v3358_v44, 64  ;;  %v1706_v49 = vld [vmem:[%s6957_s5 + $0x470] sm:$0xff]  ;;  %v1707_v44 = vld [vmem:[%s6957_s5 + $0x478] sm:$0xff]  ;;  %v3361_v61 = vpack.c.bf16 %v6171_v47, %v6170_v50  ;;  %v6754_v47 = vld [vmem:[%s6962_s9 + $0x424] ss:$8 sps:$4 sm:$0xff]  }
 0x220   :  { %1936 = vxpose.xlu0.c.b16.cont [5/8] (narrow) %v1792_v40, 64  ;;  %v6739_v40 = vld [vmem:[%s6962_s9 + $0x3d4] ss:$8 sps:$4 sm:$0xff]   ;;  %v1795_v42 = vpack.c.bf16 %v1707_v44, %v1706_v49  ;;  %v1926_v41 = vpop.trf.xlu0  ;;  %v6749_v50 = vld [vmem:[%s6962_s9 + $0x410] ss:$8 sps:$4 sm:$0xff]  }
 0x221   :  { %3004 = vmatpush1.bf16.msra.mxu0 %v6728_v46  ;;  %v6752_v44 = vld [vmem:[%s6962_s9 + $0x420] ss:$8 sps:$4 sm:$0xff]  }
 0x222   :  { %3770 = vmatpush1.bf16.msra.mxu1 %v6728_v46  ;;  %3005 = vmatprep.subr.bf16.mxu0 %v6733_v30  ;;  %v6737_v46 = vld [vmem:[%s6962_s9 + $0x3d0] ss:$8 sps:$4 sm:$0xff]  }
 0x223   :  { %3771 = vmatprep.subr.bf16.mxu1 %v6733_v30  ;;  %3503 = vxpose.xlu1.c.b16.cont [6/8] (narrow) %v3359_v60, 64  ;;  %v6742_v30 = vld [vmem:[%s6962_s9 + $0x3e4] ss:$8 sps:$4 sm:$0xff]   ;;  %v6740_v60 = vld [vmem:[%s6962_s9 + $0x3e0] ss:$8 sps:$4 sm:$0xff]  }
 0x224   :  { %1937 = vxpose.xlu0.c.b16.cont [6/8] (narrow) %v1793_v38, 64  ;;  %v6745_v38 = vld [vmem:[%s6962_s9 + $0x3f4] ss:$8 sps:$4 sm:$0xff]   ;;  %v1927_v53 = vpop.trf.xlu0 }
 0x225   :  { %3006 = vmatpush1.bf16.msra.mxu0 %v6731_v59 }
 0x226   :  { %3772 = vmatpush1.bf16.msra.mxu1 %v6731_v59  ;;  %3007 = vmatprep.subr.bf16.mxu0 %v6736_v29  ;;  %v6743_v59 = vld [vmem:[%s6962_s9 + $0x3f0] ss:$8 sps:$4 sm:$0xff]  }
 0x227   :  { %3773 = vmatprep.subr.bf16.mxu1 %v6736_v29  ;;  %3504 = vxpose.xlu1.c.b16.cont [7/8] (narrow) %v3360_v51, 64  ;;  %v6746_v51 = vld [vmem:[%s6962_s9 + $0x400] ss:$8 sps:$4 sm:$0xff]  }
 0x228   :  { %1938 = vxpose.xlu0.c.b16.cont [7/8] (narrow) %v1794_v31, 64  ;;  %v6751_v31 = vld [vmem:[%s6962_s9 + $0x414] ss:$8 sps:$4 sm:$0xff]  }
 0x229   :  { %3008 = vmatpush1.bf16.msra.mxu0 %v6734_v45 }
 0x22a   :  { %3774 = vmatpush1.bf16.msra.mxu1 %v6734_v45  ;;  %3009 = vmatprep.subr.bf16.mxu0 %v6739_v40 }
 0x22b   :  { %3775 = vmatprep.subr.bf16.mxu1 %v6739_v40  ;;  %3505 = vxpose.xlu1.c.b16.end [8/8] (narrow) %v3361_v61, 64  ;;  %v6757_v40 = vld [vmem:[%s6962_s9 + $0x434] ss:$8 sps:$4 sm:$0xff]  }
 0x22c   :  { %1939 = vxpose.xlu0.c.b16.end [8/8] (narrow) %v1795_v42, 64 }
 0x22d   :  { %3010 = vmatpush1.bf16.msra.mxu0 %v6737_v46 }
 0x22e   :  { %3776 = vmatpush1.bf16.msra.mxu1 %v6737_v46  ;;  %3011 = vmatprep.subr.bf16.mxu0 %v6742_v30  ;;  %v6758_v46 = vld [vmem:[%s6962_s9 + $0x440] ss:$8 sps:$4 sm:$0xff]  }
 0x22f   :  { %3777 = vmatprep.subr.bf16.mxu1 %v6742_v30  ;;  %v6763_v30 = vld [vmem:[%s6962_s9 + $0x454] ss:$8 sps:$4 sm:$0xff]  }
 0x231   :  { %3012 = vmatpush1.bf16.msra.mxu0 %v6740_v60 }
 0x232   :  { %3778 = vmatpush1.bf16.msra.mxu1 %v6740_v60  ;;  %3013 = vmatprep.subr.bf16.mxu0 %v6745_v38  ;;  %v3474_v29 = vpop.trf.xlu1 }
 0x233   :  { %3779 = vmatprep.subr.bf16.mxu1 %v6745_v38  ;;  %v1908_v22 = vpop.trf.xlu0  ;;  %v6764_v38 = vld [vmem:[%s6962_s9 + $0x460] ss:$8 sps:$4 sm:$0xff]  }
 0x235   :  { %3014 = vmatpush1.bf16.msra.mxu0 %v6743_v59 }
 0x236   :  { %3780 = vmatpush1.bf16.msra.mxu1 %v6743_v59  ;;  %3056 = vmatprep.subr.bf16.mxu0 %v6748_v48  ;;  %v3475_v49 = vpop.trf.xlu1 }
 0x237   :  { %3822 = vmatprep.subr.bf16.mxu1 %v6748_v48  ;;  %v1909_v45 = vpop.trf.xlu0  ;;  %v6769_v48 = vld [vmem:[%s6962_s9 + $0x474] ss:$8 sps:$4 sm:$0xff]  }
 0x238   :  { %3016 = vmatmul.mubr.bf16.vlgmr.msra.gmra.mrb[0].mxu0 %v1908_v22 }
 0x239   :  { %3782 = vmatmul.mubr.bf16.vlgmr.msra.gmra.mrb[0].mxu1 %v3474_v29  ;;  %3025 = vmatprep.mubr.bf16.mxu0 %v1925_v23  ;;  %v6755_v23 = vld [vmem:[%s6962_s9 + $0x430] ss:$8 sps:$4 sm:$0xff]   ;;  %v6770_v29 = vld [vmem:[%s6962_s9 + $0x480] ss:$8 sps:$4 sm:$0xff]  }
 0x23a   :  { %3057 = vmatpush1.bf16.msra.mxu0 %v6746_v51  ;;  %3791 = vmatprep.mubr.bf16.mxu1 %v3491_v52  ;;  %v6760_v52 = vld [vmem:[%s6962_s9 + $0x444] ss:$8 sps:$4 sm:$0xff]   ;;  %v3476_v42 = vpop.trf.xlu1 }
 0x23b   :  { %3823 = vmatpush1.bf16.msra.mxu1 %v6746_v51  ;;  %3058 = vmatprep.subr.bf16.mxu0 %v6751_v31  ;;  %v1910_v61 = vpop.trf.xlu0 }
 0x23c   :  { %3824 = vmatprep.subr.bf16.mxu1 %v6751_v31  ;;  %v6775_v31 = vld [vmem:[%s6962_s9 + $0x494] ss:$8 sps:$4 sm:$0xff]  }
 0x23e   :  { %3059 = vmatpush1.bf16.msra.mxu0 %v6749_v50  ;;  %v3477_v59 = vpop.trf.xlu1 }
 0x23f   :  { %3825 = vmatpush1.bf16.msra.mxu1 %v6749_v50  ;;  %3060 = vmatprep.subr.bf16.mxu0 %v6754_v47  ;;  %v1911_v60 = vpop.trf.xlu0  ;;  %v6773_v50 = vld [vmem:[%s6962_s9 + $0x490] ss:$8 sps:$4 sm:$0xff]  }
 0x240   :  { %3026 = vmatmul.mubr.bf16.gmra.mrb[4].mxu0 %v1909_v45  ;;  %3826 = vmatprep.subr.bf16.mxu1 %v6754_v47  ;;  %v6778_v47 = vld [vmem:[%s6962_s9 + $0x4a4] ss:$8 sps:$4 sm:$0xff]   ;;  %v6776_v45 = vld [vmem:[%s6962_s9 + $0x4a0] ss:$8 sps:$4 sm:$0xff]  }
 0x241   :  { %3792 = vmatmul.mubr.bf16.gmra.mrb[4].mxu1 %v3475_v49  ;;  %3035 = vmatprep.mubr.bf16.mxu0 %v1926_v41  ;;  %v6761_v41 = vld [vmem:[%s6962_s9 + $0x450] ss:$8 sps:$4 sm:$0xff]   ;;  %v6781_v49 = vld [vmem:[%s6962_s9 + $0x4b4] ss:$8 sps:$4 sm:$0xff]  }
 0x242   :  { %3061 = vmatpush1.bf16.msra.mxu0 %v6752_v44  ;;  %3801 = vmatprep.mubr.bf16.mxu1 %v3492_v39  ;;  %v6766_v39 = vld [vmem:[%s6962_s9 + $0x464] ss:$8 sps:$4 sm:$0xff]  }
 0x243   :  { %3827 = vmatpush1.bf16.msra.mxu1 %v6752_v44  ;;  %3062 = vmatprep.subr.bf16.mxu0 %v6757_v40  ;;  %v6779_v44 = vld [vmem:[%s6962_s9 + $0x4b0] ss:$8 sps:$4 sm:$0xff]  }
 0x244   :  { %3828 = vmatprep.subr.bf16.mxu1 %v6757_v40  ;;  %v6784_v40 = vld [vmem:[%s6962_s9 + $0x4c4] ss:$8 sps:$4 sm:$0xff]  }
 0x246   :  { %3063 = vmatpush1.bf16.msra.mxu0 %v6755_v23 }
 0x247   :  { %3829 = vmatpush1.bf16.msra.mxu1 %v6755_v23  ;;  %3064 = vmatprep.subr.bf16.mxu0 %v6760_v52 }
 0x248   :  { %3036 = vmatmul.mubr.bf16.gmra.mrb[8].mxu0 %v1910_v61  ;;  %3830 = vmatprep.subr.bf16.mxu1 %v6760_v52  ;;  %v6782_v61 = vld [vmem:[%s6962_s9 + $0x4c0] ss:$8 sps:$4 sm:$0xff]  }
 0x249   :  { %3802 = vmatmul.mubr.bf16.gmra.mrb[8].mxu1 %v3476_v42  ;;  %3045 = vmatprep.mubr.bf16.mxu0 %v1927_v53  ;;  %v6767_v53 = vld [vmem:[%s6962_s9 + $0x470] ss:$8 sps:$4 sm:$0xff]   ;;  %v6787_v42 = vld [vmem:[%s6962_s9 + $0x4d4] ss:$8 sps:$4 sm:$0xff]  }
 0x24a   :  { %3065 = vmatpush1.bf16.msra.mxu0 %v6758_v46  ;;  %3811 = vmatprep.mubr.bf16.mxu1 %v3493_v43  ;;  %v6772_v43 = vld [vmem:[%s6962_s9 + $0x484] ss:$8 sps:$4 sm:$0xff]  }
 0x24b   :  { %3831 = vmatpush1.bf16.msra.mxu1 %v6758_v46  ;;  %3066 = vmatprep.subr.bf16.mxu0 %v6763_v30  ;;  %v6785_v46 = vld [vmem:[%s6962_s9 + $0x4d0] ss:$8 sps:$4 sm:$0xff]  }
 0x24c   :  { %3832 = vmatprep.subr.bf16.mxu1 %v6763_v30 }
 0x24e   :  { %3067 = vmatpush1.bf16.msra.mxu0 %v6761_v41 }
 0x24f   :  { %3833 = vmatpush1.bf16.msra.mxu1 %v6761_v41  ;;  %3068 = vmatprep.subr.bf16.mxu0 %v6766_v39 }
 0x250   :  { %3834 = vmatprep.subr.bf16.mxu1 %v6766_v39  ;;  %3046 = vmatmul.mubr.bf16.gmra.mrb[12].mxu0 %v1911_v60  ;;  %v6790_v39 = vld [vmem:[%s6962_s9 + $0x4e4] ss:$8 sps:$4 sm:$0xff]   ;;  %v6788_v60 = vld [vmem:[%s6962_s9 + $0x4e0] ss:$8 sps:$4 sm:$0xff]  }
 0x251   :  { %3812 = vmatmul.mubr.bf16.gmra.mrb[12].mxu1 %v3477_v59 }
 0x252   :  { %3069 = vmatpush1.bf16.msra.mxu0 %v6764_v38 }
 0x253   :  { %3835 = vmatpush1.bf16.msra.mxu1 %v6764_v38  ;;  %3070 = vmatprep.subr.bf16.mxu0 %v6769_v48  ;;  %v6793_v38 = vld [vmem:[%s6962_s9 + $0x4f4] ss:$8 sps:$4 sm:$0xff]  }
 0x254   :  { %3836 = vmatprep.subr.bf16.mxu1 %v6769_v48 }
 0x255   :  { %v3522_v22 = vpop.trf.xlu1 }
 0x256   :  { %3071 = vmatpush1.bf16.msra.mxu0 %v6767_v53  ;;  %v1956_v51 = vpop.trf.xlu0  ;;  %3854 = vmatprep.mubr.bf16.mxu1 %v3522_v22 }
 0x257   :  { %3837 = vmatpush1.bf16.msra.mxu1 %v6767_v53  ;;  %3072 = vmatprep.subr.bf16.mxu0 %v6772_v43  ;;  %v6791_v53 = vld [vmem:[%s6962_s9 + $0x4f0] ss:$8 sps:$4 sm:$0xff]  }
 0x258   :  { %3838 = vmatprep.subr.bf16.mxu1 %v6772_v43  ;;  %3088 = vmatprep.mubr.bf16.mxu0 %v1956_v51 }
 0x259   :  { %v3523_v52 = vpop.trf.xlu1 }
 0x25a   :  { %3073 = vmatpush1.bf16.msra.mxu0 %v6770_v29  ;;  %v1957_v23 = vpop.trf.xlu0 }
 0x25b   :  { %3839 = vmatpush1.bf16.msra.mxu1 %v6770_v29  ;;  %3074 = vmatprep.subr.bf16.mxu0 %v6775_v31 }
 0x25c   :  { %3840 = vmatprep.subr.bf16.mxu1 %v6775_v31 }
 0x25d   :  { %v3524_v41 = vpop.trf.xlu1 }
 0x25e   :  { %3075 = vmatpush1.bf16.msra.mxu0 %v6773_v50  ;;  %v1958_v30 = vpop.trf.xlu0 }
 0x25f   :  { %3841 = vmatpush1.bf16.msra.mxu1 %v6773_v50  ;;  %3076 = vmatprep.subr.bf16.mxu0 %v6778_v47 }
 0x260   :  { %3842 = vmatprep.subr.bf16.mxu1 %v6778_v47 }
 0x261   :  { %v3525_v48 = vpop.trf.xlu1 }
 0x262   :  { %3077 = vmatpush1.bf16.msra.mxu0 %v6776_v45  ;;  %v1959_v59 = vpop.trf.xlu0 }
 0x263   :  { %3843 = vmatpush1.bf16.msra.mxu1 %v6776_v45  ;;  %3078 = vmatprep.subr.bf16.mxu0 %v6781_v49 }
 0x264   :  { %3844 = vmatprep.subr.bf16.mxu1 %v6781_v49  ;;  %v8093_v49 = vld [vmem:[%s6972_s17] sm:$0x3] }
 0x265   :  { %8616 = vst [vmem:[#allocation123_spill] sm:$0xff] %v8093_v49 }
 0x266   :  { %3079 = vmatpush1.bf16.msra.mxu0 %v6779_v44 }
 0x267   :  { %3845 = vmatpush1.bf16.msra.mxu1 %v6779_v44  ;;  %3080 = vmatprep.subr.bf16.mxu0 %v6784_v40  ;;  %v8096_v44 = vld [vmem:[%s6972_s17 + $0x2] sm:$0x3] }
 0x268   :  { %3846 = vmatprep.subr.bf16.mxu1 %v6784_v40  ;;  %8617 = vst [vmem:[#allocation124_spill] sm:$0xff] %v8096_v44  ;;  %v8099_v40 = vld [vmem:[%s6972_s17 + $0x4] sm:$0x3] }
 0x269   :  { %8618 = vst [vmem:[#allocation125_spill] sm:$0xff] %v8099_v40 }
 0x26a   :  { %3081 = vmatpush1.bf16.msra.mxu0 %v6782_v61 }
 0x26b   :  { %3847 = vmatpush1.bf16.msra.mxu1 %v6782_v61  ;;  %3082 = vmatprep.subr.bf16.mxu0 %v6787_v42  ;;  %v8108_v61 = vld [vmem:[%s6972_s17 + $0xa] sm:$0x3] }
 0x26c   :  { %3848 = vmatprep.subr.bf16.mxu1 %v6787_v42  ;;  %8621 = vst [vmem:[#allocation128_spill] sm:$0xff] %v8108_v61  ;;  %v8111_v42 = vld [vmem:[%s6972_s17 + $0xc] sm:$0x3] }
 0x26d   :  { %8622 = vst [vmem:[#allocation129_spill] sm:$0xff] %v8111_v42 }
 0x26e   :  { %3083 = vmatpush1.bf16.msra.mxu0 %v6785_v46 }
 0x26f   :  { %3849 = vmatpush1.bf16.msra.mxu1 %v6785_v46  ;;  %3084 = vmatprep.subr.bf16.mxu0 %v6790_v39  ;;  %v8114_v46 = vld [vmem:[%s6972_s17 + $0xe] sm:$0x3] }
 0x270   :  { %3850 = vmatprep.subr.bf16.mxu1 %v6790_v39  ;;  %8623 = vst [vmem:[#allocation130_spill] sm:$0xff] %v8114_v46 }
 0x272   :  { %3085 = vmatpush1.bf16.msra.mxu0 %v6788_v60 }
 0x273   :  { %3851 = vmatpush1.bf16.msra.mxu1 %v6788_v60  ;;  %3086 = vmatprep.subr.bf16.mxu0 %v6793_v38 }
 0x274   :  { %3852 = vmatprep.subr.bf16.mxu1 %v6793_v38  ;;  %v3895_v38 = vld [vmem:[%s6967_s13] sm:$0x3] }
 0x275   :  { %v3506_v22 = vpop.trf.xlu1 }
 0x276   :  { %3087 = vmatpush1.bf16.msra.mxu0 %v6791_v53  ;;  %v1940_v43 = vpop.trf.xlu0 }
 0x277   :  { %3853 = vmatpush1.bf16.msra.mxu1 %v6791_v53 }
 0x279   :  { %3089 = vmatmul.mubr.bf16.vlgmr.msra.gmra.mrb[0].mxu0 %v1940_v43  ;;  %v3507_v51 = vpop.trf.xlu1 }
 0x27a   :  { %3855 = vmatmul.mubr.bf16.vlgmr.msra.gmra.mrb[0].mxu1 %v3506_v22  ;;  %3098 = vmatprep.mubr.bf16.mxu0 %v1957_v23  ;;  %v1941_v29 = vpop.trf.xlu0  ;;  %v8102_v23 = vld [vmem:[%s6972_s17 + $0x6] sm:$0x3] }
 0x27b   :  { %3864 = vmatprep.mubr.bf16.mxu1 %v3523_v52  ;;  %8619 = vst [vmem:[#allocation126_spill] sm:$0xff] %v8102_v23  ;;  %v8105_v52 = vld [vmem:[%s6972_s17 + $0x8] sm:$0x3] }
 0x27c   :  { %8620 = vst [vmem:[#allocation127_spill] sm:$0xff] %v8105_v52 }
 0x27d   :  { %v3508_v50 = vpop.trf.xlu1 }
 0x27e   :  { %v1942_v31 = vpop.trf.xlu0 }
 0x281   :  { %3099 = vmatmul.mubr.bf16.gmra.mrb[4].mxu0 %v1941_v29  ;;  %v3509_v45 = vpop.trf.xlu1 }
 0x282   :  { %3865 = vmatmul.mubr.bf16.gmra.mrb[4].mxu1 %v3507_v51  ;;  %3108 = vmatprep.mubr.bf16.mxu0 %v1958_v30  ;;  %v1943_v47 = vpop.trf.xlu0  ;;  %v8117_v30 = vld [vmem:[%s6972_s17 + $0x10] sm:$0x3] }
 0x283   :  { %3874 = vmatprep.mubr.bf16.mxu1 %v3524_v41  ;;  %8624 = vst [vmem:[#allocation131_spill] sm:$0xff] %v8117_v30  ;;  %v3897_v41 = vlaneseq }
 0x285   :  { %v8119_v39 = vshrl.u32 %v3897_v41, 7 }
 0x287   :  { %8625 = vst [vmem:[#allocation132_spill] sm:$0xff] %v8119_v39  ;;  %v8122_v60 = vsub.s32 0, %v8119_v39 }
 0x289   :  { %3109 = vmatmul.mubr.bf16.gmra.mrb[8].mxu0 %v1942_v31  ;;  %8626 = vst [vmem:[#allocation133_spill] sm:$0xff] %v8122_v60 }
 0x28a   :  { %3875 = vmatmul.mubr.bf16.gmra.mrb[8].mxu1 %v3508_v50  ;;  %3118 = vmatprep.mubr.bf16.mxu0 %v1959_v59  ;;  %v8126_v59 = vsub.s32 1, %v8119_v39 }
 0x28b   :  { %3884 = vmatprep.mubr.bf16.mxu1 %v3525_v48  ;;  %v8129_v48 = vrot.slane %v3895_v38, %v8122_v60 }
 0x28c   :  { %8627 = vst [vmem:[#allocation134_spill] sm:$0xff] %v8126_v59  ;;  %v8132_v53 = vrot.slane %v3895_v38, %v8126_v59 }
 0x291   :  { %3119 = vmatmul.mubr.bf16.gmra.mrb[12].mxu0 %v1943_v47 }
 0x292   :  { %3885 = vmatmul.mubr.bf16.gmra.mrb[12].mxu1 %v3509_v45 }
 0x34c   :  { %v3090_v43 = vpop.f32.mrb[0].mxu0 }
 0x34d   :  { %v3907_v22 = vadd.f32 %v8129_v48, %v3090_v43  ;;  %v3856_v29 = vpop.f32.mrb[0].mxu1  ;;  %v3092_v51 = vpop.f32.mrb[1].mxu0 }
 0x34e   :  { %v3923_v31 = vadd.f32 %v8129_v48, %v3856_v29  ;;  %v3908_v50 = vadd.f32 %v8132_v53, %v3092_v51  ;;  %v3858_v47 = vpop.f32.mrb[1].mxu1  ;;  %v3094_v45 = vpop.f32.mrb[2].mxu0 }
 0x34f   :  { %v3939_v41 = vmax.f32 %v3907_v22, 0.0  ;;  %v3924_v37 = vadd.f32 %v8132_v53, %v3858_v47  ;;  %v3909_v21 = vadd.f32 %v8129_v48, %v3094_v45  ;;  %v3860_v28 = vpop.f32.mrb[2].mxu1  ;;  %v3096_v58 = vpop.f32.mrb[3].mxu0 }
 0x350   :  { %v3955_v38 = vmax.f32 %v3923_v31, 0.0  ;;  %v3940_v36 = vmax.f32 %v3908_v50, 0.0  ;;  %v3925_v20 = vadd.f32 %v8129_v48, %v3860_v28  ;;  %v3910_v43 = vadd.f32 %v8132_v53, %v3096_v58  ;;  %v3862_v27 = vpop.f32.mrb[3].mxu1 }
 0x351   :  { %v8141_v57 = vmin.f32 %v3939_v41, 6.0  ;;  %v3956_v29 = vmax.f32 %v3924_v37, 0.0  ;;  %v3941_v51 = vmax.f32 %v3909_v21, 0.0  ;;  %v3926_v35 = vadd.f32 %v8132_v53, %v3862_v27 }
 0x352   :  { %v8144_v22 = vmin.f32 %v3955_v38, 6.0  ;;  %v8146_v47 = vmin.f32 %v3940_v36, 6.0  ;;  %v3957_v45 = vmax.f32 %v3925_v20, 0.0  ;;  %v3942_v19 = vmax.f32 %v3910_v43, 0.0 }
 0x353   :  { %v8148_v26 = vmin.f32 %v3956_v29, 6.0  ;;  %v8150_v31 = vmin.f32 %v3941_v51, 6.0  ;;  %v3958_v28 = vmax.f32 %v3926_v35, 0.0 }
 0x354   :  { %v8152_v50 = vmin.f32 %v3957_v45, 6.0  ;;  %v8154_v58 = vmin.f32 %v3942_v19, 6.0  ;;  %v3100_v41 = vpop.f32.mrb[4].mxu0 }
 0x355   :  { %v8156_v37 = vmin.f32 %v3958_v28, 6.0  ;;  %v3911_v21 = vadd.f32 %v8129_v48, %v3100_v41  ;;  %v3866_v27 = vpop.f32.mrb[4].mxu1  ;;  %v3102_v38 = vpop.f32.mrb[5].mxu0 }
 0x356   :  { %v3927_v36 = vadd.f32 %v8129_v48, %v3866_v27  ;;  %v3912_v20 = vadd.f32 %v8132_v53, %v3102_v38  ;;  %v3868_v43 = vpop.f32.mrb[5].mxu1  ;;  %v3104_v29 = vpop.f32.mrb[6].mxu0 }
 0x357   :  { %v3943_v51 = vmax.f32 %v3911_v21, 0.0  ;;  %v3928_v35 = vadd.f32 %v8132_v53, %v3868_v43  ;;  %v3913_v45 = vadd.f32 %v8129_v48, %v3104_v29  ;;  %v3870_v19 = vpop.f32.mrb[6].mxu1  ;;  %v3106_v56 = vpop.f32.mrb[7].mxu0 }
 0x358   :  { %v3959_v34 = vmax.f32 %v3927_v36, 0.0  ;;  %v3944_v28 = vmax.f32 %v3912_v20, 0.0  ;;  %v3929_v18 = vadd.f32 %v8129_v48, %v3870_v19  ;;  %v3914_v41 = vadd.f32 %v8132_v53, %v3106_v56  ;;  %v3872_v25 = vpop.f32.mrb[7].mxu1 }
 0x359   :  { %v8165_v55 = vmin.f32 %v3943_v51, 6.0  ;;  %v3960_v27 = vmax.f32 %v3928_v35, 0.0  ;;  %v3945_v38 = vmax.f32 %v3913_v45, 0.0  ;;  %v3930_v33 = vadd.f32 %v8132_v53, %v3872_v25 }
 0x35a   :  { %v8168_v21 = vmin.f32 %v3959_v34, 6.0  ;;  %v8170_v43 = vmin.f32 %v3944_v28, 6.0  ;;  %v3961_v29 = vmax.f32 %v3929_v18, 0.0  ;;  %v3946_v63 = vmax.f32 %v3914_v41, 0.0 }
 0x35b   :  { %v8172_v24 = vmin.f32 %v3960_v27, 6.0  ;;  %v8174_v36 = vmin.f32 %v3945_v38, 6.0  ;;  %v3962_v20 = vmax.f32 %v3930_v33, 0.0 }
 0x35c   :  { %v8176_v19 = vmin.f32 %v3961_v29, 6.0  ;;  %v8178_v56 = vmin.f32 %v3946_v63, 6.0  ;;  %v3110_v51 = vpop.f32.mrb[8].mxu0 }
 0x35d   :  { %v8180_v35 = vmin.f32 %v3962_v20, 6.0  ;;  %v3915_v25 = vadd.f32 %v8129_v48, %v3110_v51  ;;  %v3876_v34 = vpop.f32.mrb[8].mxu1  ;;  %v3112_v45 = vpop.f32.mrb[9].mxu0 }
 0x35e   :  { %v3931_v28 = vadd.f32 %v8129_v48, %v3876_v34  ;;  %v3916_v18 = vadd.f32 %v8132_v53, %v3112_v45  ;;  %v3878_v41 = vpop.f32.mrb[9].mxu1  ;;  %v3114_v27 = vpop.f32.mrb[10].mxu0 }
 0x35f   :  { %v3947_v38 = vmax.f32 %v3915_v25, 0.0  ;;  %v3932_v33 = vadd.f32 %v8132_v53, %v3878_v41  ;;  %v3917_v29 = vadd.f32 %v8129_v48, %v3114_v27  ;;  %v3880_v63 = vpop.f32.mrb[10].mxu1  ;;  %v3116_v54 = vpop.f32.mrb[11].mxu0 }
 0x360   :  { %v3963_v32 = vmax.f32 %v3931_v28, 0.0  ;;  %v3948_v20 = vmax.f32 %v3916_v18, 0.0  ;;  %v3933_v62 = vadd.f32 %v8129_v48, %v3880_v63  ;;  %v3918_v51 = vadd.f32 %v8132_v53, %v3116_v54  ;;  %v3882_v39 = vpop.f32.mrb[11].mxu1 }
 0x361   :  { %v3979_v30 = vmin.f32 %v3947_v38, 6.0  ;;  %v3964_v34 = vmax.f32 %v3932_v33, 0.0  ;;  %v3949_v46 = vmax.f32 %v3917_v29, 0.0  ;;  %v3934_v45 = vadd.f32 %v8132_v53, %v3882_v39 }
 0x362   :  { %v8190_v42 = vmin.f32 %v3963_v32, 6.0  ;;  %v3980_v25 = vmin.f32 %v3948_v20, 6.0  ;;  %v3965_v41 = vmax.f32 %v3933_v62, 0.0  ;;  %v3950_v61 = vmax.f32 %v3918_v51, 0.0 }
 0x363   :  { %v8192_v27 = vmin.f32 %v3964_v34, 6.0  ;;  %v3981_v52 = vmin.f32 %v3949_v46, 6.0  ;;  %v3966_v28 = vmax.f32 %v3934_v45, 0.0 }
 0x364   :  { %v8194_v18 = vmin.f32 %v3965_v41, 6.0  ;;  %v3982_v63 = vmin.f32 %v3950_v61, 6.0  ;;  %v3120_v23 = vpop.f32.mrb[12].mxu0 }
 0x365   :  { %v3998_v54 = vmin.f32 %v3966_v28, 6.0  ;;  %v3919_v38 = vadd.f32 %v8129_v48, %v3120_v23  ;;  %v3886_v33 = vpop.f32.mrb[12].mxu1  ;;  %v3122_v29 = vpop.f32.mrb[13].mxu0 }
 0x366   :  { %v3935_v39 = vadd.f32 %v8129_v48, %v3886_v33  ;;  %v3920_v32 = vadd.f32 %v8132_v53, %v3122_v29  ;;  %v3888_v20 = vpop.f32.mrb[13].mxu1  ;;  %v3124_v62 = vpop.f32.mrb[14].mxu0 }
 0x367   :  { %v3951_v51 = vmax.f32 %v3919_v38, 0.0  ;;  %v3936_v34 = vadd.f32 %v8132_v53, %v3888_v20  ;;  %v3921_v46 = vadd.f32 %v8129_v48, %v3124_v62  ;;  %v3890_v45 = vpop.f32.mrb[14].mxu1  ;;  %v3126_v41 = vpop.f32.mrb[15].mxu0 }
 0x368   :  { %v3967_v61 = vmax.f32 %v3935_v39, 0.0  ;;  %v3952_v40 = vmax.f32 %v3920_v32, 0.0  ;;  %v3937_v28 = vadd.f32 %v8129_v48, %v3890_v45  ;;  %v3922_v23 = vadd.f32 %v8132_v53, %v3126_v41  ;;  %v3892_v59 = vpop.f32.mrb[15].mxu1 }
 0x369   :  { %v3983_v44 = vmin.f32 %v3951_v51, 6.0  ;;  %v3968_v33 = vmax.f32 %v3936_v34, 0.0  ;;  %v3953_v49 = vmax.f32 %v3921_v46, 0.0  ;;  %v3938_v29 = vadd.f32 %v8132_v53, %v3892_v59 }
 0x36a   :  { %v3999_v60 = vmin.f32 %v3967_v61, 6.0  ;;  %v3984_v38 = vmin.f32 %v3952_v40, 6.0  ;;  %v3969_v17 = vmax.f32 %v3937_v28, 0.0  ;;  %v3954_v20 = vmax.f32 %v3922_v23, 0.0 }
 0x36b   :  { %v4000_v16 = vmin.f32 %v3968_v33, 6.0  ;;  %v3985_v62 = vmin.f32 %v3953_v49, 6.0  ;;  %v3970_v15 = vmax.f32 %v3938_v29, 0.0  ;;  %v4035_v48 = vpack.c.bf16 %v8154_v58, %v8146_v47 }
 0x36c   :  { %v4001_v14 = vmin.f32 %v3969_v17, 6.0  ;;  %v3986_v39 = vmin.f32 %v3954_v20, 6.0  ;;  %v4034_v51 = vpack.c.bf16 %v8150_v31, %v8141_v57  ;;  %v4037_v34 = vpack.c.bf16 %v8178_v56, %v8170_v43 }
 0x36d   :  { %v4002_v32 = vmin.f32 %v3970_v15, 6.0 }
 0x36e   :  { %6887 = dma.done.wait [#allocation10], 2304 }
 0x36f   :  { %6888 = vsyncadd [#allocation10], 4294964992  ;;  %4050 = vmatprep.subr.bf16.mxu0 %v4035_v48  ;;  %v4036_v49 = vpack.c.bf16 %v8174_v36, %v8165_v55  ;;  %v4039_v17 = vpack.c.bf16 %v3982_v63, %v3980_v25  ;;  %v6940_v40 = vmov 0   ;;  %v4038_v15 = vpack.c.bf16 %v3981_v52, %v3979_v30 }
 0x370   :  { %4051 = vmatpush1.bf16.msra.mxu0 %v4034_v51  ;;  %4082 = vmatprep.mubr.bf16.mxu0 %v6940_v40  ;;  %v4041_v59 = vpack.c.bf16 %v3986_v39, %v3984_v38  ;;  %v4040_v57 = vpack.c.bf16 %v3985_v62, %v3983_v44  ;;  %v4043_v53 = vpack.c.bf16 %v8156_v37, %v8148_v26 }
 0x371   :  { %4052 = vmatprep.subr.bf16.mxu0 %v4037_v34  ;;  %v4042_v47 = vpack.c.bf16 %v8152_v50, %v8144_v22  ;;  %v4045_v55 = vpack.c.bf16 %v8180_v35, %v8172_v24  ;;  %v4044_v52 = vpack.c.bf16 %v8176_v19, %v8168_v21  ;;  %v4047_v30 = vpack.c.bf16 %v3998_v54, %v8192_v27 }
 0x372   :  { %v4046_v44 = vpack.c.bf16 %v8194_v18, %v8190_v42  ;;  %v4049_v26 = vpack.c.bf16 %v4002_v32, %v4000_v16  ;;  %v4048_v31 = vpack.c.bf16 %v4001_v14, %v3999_v60  ;;  %v8634_v16 = vld [vmem:[#allocation124_spill] sm:$0xff]  ;;  %v8635_v42 = vld [vmem:[#allocation134_spill] sm:$0xff] }
 0x373   :  { %v4290_v22 = vrot.slane %v8634_v16, %v8635_v42 }
 0x374   :  { %4053 = vmatpush1.bf16.msra.mxu0 %v4036_v49 }
 0x375   :  { %4054 = vmatprep.subr.bf16.mxu0 %v4039_v17  ;;  %v8636_v17 = vld [vmem:[#allocation125_spill] sm:$0xff] }
 0x378   :  { %4055 = vmatpush1.bf16.msra.mxu0 %v4038_v15 }
 0x379   :  { %4056 = vmatprep.subr.bf16.mxu0 %v4041_v59 }
 0x37c   :  { %4057 = vmatpush1.bf16.msra.mxu0 %v4040_v57  ;;  %v4317_v57 = vrot.slane %v8636_v17, %v8635_v42 }
 0x37d   :  { %4058 = vmatprep.subr.bf16.mxu0 %v4043_v53 }
 0x380   :  { %4059 = vmatpush1.bf16.msra.mxu0 %v4042_v47 }
 0x381   :  { %4060 = vmatprep.subr.bf16.mxu0 %v4045_v55 }
 0x384   :  { %4061 = vmatpush1.bf16.msra.mxu0 %v4044_v52 }
 0x385   :  { %4062 = vmatprep.subr.bf16.mxu0 %v4047_v30 }
 0x388   :  { %4063 = vmatpush1.bf16.msra.mxu0 %v4046_v44 }
 0x389   :  { %4064 = vmatprep.subr.bf16.mxu0 %v4049_v26 }
 0x38c   :  { %4065 = vmatpush1.bf16.msra.mxu0 %v4048_v31 }
 0x38f   :  { %4083 = vmatmul.mubr.bf16.vlgmr.msra.gmra.mrb[16].mxu0 %v7115_v0  ;;  %v8628_v0 = vld [vmem:[#allocation51_spill] sm:$0xff] }
 0x390   :  { %4092 = vmatprep.mubr.bf16.mxu0 %v6940_v40 }
 0x397   :  { %4093 = vmatmul.mubr.bf16.gmra.mrb[20].mxu0 %v7118_v1  ;;  %v8629_v1 = vld [vmem:[#allocation52_spill] sm:$0xff] }
 0x398   :  { %4102 = vmatprep.mubr.bf16.mxu0 %v6940_v40 }
 0x39f   :  { %4103 = vmatmul.mubr.bf16.gmra.mrb[24].mxu0 %v7121_v2  ;;  %v8630_v2 = vld [vmem:[#allocation53_spill] sm:$0xff] }
 0x3a0   :  { %4112 = vmatprep.mubr.bf16.mxu0 %v6940_v40 }
 0x3a7   :  { %4113 = vmatmul.mubr.bf16.gmra.mrb[28].mxu0 %v7124_v3  ;;  %v8631_v3 = vld [vmem:[#allocation54_spill] sm:$0xff] }
 0x3a8   :  { %4122 = vmatprep.mubr.bf16.mxu0 %v6940_v40 }
 0x3af   :  { %4123 = vmatmul.mubr.bf16.gmra.mrb[32].mxu0 %v7127_v4 }
 0x3b0   :  { %4132 = vmatprep.mubr.bf16.mxu0 %v6940_v40 }
 0x3b7   :  { %4133 = vmatmul.mubr.bf16.gmra.mrb[36].mxu0 %v7130_v5 }
 0x3b8   :  { %4142 = vmatprep.mubr.bf16.mxu0 %v6940_v40 }
 0x3bf   :  { %4143 = vmatmul.mubr.bf16.gmra.mrb[40].mxu0 %v7133_v6 }
 0x3c0   :  { %4152 = vmatprep.mubr.bf16.mxu0 %v6940_v40 }
 0x3c7   :  { %4153 = vmatmul.mubr.bf16.gmra.mrb[44].mxu0 %v7136_v7 }
 0x3c8   :  { %4162 = vmatprep.mubr.bf16.mxu0 %v6940_v40 }
 0x3cf   :  { %4163 = vmatmul.mubr.bf16.gmra.mrb[48].mxu0 %v7139_v8 }
 0x3d0   :  { %4172 = vmatprep.mubr.bf16.mxu0 %v6940_v40 }
 0x3d7   :  { %4173 = vmatmul.mubr.bf16.gmra.mrb[52].mxu0 %v7142_v9 }
 0x3d8   :  { %4182 = vmatprep.mubr.bf16.mxu0 %v6940_v40 }
 0x3df   :  { %4183 = vmatmul.mubr.bf16.gmra.mrb[56].mxu0 %v7145_v10 }
 0x3e0   :  { %4192 = vmatprep.mubr.bf16.mxu0 %v6940_v40 }
 0x3e7   :  { %4193 = vmatmul.mubr.bf16.gmra.mrb[60].mxu0 %v7148_v11 }
 0x3e8   :  { %4202 = vmatprep.mubr.bf16.mxu0 %v6940_v40 }
 0x3ef   :  { %4203 = vmatmul.mubr.bf16.gmra.mrb[64].mxu0 %v7151_v12  ;;  %v8632_v12 = vld [vmem:[#allocation133_spill] sm:$0xff] }
 0x3f0   :  { %4212 = vmatprep.mubr.bf16.mxu0 %v6940_v40  ;;  %v4286_v24 = vrot.slane %v8634_v16, %v8632_v12  ;;  %v4313_v15 = vrot.slane %v8636_v17, %v8632_v12 }
 0x3f7   :  { %4213 = vmatmul.mubr.bf16.gmra.mrb[68].mxu0 %v7154_v13  ;;  %v8633_v13 = vld [vmem:[#allocation123_spill] sm:$0xff] }
 0x3f8   :  { %4222 = vmatprep.mubr.bf16.mxu0 %v6940_v40  ;;  %v4267_v14 = vrot.slane %v8633_v13, %v8632_v12  ;;  %v4271_v60 = vrot.slane %v8633_v13, %v8635_v42 }
 0x3ff   :  { %4223 = vmatmul.mubr.bf16.gmra.mrb[72].mxu0 %v8628_v0 }
 0x400   :  { %4232 = vmatprep.mubr.bf16.mxu0 %v6940_v40 }
 0x407   :  { %4233 = vmatmul.mubr.bf16.gmra.mrb[76].mxu0 %v8629_v1 }
 0x408   :  { %4242 = vmatprep.mubr.bf16.mxu0 %v6940_v40 }
 0x40f   :  { %4243 = vmatmul.mubr.bf16.gmra.mrb[80].mxu0 %v8630_v2 }
 0x410   :  { %4252 = vmatprep.mubr.bf16.mxu0 %v6940_v40 }
 0x417   :  { %4253 = vmatmul.mubr.bf16.gmra.mrb[84].mxu0 %v8631_v3 }
 0x462   :  { %v4084_v4 = vpop.f32.mrb[16].mxu0 }
 0x463   :  { %v4086_v5 = vpop.f32.mrb[17].mxu0  ;;  %v4274_v58 = vmul.f32 %v4267_v14, %v4084_v4 }
 0x464   :  { %v4088_v6 = vpop.f32.mrb[18].mxu0  ;;  %v4275_v43 = vmul.f32 %v4271_v60, %v4086_v5 }
 0x465   :  { %v4090_v7 = vpop.f32.mrb[19].mxu0  ;;  %v4276_v56 = vmul.f32 %v4267_v14, %v4088_v6 }
 0x466   :  { %v4277_v18 = vmul.f32 %v4271_v60, %v4090_v7 }
 0x46a   :  { %v4094_v8 = vpop.f32.mrb[20].mxu0 }
 0x46b   :  { %v4096_v9 = vpop.f32.mrb[21].mxu0  ;;  %v4278_v61 = vmul.f32 %v4267_v14, %v4094_v8 }
 0x46c   :  { %v4098_v10 = vpop.f32.mrb[22].mxu0  ;;  %v4279_v33 = vmul.f32 %v4271_v60, %v4096_v9 }
 0x46d   :  { %v4100_v11 = vpop.f32.mrb[23].mxu0  ;;  %v4280_v20 = vmul.f32 %v4267_v14, %v4098_v10 }
 0x46e   :  { %v4281_v48 = vmul.f32 %v4271_v60, %v4100_v11 }
 0x472   :  { %v4104_v50 = vpop.f32.mrb[24].mxu0 }
 0x473   :  { %v4293_v37 = vmul.f32 %v4286_v24, %v4104_v50  ;;  %v4106_v21 = vpop.f32.mrb[25].mxu0 }
 0x474   :  { %v4294_v36 = vmul.f32 %v4290_v22, %v4106_v21  ;;  %v4108_v19 = vpop.f32.mrb[26].mxu0 }
 0x475   :  { %v4301_v35 = vadd.f32 %v4293_v37, %v4274_v58  ;;  %v4295_v25 = vmul.f32 %v4286_v24, %v4108_v19  ;;  %v4110_v27 = vpop.f32.mrb[27].mxu0 }
 0x476   :  { %v4302_v63 = vadd.f32 %v4294_v36, %v4275_v43  ;;  %v4296_v54 = vmul.f32 %v4290_v22, %v4110_v27 }
 0x477   :  { %v4303_v46 = vadd.f32 %v4295_v25, %v4276_v56 }
 0x478   :  { %v4304_v45 = vadd.f32 %v4296_v54, %v4277_v18 }
 0x47a   :  { %v4114_v41 = vpop.f32.mrb[28].mxu0 }
 0x47b   :  { %v4297_v28 = vmul.f32 %v4286_v24, %v4114_v41  ;;  %v4116_v23 = vpop.f32.mrb[29].mxu0 }
 0x47c   :  { %v4298_v29 = vmul.f32 %v4290_v22, %v4116_v23  ;;  %v4118_v38 = vpop.f32.mrb[30].mxu0 }
 0x47d   :  { %v4305_v62 = vadd.f32 %v4297_v28, %v4278_v61  ;;  %v4299_v39 = vmul.f32 %v4286_v24, %v4118_v38  ;;  %v4120_v32 = vpop.f32.mrb[31].mxu0  ;;  %v8637_v24 = vld [vmem:[#allocation126_spill] sm:$0xff] }
 0x47e   :  { %v4306_v51 = vadd.f32 %v4298_v29, %v4279_v33  ;;  %v4300_v34 = vmul.f32 %v4290_v22, %v4120_v32  ;;  %v4340_v60 = vrot.slane %v8637_v24, %v8632_v12  ;;  %v4344_v50 = vrot.slane %v8637_v24, %v8635_v42 }
 0x47f   :  { %v4307_v49 = vadd.f32 %v4299_v39, %v4280_v20 }
 0x480   :  { %v4308_v59 = vadd.f32 %v4300_v34, %v4281_v48 }
 0x482   :  { %v4124_v53 = vpop.f32.mrb[32].mxu0 }
 0x483   :  { %v4320_v47 = vmul.f32 %v4313_v15, %v4124_v53  ;;  %v4126_v55 = vpop.f32.mrb[33].mxu0 }
 0x484   :  { %v4321_v52 = vmul.f32 %v4317_v57, %v4126_v55  ;;  %v4128_v30 = vpop.f32.mrb[34].mxu0 }
 0x485   :  { %v4328_v44 = vadd.f32 %v4320_v47, %v4301_v35  ;;  %v4322_v26 = vmul.f32 %v4313_v15, %v4128_v30  ;;  %v4130_v31 = vpop.f32.mrb[35].mxu0 }
 0x486   :  { %v4329_v0 = vadd.f32 %v4321_v52, %v4302_v63  ;;  %v4323_v1 = vmul.f32 %v4317_v57, %v4130_v31 }
 0x487   :  { %v4330_v2 = vadd.f32 %v4322_v26, %v4303_v46 }
 0x488   :  { %v4331_v3 = vadd.f32 %v4323_v1, %v4304_v45 }
 0x48a   :  { %v4134_v4 = vpop.f32.mrb[36].mxu0 }
 0x48b   :  { %v4324_v5 = vmul.f32 %v4313_v15, %v4134_v4  ;;  %v4136_v6 = vpop.f32.mrb[37].mxu0 }
 0x48c   :  { %v4325_v7 = vmul.f32 %v4317_v57, %v4136_v6  ;;  %v4138_v8 = vpop.f32.mrb[38].mxu0 }
 0x48d   :  { %v4332_v9 = vadd.f32 %v4324_v5, %v4305_v62  ;;  %v4326_v10 = vmul.f32 %v4313_v15, %v4138_v8  ;;  %v4140_v11 = vpop.f32.mrb[39].mxu0  ;;  %v8638_v62 = vld [vmem:[#allocation127_spill] sm:$0xff]  ;;  %v8639_v8 = vld [vmem:[#allocation128_spill] sm:$0xff] }
 0x48e   :  { %v4333_v13 = vadd.f32 %v4325_v7, %v4306_v51  ;;  %v4327_v14 = vmul.f32 %v4317_v57, %v4140_v11  ;;  %v4367_v39 = vrot.slane %v8638_v62, %v8632_v12  ;;  %v4371_v48 = vrot.slane %v8638_v62, %v8635_v42 }
 0x48f   :  { %v4334_v16 = vadd.f32 %v4326_v10, %v4307_v49  ;;  %v4398_v11 = vrot.slane %v8639_v8, %v8635_v42 }
 0x490   :  { %v4335_v22 = vadd.f32 %v4327_v14, %v4308_v59 }
 0x492   :  { %v4144_v58 = vpop.f32.mrb[40].mxu0 }
 0x493   :  { %v4347_v37 = vmul.f32 %v4340_v60, %v4144_v58  ;;  %v4146_v21 = vpop.f32.mrb[41].mxu0 }
 0x494   :  { %v4348_v43 = vmul.f32 %v4344_v50, %v4146_v21  ;;  %v4148_v36 = vpop.f32.mrb[42].mxu0 }
 0x495   :  { %v4355_v19 = vadd.f32 %v4347_v37, %v4328_v44  ;;  %v4349_v56 = vmul.f32 %v4340_v60, %v4148_v36  ;;  %v4150_v35 = vpop.f32.mrb[43].mxu0 }
 0x496   :  { %v4356_v25 = vadd.f32 %v4348_v43, %v4329_v0  ;;  %v4350_v27 = vmul.f32 %v4344_v50, %v4150_v35 }
 0x497   :  { %v4357_v18 = vadd.f32 %v4349_v56, %v4330_v2 }
 0x498   :  { %v4358_v63 = vadd.f32 %v4350_v27, %v4331_v3 }
 0x49a   :  { %v4154_v54 = vpop.f32.mrb[44].mxu0 }
 0x49b   :  { %v4351_v46 = vmul.f32 %v4340_v60, %v4154_v54  ;;  %v4156_v45 = vpop.f32.mrb[45].mxu0 }
 0x49c   :  { %v4352_v41 = vmul.f32 %v4344_v50, %v4156_v45  ;;  %v4158_v61 = vpop.f32.mrb[46].mxu0 }
 0x49d   :  { %v4359_v28 = vadd.f32 %v4351_v46, %v4332_v9  ;;  %v4353_v23 = vmul.f32 %v4340_v60, %v4158_v61  ;;  %v4160_v33 = vpop.f32.mrb[47].mxu0  ;;  %v4394_v9 = vrot.slane %v8639_v8, %v8632_v12  ;;  %v8640_v61 = vld [vmem:[#allocation129_spill] sm:$0xff] }
 0x49e   :  { %v4360_v29 = vadd.f32 %v4352_v41, %v4333_v13  ;;  %v4354_v38 = vmul.f32 %v4344_v50, %v4160_v33  ;;  %v4425_v33 = vrot.slane %v8640_v61, %v8635_v42 }
 0x49f   :  { %v4361_v20 = vadd.f32 %v4353_v23, %v4334_v16 }
 0x4a0   :  { %v4362_v32 = vadd.f32 %v4354_v38, %v4335_v22 }
 0x4a2   :  { %v4164_v51 = vpop.f32.mrb[48].mxu0 }
 0x4a3   :  { %v4374_v34 = vmul.f32 %v4367_v39, %v4164_v51  ;;  %v4166_v49 = vpop.f32.mrb[49].mxu0 }
 0x4a4   :  { %v4375_v17 = vmul.f32 %v4371_v48, %v4166_v49  ;;  %v4168_v15 = vpop.f32.mrb[50].mxu0 }
 0x4a5   :  { %v4382_v59 = vadd.f32 %v4374_v34, %v4355_v19  ;;  %v4376_v57 = vmul.f32 %v4367_v39, %v4168_v15  ;;  %v4170_v53 = vpop.f32.mrb[51].mxu0 }
 0x4a6   :  { %v4383_v47 = vadd.f32 %v4375_v17, %v4356_v25  ;;  %v4377_v55 = vmul.f32 %v4371_v48, %v4170_v53 }
 0x4a7   :  { %v4384_v52 = vadd.f32 %v4376_v57, %v4357_v18 }
 0x4a8   :  { %v4385_v30 = vadd.f32 %v4377_v55, %v4358_v63 }
 0x4aa   :  { %v4174_v44 = vpop.f32.mrb[52].mxu0 }
 0x4ab   :  { %v4378_v26 = vmul.f32 %v4367_v39, %v4174_v44  ;;  %v4176_v31 = vpop.f32.mrb[53].mxu0 }
 0x4ac   :  { %v4379_v0 = vmul.f32 %v4371_v48, %v4176_v31  ;;  %v4178_v1 = vpop.f32.mrb[54].mxu0 }
 0x4ad   :  { %v4386_v2 = vadd.f32 %v4378_v26, %v4359_v28  ;;  %v4380_v3 = vmul.f32 %v4367_v39, %v4178_v1  ;;  %v4180_v4 = vpop.f32.mrb[55].mxu0  ;;  %v4421_v28 = vrot.slane %v8640_v61, %v8632_v12  ;;  %v8641_v1 = vld [vmem:[#allocation130_spill] sm:$0xff] }
 0x4ae   :  { %v4387_v5 = vadd.f32 %v4379_v0, %v4360_v29  ;;  %v4381_v6 = vmul.f32 %v4371_v48, %v4180_v4  ;;  %v4452_v4 = vrot.slane %v8641_v1, %v8635_v42 }
 0x4af   :  { %v4388_v7 = vadd.f32 %v4380_v3, %v4361_v20 }
 0x4b0   :  { %v4389_v10 = vadd.f32 %v4381_v6, %v4362_v32 }
 0x4b2   :  { %v4184_v13 = vpop.f32.mrb[56].mxu0 }
 0x4b3   :  { %v4401_v14 = vmul.f32 %v4394_v9, %v4184_v13  ;;  %v4186_v16 = vpop.f32.mrb[57].mxu0 }
 0x4b4   :  { %v4402_v24 = vmul.f32 %v4398_v11, %v4186_v16  ;;  %v4188_v60 = vpop.f32.mrb[58].mxu0 }
 0x4b5   :  { %v4409_v22 = vadd.f32 %v4401_v14, %v4382_v59  ;;  %v4403_v50 = vmul.f32 %v4394_v9, %v4188_v60  ;;  %v4190_v58 = vpop.f32.mrb[59].mxu0 }
 0x4b6   :  { %v4410_v37 = vadd.f32 %v4402_v24, %v4383_v47  ;;  %v4404_v21 = vmul.f32 %v4398_v11, %v4190_v58 }
 0x4b7   :  { %v4411_v43 = vadd.f32 %v4403_v50, %v4384_v52 }
 0x4b8   :  { %v4412_v36 = vadd.f32 %v4404_v21, %v4385_v30 }
 0x4ba   :  { %v4194_v19 = vpop.f32.mrb[60].mxu0 }
 0x4bb   :  { %v4405_v56 = vmul.f32 %v4394_v9, %v4194_v19  ;;  %v4196_v35 = vpop.f32.mrb[61].mxu0 }
 0x4bc   :  { %v4406_v25 = vmul.f32 %v4398_v11, %v4196_v35  ;;  %v4198_v27 = vpop.f32.mrb[62].mxu0 }
 0x4bd   :  { %v4413_v18 = vadd.f32 %v4405_v56, %v4386_v2  ;;  %v4407_v63 = vmul.f32 %v4394_v9, %v4198_v27  ;;  %v4200_v54 = vpop.f32.mrb[63].mxu0  ;;  %v4448_v2 = vrot.slane %v8641_v1, %v8632_v12  ;;  %v8642_v27 = vld [vmem:[#allocation131_spill] sm:$0xff] }
 0x4be   :  { %v4414_v46 = vadd.f32 %v4406_v25, %v4387_v5  ;;  %v4408_v45 = vmul.f32 %v4398_v11, %v4200_v54 }
 0x4bf   :  { %v4415_v41 = vadd.f32 %v4407_v63, %v4388_v7  ;;  %v4498_v63 = vld [vmem:[%s6977_s21] sm:$0x3] }
 0x4c0   :  { %v4416_v23 = vadd.f32 %v4408_v45, %v4389_v10 }
 0x4c2   :  { %v4204_v29 = vpop.f32.mrb[64].mxu0 }
 0x4c3   :  { %v4428_v38 = vmul.f32 %v4421_v28, %v4204_v29  ;;  %v4206_v20 = vpop.f32.mrb[65].mxu0 }
 0x4c4   :  { %v4429_v62 = vmul.f32 %v4425_v33, %v4206_v20  ;;  %v4208_v39 = vpop.f32.mrb[66].mxu0 }
 0x4c5   :  { %v4436_v32 = vadd.f32 %v4428_v38, %v4409_v22  ;;  %v4430_v48 = vmul.f32 %v4421_v28, %v4208_v39  ;;  %v4210_v51 = vpop.f32.mrb[67].mxu0 }
 0x4c6   :  { %v4437_v34 = vadd.f32 %v4429_v62, %v4410_v37  ;;  %v4431_v49 = vmul.f32 %v4425_v33, %v4210_v51 }
 0x4c7   :  { %v4438_v17 = vadd.f32 %v4430_v48, %v4411_v43 }
 0x4c8   :  { %v4439_v15 = vadd.f32 %v4431_v49, %v4412_v36 }
 0x4ca   :  { %v4214_v59 = vpop.f32.mrb[68].mxu0 }
 0x4cb   :  { %v4432_v57 = vmul.f32 %v4421_v28, %v4214_v59  ;;  %v4216_v53 = vpop.f32.mrb[69].mxu0 }
 0x4cc   :  { %v4433_v47 = vmul.f32 %v4425_v33, %v4216_v53  ;;  %v4218_v55 = vpop.f32.mrb[70].mxu0 }
 0x4cd   :  { %v4440_v52 = vadd.f32 %v4432_v57, %v4413_v18  ;;  %v4434_v30 = vmul.f32 %v4421_v28, %v4218_v55  ;;  %v4220_v44 = vpop.f32.mrb[71].mxu0  ;;  %v4475_v18 = vrot.slane %v8642_v27, %v8632_v12 }
 0x4ce   :  { %v4441_v26 = vadd.f32 %v4433_v47, %v4414_v46  ;;  %v4435_v31 = vmul.f32 %v4425_v33, %v4220_v44  ;;  %v4479_v46 = vrot.slane %v8642_v27, %v8635_v42 }
 0x4cf   :  { %v4442_v0 = vadd.f32 %v4434_v30, %v4415_v41  ;;  %v4503_v41 = vrot.slane %v4498_v63, %v8632_v12 }
 0x4d0   :  { %v4443_v3 = vadd.f32 %v4435_v31, %v4416_v23  ;;  %v4507_v23 = vrot.slane %v4498_v63, %v8635_v42 }
 0x4d2   :  { %v4224_v5 = vpop.f32.mrb[72].mxu0 }
 0x4d3   :  { %v4455_v6 = vmul.f32 %v4448_v2, %v4224_v5  ;;  %v4226_v7 = vpop.f32.mrb[73].mxu0 }
 0x4d4   :  { %v4456_v8 = vmul.f32 %v4452_v4, %v4226_v7  ;;  %v4228_v9 = vpop.f32.mrb[74].mxu0 }
 0x4d5   :  { %v4463_v10 = vadd.f32 %v4455_v6, %v4436_v32  ;;  %v4457_v11 = vmul.f32 %v4448_v2, %v4228_v9  ;;  %v4230_v13 = vpop.f32.mrb[75].mxu0 }
 0x4d6   :  { %v4464_v14 = vadd.f32 %v4456_v8, %v4437_v34  ;;  %v4458_v16 = vmul.f32 %v4452_v4, %v4230_v13 }
 0x4d7   :  { %v4465_v24 = vadd.f32 %v4457_v11, %v4438_v17 }
 0x4d8   :  { %v4466_v60 = vadd.f32 %v4458_v16, %v4439_v15 }
 0x4da   :  { %v4234_v22 = vpop.f32.mrb[76].mxu0 }
 0x4db   :  { %v4459_v50 = vmul.f32 %v4448_v2, %v4234_v22  ;;  %v4236_v58 = vpop.f32.mrb[77].mxu0 }
 0x4dc   :  { %v4460_v37 = vmul.f32 %v4452_v4, %v4236_v58  ;;  %v4238_v21 = vpop.f32.mrb[78].mxu0 }
 0x4dd   :  { %v4467_v43 = vadd.f32 %v4459_v50, %v4440_v52  ;;  %v4461_v36 = vmul.f32 %v4448_v2, %v4238_v21  ;;  %v4240_v19 = vpop.f32.mrb[79].mxu0 }
 0x4de   :  { %v4468_v56 = vadd.f32 %v4460_v37, %v4441_v26  ;;  %v4462_v35 = vmul.f32 %v4452_v4, %v4240_v19 }
 0x4df   :  { %v4469_v25 = vadd.f32 %v4461_v36, %v4442_v0 }
 0x4e0   :  { %v4470_v54 = vadd.f32 %v4462_v35, %v4443_v3 }
 0x4e2   :  { %v4244_v45 = vpop.f32.mrb[80].mxu0 }
 0x4e3   :  { %v4482_v61 = vmul.f32 %v4475_v18, %v4244_v45  ;;  %v4246_v28 = vpop.f32.mrb[81].mxu0 }
 0x4e4   :  { %v4483_v33 = vmul.f32 %v4479_v46, %v4246_v28  ;;  %v4248_v29 = vpop.f32.mrb[82].mxu0 }
 0x4e5   :  { %v4490_v38 = vadd.f32 %v4482_v61, %v4463_v10  ;;  %v4484_v20 = vmul.f32 %v4475_v18, %v4248_v29  ;;  %v4250_v62 = vpop.f32.mrb[83].mxu0 }
 0x4e6   :  { %v4491_v39 = vadd.f32 %v4483_v33, %v4464_v14  ;;  %v4485_v32 = vmul.f32 %v4479_v46, %v4250_v62 }
 0x4e7   :  { %v4510_v48 = vadd.f32 %v4503_v41, %v4490_v38  ;;  %v4492_v51 = vadd.f32 %v4484_v20, %v4465_v24 }
 0x4e8   :  { %v4511_v34 = vadd.f32 %v4507_v23, %v4491_v39  ;;  %v4493_v49 = vadd.f32 %v4485_v32, %v4466_v60 }
 0x4e9   :  { %v4518_v17 = vmax.f32 %v4510_v48, 0.0  ;;  %v4512_v15 = vadd.f32 %v4503_v41, %v4492_v51 }
 0x4ea   :  { %v4519_v59 = vmax.f32 %v4511_v34, 0.0  ;;  %v4513_v57 = vadd.f32 %v4507_v23, %v4493_v49  ;;  %v4254_v53 = vpop.f32.mrb[84].mxu0 }
 0x4eb   :  { %v4520_v47 = vmax.f32 %v4512_v15, 0.0  ;;  %v4486_v55 = vmul.f32 %v4475_v18, %v4254_v53  ;;  %v4256_v52 = vpop.f32.mrb[85].mxu0  ;;  %v4526_v31 = vmin.f32 %v4518_v17, 6.0 }
 0x4ec   :  { %v4521_v30 = vmax.f32 %v4513_v57, 0.0  ;;  %v4487_v44 = vmul.f32 %v4479_v46, %v4256_v52  ;;  %v4258_v26 = vpop.f32.mrb[86].mxu0  ;;  %v4527_v4 = vmin.f32 %v4519_v59, 6.0 }
 0x4ed   :  { %v4528_v0 = vmin.f32 %v4520_v47, 6.0  ;;  %v4494_v1 = vadd.f32 %v4486_v55, %v4467_v43  ;;  %v4488_v2 = vmul.f32 %v4475_v18, %v4258_v26  ;;  %v4260_v3 = vpop.f32.mrb[87].mxu0 }
 0x4ee   :  { %v4529_v5 = vmin.f32 %v4521_v30, 6.0  ;;  %v4495_v6 = vadd.f32 %v4487_v44, %v4468_v56  ;;  %v4489_v7 = vmul.f32 %v4479_v46, %v4260_v3 }
 0x4ef   :  { %v8298_v8 = vpack.c.bf16 %v4528_v0, %v4526_v31  ;;  %v4514_v9 = vadd.f32 %v4503_v41, %v4494_v1  ;;  %v4496_v10 = vadd.f32 %v4488_v2, %v4469_v25 }
 0x4f0   :  { %v8300_v11 = vpack.c.bf16 %v4529_v5, %v4527_v4  ;;  %v4515_v13 = vadd.f32 %v4507_v23, %v4495_v6  ;;  %v4497_v14 = vadd.f32 %v4489_v7, %v4470_v54 }
 0x4f1   :  { %v4522_v16 = vmax.f32 %v4514_v9, 0.0  ;;  %v4516_v24 = vadd.f32 %v4503_v41, %v4496_v10 }
 0x4f2   :  { %v4523_v60 = vmax.f32 %v4515_v13, 0.0  ;;  %v4517_v22 = vadd.f32 %v4507_v23, %v4497_v14 }
 0x4f3   :  { %v4524_v50 = vmax.f32 %v4516_v24, 0.0  ;;  %v4530_v37 = vmin.f32 %v4522_v16, 6.0 }
 0x4f4   :  { %v4525_v58 = vmax.f32 %v4517_v22, 0.0  ;;  %v4531_v43 = vmin.f32 %v4523_v60, 6.0 }
 0x4f5   :  { %v4532_v21 = vmin.f32 %v4524_v50, 6.0 }
 0x4f6   :  { %v4533_v36 = vmin.f32 %v4525_v58, 6.0 }
 0x4f7   :  { %v8302_v19 = vpack.c.bf16 %v4532_v21, %v4530_v37 }
 0x4f8   :  { %v8304_v56 = vpack.c.bf16 %v4533_v36, %v4531_v43 }
 0x4f9   :  { %6889 = dma.done.wait [#allocation10 + $0x1], 8192 }
 0x4fa   :  { %6890 = vsyncadd [#allocation10 + $0x1], 4294959104  ;;  %4660 = vmatprep.mubr.bf16.mxu1 %v8300_v11  ;;  %v4543_v35 = vld [vmem:[#allocation3 + $0x8] sm:$0xff]  ;;  %v4542_v25 = vld [vmem:[#allocation3] sm:$0xff] }
 0x4fb   :  { %v4547_v27 = vld [vmem:[#allocation3 + $0x28] sm:$0xff]  ;;  %4628 = vmatprep.subr.bf16.mxu1 %v4543_v35  ;;  %v4546_v18 = vld [vmem:[#allocation3 + $0x20] sm:$0xff]  ;;  %v4545_v44 = vld [vmem:[#allocation3 + $0x18] sm:$0xff] }
 0x4fc   :  { %4629 = vmatpush1.bf16.msra.mxu1 %v4542_v25  ;;  %v4551_v63 = vld [vmem:[#allocation3 + $0x48] sm:$0xff]  ;;  %v4550_v54 = vld [vmem:[#allocation3 + $0x40] sm:$0xff]  ;;  %v4544_v26 = vld [vmem:[#allocation3 + $0x10] sm:$0xff] }
 0x4fd   :  { %4630 = vmatprep.subr.bf16.mxu1 %v4547_v27  ;;  %v4555_v46 = vld [vmem:[#allocation3 + $0x68] sm:$0xff]  ;;  %v4554_v45 = vld [vmem:[#allocation3 + $0x60] sm:$0xff]  ;;  %v4549_v31 = vld [vmem:[#allocation3 + $0x38] sm:$0xff] }
 0x4fe   :  { %v4559_v41 = vld [vmem:[#allocation3 + $0x88] sm:$0xff]  ;;  %v4558_v61 = vld [vmem:[#allocation3 + $0x80] sm:$0xff]  ;;  %v4548_v0 = vld [vmem:[#allocation3 + $0x30] sm:$0xff] }
 0x4ff   :  { %v4563_v28 = vld [vmem:[#allocation3 + $0xa8] sm:$0xff]  ;;  %v4562_v23 = vld [vmem:[#allocation3 + $0xa0] sm:$0xff]  ;;  %v4553_v1 = vld [vmem:[#allocation3 + $0x58] sm:$0xff] }
 0x500   :  { %4631 = vmatpush1.bf16.msra.mxu1 %v4546_v18  ;;  %v4567_v33 = vld [vmem:[#allocation3 + $0xc8] sm:$0xff]  ;;  %v4566_v29 = vld [vmem:[#allocation3 + $0xc0] sm:$0xff]  ;;  %v4552_v2 = vld [vmem:[#allocation3 + $0x50] sm:$0xff] }
 0x501   :  { %4632 = vmatprep.subr.bf16.mxu1 %v4551_v63  ;;  %v4571_v38 = vld [vmem:[#allocation3 + $0xe8] sm:$0xff]  ;;  %v4570_v20 = vld [vmem:[#allocation3 + $0xe0] sm:$0xff]  ;;  %v4557_v3 = vld [vmem:[#allocation3 + $0x78] sm:$0xff] }
 0x502   :  { %v4575_v62 = vld [vmem:[#allocation3 + $0x108] sm:$0xff]  ;;  %v4574_v39 = vld [vmem:[#allocation3 + $0x100] sm:$0xff]  ;;  %v4556_v4 = vld [vmem:[#allocation3 + $0x70] sm:$0xff] }
 0x503   :  { %v4579_v32 = vld [vmem:[#allocation3 + $0x128] sm:$0xff]  ;;  %v4578_v48 = vld [vmem:[#allocation3 + $0x120] sm:$0xff]  ;;  %v4561_v5 = vld [vmem:[#allocation3 + $0x98] sm:$0xff] }
 0x504   :  { %4633 = vmatpush1.bf16.msra.mxu1 %v4550_v54  ;;  %v4583_v51 = vld [vmem:[#allocation3 + $0x148] sm:$0xff]  ;;  %v4582_v34 = vld [vmem:[#allocation3 + $0x140] sm:$0xff]  ;;  %v4560_v6 = vld [vmem:[#allocation3 + $0x90] sm:$0xff] }
 0x505   :  { %4634 = vmatprep.subr.bf16.mxu1 %v4555_v46  ;;  %v4587_v49 = vld [vmem:[#allocation3 + $0x168] sm:$0xff]  ;;  %v4586_v17 = vld [vmem:[#allocation3 + $0x160] sm:$0xff]  ;;  %v4565_v7 = vld [vmem:[#allocation3 + $0xb8] sm:$0xff] }
 0x506   :  { %v4591_v15 = vld [vmem:[#allocation3 + $0x188] sm:$0xff]  ;;  %v4590_v59 = vld [vmem:[#allocation3 + $0x180] sm:$0xff]  ;;  %v4564_v9 = vld [vmem:[#allocation3 + $0xb0] sm:$0xff] }
 0x507   :  { %v4595_v57 = vld [vmem:[#allocation3 + $0x1a8] sm:$0xff]  ;;  %v4594_v53 = vld [vmem:[#allocation3 + $0x1a0] sm:$0xff]  ;;  %v4569_v10 = vld [vmem:[#allocation3 + $0xd8] sm:$0xff] }
 0x508   :  { %4635 = vmatpush1.bf16.msra.mxu1 %v4554_v45  ;;  %v4599_v47 = vld [vmem:[#allocation3 + $0x1c8] sm:$0xff]  ;;  %v4598_v55 = vld [vmem:[#allocation3 + $0x1c0] sm:$0xff]  ;;  %v4568_v13 = vld [vmem:[#allocation3 + $0xd0] sm:$0xff] }
 0x509   :  { %4636 = vmatprep.subr.bf16.mxu1 %v4559_v41  ;;  %v4603_v52 = vld [vmem:[#allocation3 + $0x1e8] sm:$0xff]  ;;  %v4602_v30 = vld [vmem:[#allocation3 + $0x1e0] sm:$0xff]  ;;  %v4573_v14 = vld [vmem:[#allocation3 + $0xf8] sm:$0xff] }
 0x50a   :  { %v4572_v16 = vld [vmem:[#allocation3 + $0xf0] sm:$0xff]  ;;  %v4577_v24 = vld [vmem:[#allocation3 + $0x118] sm:$0xff]  ;;  %v4606_v46 = vld [vmem:[%s6992_s3] sm:$0xf] }
 0x50b   :  { %v4581_v60 = vld [vmem:[#allocation3 + $0x138] sm:$0xff]  ;;  %v4580_v22 = vld [vmem:[#allocation3 + $0x130] sm:$0xff]  ;;  %v4611_v45 = vrot.slane %v4606_v46, %v8632_v12  ;;  %v4615_v41 = vrot.slane %v4606_v46, %v8635_v42 }
 0x50c   :  { %4637 = vmatpush1.bf16.msra.mxu1 %v4558_v61  ;;  %v4585_v50 = vld [vmem:[#allocation3 + $0x158] sm:$0xff]  ;;  %v4584_v58 = vld [vmem:[#allocation3 + $0x150] sm:$0xff] }
 0x50d   :  { %4638 = vmatprep.subr.bf16.mxu1 %v4563_v28  ;;  %v4589_v37 = vld [vmem:[#allocation3 + $0x178] sm:$0xff]  ;;  %v4588_v21 = vld [vmem:[#allocation3 + $0x170] sm:$0xff] }
 0x50e   :  { %v4593_v43 = vld [vmem:[#allocation3 + $0x198] sm:$0xff]  ;;  %v4592_v36 = vld [vmem:[#allocation3 + $0x190] sm:$0xff] }
 0x50f   :  { %v4597_v35 = vld [vmem:[#allocation3 + $0x1b8] sm:$0xff]  ;;  %v4596_v25 = vld [vmem:[#allocation3 + $0x1b0] sm:$0xff] }
 0x510   :  { %4639 = vmatpush1.bf16.msra.mxu1 %v4562_v23  ;;  %v4601_v27 = vld [vmem:[#allocation3 + $0x1d8] sm:$0xff]  ;;  %v4600_v18 = vld [vmem:[#allocation3 + $0x1d0] sm:$0xff] }
 0x511   :  { %4640 = vmatprep.subr.bf16.mxu1 %v4567_v33  ;;  %v4605_v63 = vld [vmem:[#allocation3 + $0x1f8] sm:$0xff]  ;;  %v4604_v54 = vld [vmem:[#allocation3 + $0x1f0] sm:$0xff] }
 0x514   :  { %4641 = vmatpush1.bf16.msra.mxu1 %v4566_v29 }
 0x515   :  { %4642 = vmatprep.subr.bf16.mxu1 %v4571_v38 }
 0x518   :  { %4643 = vmatpush1.bf16.msra.mxu1 %v4570_v20 }
 0x519   :  { %4644 = vmatprep.subr.bf16.mxu1 %v4575_v62 }
 0x51c   :  { %4645 = vmatpush1.bf16.msra.mxu1 %v4574_v39 }
 0x51d   :  { %4646 = vmatprep.subr.bf16.mxu1 %v4579_v32 }
 0x520   :  { %4647 = vmatpush1.bf16.msra.mxu1 %v4578_v48 }
 0x521   :  { %4648 = vmatprep.subr.bf16.mxu1 %v4583_v51 }
 0x524   :  { %4649 = vmatpush1.bf16.msra.mxu1 %v4582_v34 }
 0x525   :  { %4650 = vmatprep.subr.bf16.mxu1 %v4587_v49 }
 0x528   :  { %4651 = vmatpush1.bf16.msra.mxu1 %v4586_v17 }
 0x529   :  { %4652 = vmatprep.subr.bf16.mxu1 %v4591_v15 }
 0x52c   :  { %4653 = vmatpush1.bf16.msra.mxu1 %v4590_v59 }
 0x52d   :  { %4654 = vmatprep.subr.bf16.mxu1 %v4595_v57 }
 0x530   :  { %4655 = vmatpush1.bf16.msra.mxu1 %v4594_v53 }
 0x531   :  { %4656 = vmatprep.subr.bf16.mxu1 %v4599_v47 }
 0x534   :  { %4657 = vmatpush1.bf16.msra.mxu1 %v4598_v55 }
 0x535   :  { %4658 = vmatprep.subr.bf16.mxu1 %v4603_v52 }
 0x538   :  { %4659 = vmatpush1.bf16.msra.mxu1 %v4602_v30 }
 0x539   :  { %4681 = vmatprep.subr.bf16.mxu1 %v4545_v44 }
 0x53b   :  { %4661 = vmatmul.mubr.bf16.vlgmr.msra.gmra.mrb[16].mxu1 %v8298_v8 }
 0x53c   :  { %4682 = vmatpush1.bf16.msra.mxu1 %v4544_v26  ;;  %4670 = vmatprep.mubr.bf16.mxu1 %v8304_v56 }
 0x53d   :  { %4683 = vmatprep.subr.bf16.mxu1 %v4549_v31 }
 0x540   :  { %4684 = vmatpush1.bf16.msra.mxu1 %v4548_v0 }
 0x541   :  { %4685 = vmatprep.subr.bf16.mxu1 %v4553_v1 }
 0x543   :  { %4671 = vmatmul.mubr.bf16.gmra.mrb[20].mxu1 %v8302_v19 }
 0x544   :  { %4686 = vmatpush1.bf16.msra.mxu1 %v4552_v2  ;;  %4713 = vmatprep.mubr.bf16.mxu1 %v8300_v11  ;;  %v4576_v11 = vld [vmem:[#allocation3 + $0x110] sm:$0xff] }
 0x545   :  { %4687 = vmatprep.subr.bf16.mxu1 %v4557_v3 }
 0x548   :  { %4688 = vmatpush1.bf16.msra.mxu1 %v4556_v4 }
 0x549   :  { %4689 = vmatprep.subr.bf16.mxu1 %v4561_v5 }
 0x54c   :  { %4690 = vmatpush1.bf16.msra.mxu1 %v4560_v6 }
 0x54d   :  { %4691 = vmatprep.subr.bf16.mxu1 %v4565_v7  ;;  %v8643_v7 = vld [vmem:[#allocation132_spill] sm:$0xff] }
 0x550   :  { %4692 = vmatpush1.bf16.msra.mxu1 %v4564_v9  ;;  %v4618_v9 = vsub.s32 2, %v8643_v7 }
 0x551   :  { %4693 = vmatprep.subr.bf16.mxu1 %v4569_v10  ;;  %v4622_v10 = vsub.s32 3, %v8643_v7 }
 0x554   :  { %4694 = vmatpush1.bf16.msra.mxu1 %v4568_v13  ;;  %v4619_v13 = vrot.slane %v4606_v46, %v4618_v9 }
 0x555   :  { %4695 = vmatprep.subr.bf16.mxu1 %v4573_v14  ;;  %v4623_v14 = vrot.slane %v4606_v46, %v4622_v10 }
 0x558   :  { %4696 = vmatpush1.bf16.msra.mxu1 %v4572_v16 }
 0x559   :  { %4697 = vmatprep.subr.bf16.mxu1 %v4577_v24 }
 0x55c   :  { %4698 = vmatpush1.bf16.msra.mxu1 %v4576_v11 }
 0x55d   :  { %4699 = vmatprep.subr.bf16.mxu1 %v4581_v60 }
 0x560   :  { %4700 = vmatpush1.bf16.msra.mxu1 %v4580_v22 }
 0x561   :  { %4701 = vmatprep.subr.bf16.mxu1 %v4585_v50 }
 0x564   :  { %4702 = vmatpush1.bf16.msra.mxu1 %v4584_v58 }
 0x565   :  { %4703 = vmatprep.subr.bf16.mxu1 %v4589_v37 }
 0x568   :  { %4704 = vmatpush1.bf16.msra.mxu1 %v4588_v21 }
 0x569   :  { %4705 = vmatprep.subr.bf16.mxu1 %v4593_v43 }
 0x56c   :  { %4706 = vmatpush1.bf16.msra.mxu1 %v4592_v36 }
 0x56d   :  { %4707 = vmatprep.subr.bf16.mxu1 %v4597_v35 }
 0x570   :  { %4708 = vmatpush1.bf16.msra.mxu1 %v4596_v25 }
 0x571   :  { %4709 = vmatprep.subr.bf16.mxu1 %v4601_v27 }
 0x574   :  { %4710 = vmatpush1.bf16.msra.mxu1 %v4600_v18 }
 0x575   :  { %4711 = vmatprep.subr.bf16.mxu1 %v4605_v63 }
 0x578   :  { %4712 = vmatpush1.bf16.msra.mxu1 %v4604_v54 }
 0x57b   :  { %4714 = vmatmul.mubr.bf16.vlgmr.msra.gmra.mrb[24].mxu1 %v8298_v8 }
 0x57c   :  { %4723 = vmatprep.mubr.bf16.mxu1 %v8304_v56 }
 0x583   :  { %4724 = vmatmul.mubr.bf16.gmra.mrb[28].mxu1 %v8302_v19 }
 0x60e   :  { %v4662_v61 = vpop.f32.mrb[16].mxu1 }
 0x60f   :  { %v4663_v28 = vadd.f32 %v4662_v61, %v4611_v45  ;;  %v4664_v23 = vpop.f32.mrb[17].mxu1 }
 0x610   :  { %v4665_v33 = vadd.f32 %v4664_v23, %v4615_v41  ;;  %v4666_v29 = vpop.f32.mrb[18].mxu1 }
 0x611   :  { %v4734_v38 = vmax.f32 %v4663_v28, 0.0  ;;  %v4667_v20 = vadd.f32 %v4666_v29, %v4611_v45  ;;  %v4668_v62 = vpop.f32.mrb[19].mxu1 }
 0x612   :  { %v4735_v39 = vmax.f32 %v4665_v33, 0.0  ;;  %v4669_v32 = vadd.f32 %v4668_v62, %v4615_v41 }
 0x613   :  { %v8317_v8 = vmin.f32 %v4734_v38, 6.0  ;;  %v4738_v56 = vmax.f32 %v4667_v20, 0.0 }
 0x614   :  { %v8319_v48 = vmin.f32 %v4735_v39, 6.0  ;;  %v4739_v19 = vmax.f32 %v4669_v32, 0.0 }
 0x615   :  { %4766 = vst [vmem:[#allocation11] sm:$0xff] %v8317_v8  ;;  %v8322_v51 = vmin.f32 %v4738_v56, 6.0 }
 0x616   :  { %4767 = vst [vmem:[#allocation11 + $0x8] sm:$0xff] %v8319_v48  ;;  %v8325_v34 = vmin.f32 %v4739_v19, 6.0  ;;  %v4672_v49 = vpop.f32.mrb[20].mxu1 }
 0x617   :  { %4770 = vst [vmem:[#allocation11 + $0x20] sm:$0xff] %v8322_v51  ;;  %v4782_v17 = vpack.c.bf16 %v8322_v51, %v8317_v8  ;;  %v4673_v15 = vadd.f32 %v4672_v49, %v4611_v45  ;;  %v4674_v59 = vpop.f32.mrb[21].mxu1 }
 0x618   :  { %4771 = vst [vmem:[#allocation11 + $0x28] sm:$0xff] %v8325_v34  ;;  %v4783_v57 = vpack.c.bf16 %v8325_v34, %v8319_v48  ;;  %v4675_v53 = vadd.f32 %v4674_v59, %v4615_v41  ;;  %v4676_v47 = vpop.f32.mrb[22].mxu1 }
 0x619   :  { %v4742_v55 = vmax.f32 %v4673_v15, 0.0  ;;  %v4677_v52 = vadd.f32 %v4676_v47, %v4611_v45  ;;  %v4678_v30 = vpop.f32.mrb[23].mxu1  ;;  %v8644_v47 = vld [vmem:[#allocation63_spill] sm:$0xff] }
 0x61a   :  { %v4743_v44 = vmax.f32 %v4675_v53, 0.0  ;;  %v4679_v26 = vadd.f32 %v4678_v30, %v4615_v41  ;;  %6230 = vmatprep.subr.bf16.mxu1 %v8644_v47 }
 0x61b   :  { %v8333_v31 = vmin.f32 %v4742_v55, 6.0  ;;  %v4746_v0 = vmax.f32 %v4677_v52, 0.0  ;;  %v8645_v55 = vld [vmem:[#allocation79_spill] sm:$0xff] }
 0x61c   :  { %v8335_v1 = vmin.f32 %v4743_v44, 6.0  ;;  %v4747_v2 = vmax.f32 %v4679_v26, 0.0  ;;  %6258 = vmatprep.subr.bf16.mxu0 %v8645_v55 }
 0x61d   :  { %4774 = vst [vmem:[#allocation11 + $0x40] sm:$0xff] %v8333_v31  ;;  %v8338_v3 = vmin.f32 %v4746_v0, 6.0 }
 0x61e   :  { %4775 = vst [vmem:[#allocation11 + $0x48] sm:$0xff] %v8335_v1  ;;  %v8341_v4 = vmin.f32 %v4747_v2, 6.0 }
 0x61f   :  { %4778 = vst [vmem:[#allocation11 + $0x60] sm:$0xff] %v8338_v3  ;;  %v4786_v5 = vpack.c.bf16 %v8338_v3, %v8333_v31 }
 0x620   :  { %4779 = vst [vmem:[#allocation11 + $0x68] sm:$0xff] %v8341_v4  ;;  %v4787_v6 = vpack.c.bf16 %v8341_v4, %v8335_v1 }
 0x64e   :  { %v4715_v16 = vpop.f32.mrb[24].mxu1 }
 0x64f   :  { %v4716_v24 = vadd.f32 %v4715_v16, %v4619_v13  ;;  %v4717_v11 = vpop.f32.mrb[25].mxu1 }
 0x650   :  { %v4718_v60 = vadd.f32 %v4717_v11, %v4623_v14  ;;  %v4719_v22 = vpop.f32.mrb[26].mxu1 }
 0x651   :  { %v4736_v50 = vmax.f32 %v4716_v24, 0.0  ;;  %v4720_v58 = vadd.f32 %v4719_v22, %v4619_v13  ;;  %v4721_v37 = vpop.f32.mrb[27].mxu1 }
 0x652   :  { %v4737_v21 = vmax.f32 %v4718_v60, 0.0  ;;  %v4722_v43 = vadd.f32 %v4721_v37, %v4623_v14 }
 0x653   :  { %v8351_v36 = vmin.f32 %v4736_v50, 6.0  ;;  %v4740_v35 = vmax.f32 %v4720_v58, 0.0 }
 0x654   :  { %v4753_v25 = vmin.f32 %v4737_v21, 6.0  ;;  %v4741_v27 = vmax.f32 %v4722_v43, 0.0 }
 0x655   :  { %4768 = vst [vmem:[#allocation11 + $0x10] sm:$0xff] %v8351_v36  ;;  %v8354_v18 = vmin.f32 %v4740_v35, 6.0 }
 0x656   :  { %4769 = vst [vmem:[#allocation11 + $0x18] sm:$0xff] %v4753_v25  ;;  %v4757_v63 = vmin.f32 %v4741_v27, 6.0  ;;  %v4725_v54 = vpop.f32.mrb[28].mxu1 }
 0x657   :  { %4772 = vst [vmem:[#allocation11 + $0x30] sm:$0xff] %v8354_v18  ;;  %v4784_v46 = vpack.c.bf16 %v8354_v18, %v8351_v36  ;;  %v4726_v45 = vadd.f32 %v4725_v54, %v4619_v13  ;;  %v4727_v41 = vpop.f32.mrb[29].mxu1 }
 0x658   :  { %4773 = vst [vmem:[#allocation11 + $0x38] sm:$0xff] %v4757_v63  ;;  %v4785_v61 = vpack.c.bf16 %v4757_v63, %v4753_v25  ;;  %v4728_v28 = vadd.f32 %v4727_v41, %v4623_v14  ;;  %v4729_v23 = vpop.f32.mrb[30].mxu1 }
 0x659   :  { %v4744_v33 = vmax.f32 %v4726_v45, 0.0  ;;  %v4730_v29 = vadd.f32 %v4729_v23, %v4619_v13  ;;  %v4731_v38 = vpop.f32.mrb[31].mxu1 }
 0x65a   :  { %v4745_v20 = vmax.f32 %v4728_v28, 0.0  ;;  %v4732_v62 = vadd.f32 %v4731_v38, %v4623_v14 }
 0x65b   :  { %v4760_v39 = vmin.f32 %v4744_v33, 6.0  ;;  %v4748_v32 = vmax.f32 %v4730_v29, 0.0 }
 0x65c   :  { %v4761_v56 = vmin.f32 %v4745_v20, 6.0  ;;  %v4749_v19 = vmax.f32 %v4732_v62, 0.0 }
 0x65d   :  { %4776 = vst [vmem:[#allocation11 + $0x50] sm:$0xff] %v4760_v39  ;;  %v4764_v49 = vmin.f32 %v4748_v32, 6.0 }
 0x65e   :  { %4777 = vst [vmem:[#allocation11 + $0x58] sm:$0xff] %v4761_v56  ;;  %v4765_v15 = vmin.f32 %v4749_v19, 6.0 }
 0x65f   :  { %4780 = vst [vmem:[#allocation11 + $0x70] sm:$0xff] %v4764_v49  ;;  %v4788_v59 = vpack.c.bf16 %v4764_v49, %v4760_v39 }
 0x660   :  { %4781 = vst [vmem:[#allocation11 + $0x78] sm:$0xff] %v4765_v15  ;;  %v4789_v53 = vpack.c.bf16 %v4765_v15, %v4761_v56 }
 0x661   :  { %6891 = dma.done.wait [#allocation10 + $0x2], 4096 }
 0x662   :  { %6892 = vsyncadd [#allocation10 + $0x2], 4294963200  ;;  %v8646_v52 = vld [vmem:[#allocation55_spill] sm:$0xff]  ;;  %v8648_v44 = vld [vmem:[#allocation64_spill] sm:$0xff]  ;;  %4865 = vmatprep.mubr.bf16.mxu1 %v4783_v57  ;;  %4914 = vmatprep.mubr.bf16.mxu0 %v4785_v61  ;;  %s8674_s0 = sld [smem:[#allocation37_spill]]  ;;  %v6941_v54 = vmov 0.0  }
 0x663   :  { %6231 = vmatpush3.bf16.msra.mxu1 %v8646_v52  ;;  %v8647_v30 = vld [vmem:[#allocation71_spill] sm:$0xff]  ;;  %v8649_v26 = vld [vmem:[#allocation80_spill] sm:$0xff]  ;;  %v8652_v7 = vld [vmem:[#allocation65_spill] sm:$0xff]  ;;  %vm6942_vm0 = vmmov 0   ;;  %s8677_s5 = sld [smem:[#allocation40_spill]]  ;;  %s8678_s9 = sld [smem:[#allocation38_spill]] }
 0x664   :  { %6259 = vmatpush3.bf16.msra.mxu0 %v8647_v30  ;;  %6232 = vmatprep.subr.bf16.mxu1 %v8648_v44  ;;  %v8650_v0 = vld [vmem:[#allocation56_spill] sm:$0xff]  ;;  %v8653_v9 = vld [vmem:[#allocation81_spill] sm:$0xff]  ;;  %v8656_v14 = vld [vmem:[#allocation66_spill] sm:$0xff]  ;;  %vm4982_vm1 = vcmask 261120   ;;  %s8679_s13 = sld [smem:[#allocation39_spill]] }
 0x665   :  { %6260 = vmatprep.subr.bf16.mxu0 %v8649_v26  ;;  %v8651_v2 = vld [vmem:[#allocation72_spill] sm:$0xff]  ;;  %v8654_v10 = vld [vmem:[#allocation57_spill] sm:$0xff]  ;;  %v8657_v16 = vld [vmem:[#allocation82_spill] sm:$0xff] }
 0x666   :  { %v8655_v13 = vld [vmem:[#allocation73_spill] sm:$0xff]  ;;  %v8658_v24 = vld [vmem:[#allocation58_spill] sm:$0xff]  ;;  %v8660_v34 = vld [vmem:[#allocation67_spill] sm:$0xff] }
 0x667   :  { %6233 = vmatpush3.bf16.msra.mxu1 %v8650_v0  ;;  %v8659_v48 = vld [vmem:[#allocation74_spill] sm:$0xff]  ;;  %v8661_v57 = vld [vmem:[#allocation83_spill] sm:$0xff]  ;;  %v8664_v22 = vld [vmem:[#allocation68_spill] sm:$0xff] }
 0x668   :  { %6261 = vmatpush3.bf16.msra.mxu0 %v8651_v2  ;;  %6234 = vmatprep.subr.bf16.mxu1 %v8652_v7  ;;  %v8662_v11 = vld [vmem:[#allocation59_spill] sm:$0xff]  ;;  %v8665_v50 = vld [vmem:[#allocation84_spill] sm:$0xff]  ;;  %v8668_v21 = vld [vmem:[#allocation69_spill] sm:$0xff] }
 0x669   :  { %6262 = vmatprep.subr.bf16.mxu0 %v8653_v9  ;;  %v8663_v60 = vld [vmem:[#allocation75_spill] sm:$0xff]  ;;  %v8666_v58 = vld [vmem:[#allocation60_spill] sm:$0xff]  ;;  %v8669_v43 = vld [vmem:[#allocation85_spill] sm:$0xff] }
 0x66a   :  { %v8667_v37 = vld [vmem:[#allocation76_spill] sm:$0xff]  ;;  %v8670_v36 = vld [vmem:[#allocation61_spill] sm:$0xff]  ;;  %v8672_v25 = vld [vmem:[#allocation70_spill] sm:$0xff] }
 0x66b   :  { %6235 = vmatpush3.bf16.msra.mxu1 %v8654_v10  ;;  %v8671_v35 = vld [vmem:[#allocation77_spill] sm:$0xff]  ;;  %v8673_v27 = vld [vmem:[#allocation86_spill] sm:$0xff] }
 0x66c   :  { %6263 = vmatpush3.bf16.msra.mxu0 %v8655_v13  ;;  %6236 = vmatprep.subr.bf16.mxu1 %v8656_v14  ;;  %v8675_v18 = vld [vmem:[#allocation62_spill] sm:$0xff] }
 0x66d   :  { %6264 = vmatprep.subr.bf16.mxu0 %v8657_v16  ;;  %v8676_v63 = vld [vmem:[#allocation78_spill] sm:$0xff] }
 0x66f   :  { %6237 = vmatpush3.bf16.msra.mxu1 %v8658_v24 }
 0x670   :  { %6265 = vmatpush3.bf16.msra.mxu0 %v8659_v48  ;;  %6238 = vmatprep.subr.bf16.mxu1 %v8660_v34  ;;  %v6794_v48 = vld [vmem:[%s8677_s5] sm:$0xff]   ;;  %v6795_v34 = vld [vmem:[%s8677_s5 + $0x8] sm:$0xff]  }
 0x671   :  { %6266 = vmatprep.subr.bf16.mxu0 %v8661_v57  ;;  %v6796_v57 = vld [vmem:[%s8677_s5 + $0x10] sm:$0xff]  }
 0x673   :  { %6239 = vmatpush3.bf16.msra.mxu1 %v8662_v11  ;;  %v6797_v11 = vld [vmem:[%s8677_s5 + $0x18] sm:$0xff]  }
 0x674   :  { %6267 = vmatpush3.bf16.msra.mxu0 %v8663_v60  ;;  %6240 = vmatprep.subr.bf16.mxu1 %v8664_v22  ;;  %v6798_v60 = vld [vmem:[%s8677_s5 + $0x20] ss:$0 sps:$4 sm:$0xff]  }
 0x675   :  { %6268 = vmatprep.subr.bf16.mxu0 %v8665_v50  ;;  %v6199_v22 = vld [vmem:[%s8678_s9] ss:$0 sm:$0xff] }
 0x677   :  { %6241 = vmatpush3.bf16.msra.mxu1 %v8666_v58  ;;  %v6200_v58 = vld [vmem:[%s8678_s9 + $0x1] ss:$0 sm:$0xff] }
 0x678   :  { %6269 = vmatpush3.bf16.msra.mxu0 %v8667_v37  ;;  %6242 = vmatprep.subr.bf16.mxu1 %v8668_v21 }
 0x679   :  { %6270 = vmatprep.subr.bf16.mxu0 %v8669_v43 }
 0x67b   :  { %6243 = vmatpush3.bf16.msra.mxu1 %v8670_v36 }
 0x67c   :  { %6271 = vmatpush3.bf16.msra.mxu0 %v8671_v35  ;;  %6244 = vmatprep.subr.bf16.mxu1 %v8672_v25 }
 0x67d   :  { %6272 = vmatprep.subr.bf16.mxu0 %v8673_v27  ;;  %v6201_v27 = vld [vmem:[%s8678_s9 + $0x2] ss:$0 sm:$0xff] }
 0x67f   :  { %6245 = vmatpush3.bf16.msra.mxu1 %v8675_v18 }
 0x680   :  { %6273 = vmatpush3.bf16.msra.mxu0 %v8676_v63  ;;  %6344 = vmatprep.subr.bf16.mxu1 %v6941_v54  ;;  %v6202_v63 = vld [vmem:[%s8678_s9 + $0x3] ss:$0 sm:$0xff] }
 0x682   :  { %4866 = vmatmul.mubr.bf16.vlgmr.msra.gmra.mrb[32].mxu1 %v4782_v17  ;;  %v6188_v17 = vld [vmem:[%s8674_s0] ss:$0 sm:$0xff] }
 0x683   :  { %4915 = vmatmul.mubr.bf16.vlgmr.msra.gmra.mrb[88].mxu0 %v4784_v46  ;;  %4873 = vmatprep.mubr.bf16.mxu1 %v4787_v6 }
 0x684   :  { %4922 = vmatprep.mubr.bf16.mxu0 %v4789_v53 }
 0x68a   :  { %4874 = vmatmul.mubr.bf16.gmra.mrb[36].mxu1 %v4786_v5 }
 0x68b   :  { %4923 = vmatmul.mubr.bf16.gmra.mrb[92].mxu0 %v4788_v59  ;;  %6348 = vmatprep.mubr.msk.bf16.mxu1 %vm6942_vm0, %v6941_v54 }
 0x755   :  { %v6246_v8 = vpop.f32.mrb[32].mxu1 }
 0x756   :  { %v6274_v51 = vpop.f32.mrb[88].mxu0  ;;  %v6247_v46 = vpop.f32.mrb[33].mxu1 }
 0x757   :  { %v6275_v45 = vpop.f32.mrb[89].mxu0  ;;  %v6248_v1 = vadd.f32 %v6247_v46, %v6246_v8  ;;  %v6249_v6 = vpop.f32.mrb[34].mxu1 }
 0x758   :  { %v6276_v4 = vadd.f32 %v6275_v45, %v6274_v51  ;;  %v6277_v41 = vpop.f32.mrb[90].mxu0  ;;  %v6250_v61 = vpop.f32.mrb[35].mxu1 }
 0x759   :  { %v6278_v31 = vpop.f32.mrb[91].mxu0  ;;  %v4868_v3 = vadd.f32 %v6248_v1, %v6188_v17  ;;  %v6251_v5 = vadd.f32 %v6250_v61, %v6249_v6  ;;  %v6203_v6 = vld [vmem:[%s8678_s9 + $0x4] ss:$0 sm:$0xff]  ;;  %v6204_v61 = vld [vmem:[%s8678_s9 + $0x5] ss:$0 sm:$0xff] }
 0x75a   :  { %v6279_v28 = vadd.f32 %v6278_v31, %v6277_v41 }
 0x75b   :  { %v4917_v23 = vadd.f32 %v6276_v4, %v4868_v3  ;;  %v4871_v33 = vadd.f32 %v6251_v5, %v6188_v17 }
 0x75d   :  { %v4931_v29 = vmax.f32 %v4917_v23, 0.0  ;;  %v4920_v38 = vadd.f32 %v6279_v28, %v4871_v33  ;;  %v6252_v20 = vpop.f32.mrb[36].mxu1 }
 0x75e   :  { %v6280_v62 = vpop.f32.mrb[92].mxu0  ;;  %v6253_v39 = vpop.f32.mrb[37].mxu1 }
 0x75f   :  { %v6281_v32 = vpop.f32.mrb[93].mxu0  ;;  %v4932_v56 = vmax.f32 %v4920_v38, 0.0  ;;  %v6254_v19 = vadd.f32 %v6253_v39, %v6252_v20  ;;  %v6255_v15 = vpop.f32.mrb[38].mxu1  ;;  %v4935_v53 = vmin.f32 %v4931_v29, 6.0  ;;  %v6205_v38 = vld [vmem:[%s8678_s9 + $0x6] ss:$0 sm:$0xff] }
 0x760   :  { %v6282_v49 = vadd.f32 %v6281_v32, %v6280_v62  ;;  %v6283_v59 = vpop.f32.mrb[94].mxu0  ;;  %v6256_v47 = vpop.f32.mrb[39].mxu1  ;;  %v6206_v62 = vld [vmem:[%s8678_s9 + $0x7] ss:$0 sm:$0xff] }
 0x761   :  { %v6284_v55 = vpop.f32.mrb[95].mxu0  ;;  %v4936_v52 = vmin.f32 %v4932_v56, 6.0  ;;  %v4876_v30 = vadd.f32 %v6254_v19, %v6188_v17  ;;  %v6257_v44 = vadd.f32 %v6256_v47, %v6255_v15 }
 0x762   :  { %v6285_v26 = vadd.f32 %v6284_v55, %v6283_v59 }
 0x763   :  { %v4957_v0 = vpack.c.bf16 %v4936_v52, %v4935_v53  ;;  %v4925_v2 = vadd.f32 %v6282_v49, %v4876_v30  ;;  %v4879_v7 = vadd.f32 %v6257_v44, %v6188_v17  ;;  %v6207_v53 = vld [vmem:[%s8678_s9 + $0x8] ss:$0 sm:$0xff]  ;;  %v6208_v30 = vld [vmem:[%s8679_s13] ss:$0 sm:$0xff] }
 0x765   :  { %v4933_v9 = vmax.f32 %v4925_v2, 0.0  ;;  %v4928_v10 = vadd.f32 %v6285_v26, %v4879_v7  ;;  %6345 = vmatpush3.bf16.msra.mxu1 %v4957_v0 }
 0x766   :  { %6346 = vmatprep.subr.bf16.mxu1 %v6941_v54 }
 0x767   :  { %v4934_v13 = vmax.f32 %v4928_v10, 0.0  ;;  %v4937_v14 = vmin.f32 %v4933_v9, 6.0 }
 0x769   :  { %v4938_v16 = vmin.f32 %v4934_v13, 6.0 }
 0x76b   :  { %v4958_v24 = vpack.c.bf16 %v4938_v16, %v4937_v14 }
 0x76d   :  { %6347 = vmatpush3.bf16.msra.mxu1 %v4958_v24 }
 0x770   :  { %6349 = vmatmul.mubr.msk.bf16.vlgmr.msra.gmra.mrb[40].mxu1 %vm4982_vm1, %v6794_v48 }
 0x771   :  { %6352 = vmatprep.mubr.msk.bf16.mxu1 %vm6942_vm0, %v6941_v54 }
 0x778   :  { %6353 = vmatmul.mubr.msk.bf16.gmra.mrb[44].mxu1 %vm4982_vm1, %v6795_v34 }
 0x779   :  { %6356 = vmatprep.mubr.msk.bf16.mxu1 %vm6942_vm0, %v6941_v54 }
 0x780   :  { %6357 = vmatmul.mubr.msk.bf16.gmra.mrb[48].mxu1 %vm4982_vm1, %v6796_v57 }
 0x781   :  { %6360 = vmatprep.mubr.msk.bf16.mxu1 %vm6942_vm0, %v6941_v54 }
 0x788   :  { %6361 = vmatmul.mubr.msk.bf16.gmra.mrb[52].mxu1 %vm4982_vm1, %v6797_v11 }
 0x789   :  { %6364 = vmatprep.mubr.msk.bf16.mxu1 %vm6942_vm0, %v6941_v54 }
 0x790   :  { %6365 = vmatmul.mubr.msk.bf16.gmra.mrb[56].mxu1 %vm4982_vm1, %v6798_v60 }
 0x843   :  { %v5032_v50 = vpop.f32.mrb[40].mxu1 }
 0x844   :  { %v6350_v37 = vpop.f32.mrb[41].mxu1  ;;  %v5076_v43 = vmul.f32 %v6199_v22, %v5032_v50 }
 0x845   :  { %v5035_v21 = vpop.f32.mrb[42].mxu1 }
 0x846   :  { %v5083_v36 = vmul.f32 %v6200_v58, %v5035_v21  ;;  %v6351_v35 = vpop.f32.mrb[43].mxu1 }
 0x848   :  { %v5084_v25 = vadd.f32 %v5083_v36, %v5076_v43 }
 0x84b   :  { %v5040_v18 = vpop.f32.mrb[44].mxu1 }
 0x84c   :  { %v5091_v8 = vmul.f32 %v6201_v27, %v5040_v18  ;;  %v6354_v51 = vpop.f32.mrb[45].mxu1 }
 0x84d   :  { %v5043_v17 = vpop.f32.mrb[46].mxu1 }
 0x84e   :  { %v5092_v46 = vadd.f32 %v5091_v8, %v5084_v25  ;;  %v5099_v45 = vmul.f32 %v6202_v63, %v5043_v17  ;;  %v6355_v1 = vpop.f32.mrb[47].mxu1 }
 0x850   :  { %v5100_v4 = vadd.f32 %v5099_v45, %v5092_v46 }
 0x853   :  { %v5048_v41 = vpop.f32.mrb[48].mxu1 }
 0x854   :  { %v5107_v31 = vmul.f32 %v6203_v6, %v5048_v41  ;;  %v6358_v3 = vpop.f32.mrb[49].mxu1 }
 0x855   :  { %v5051_v5 = vpop.f32.mrb[50].mxu1 }
 0x856   :  { %v5108_v28 = vadd.f32 %v5107_v31, %v5100_v4  ;;  %v5115_v23 = vmul.f32 %v6204_v61, %v5051_v5  ;;  %v6359_v33 = vpop.f32.mrb[51].mxu1 }
 0x858   :  { %v5116_v29 = vadd.f32 %v5115_v23, %v5108_v28 }
 0x85b   :  { %v5056_v20 = vpop.f32.mrb[52].mxu1 }
 0x85c   :  { %v5123_v39 = vmul.f32 %v6205_v38, %v5056_v20  ;;  %v6362_v32 = vpop.f32.mrb[53].mxu1 }
 0x85d   :  { %v5059_v56 = vpop.f32.mrb[54].mxu1 }
 0x85e   :  { %v5124_v19 = vadd.f32 %v5123_v39, %v5116_v29  ;;  %v5131_v49 = vmul.f32 %v6206_v62, %v5059_v56  ;;  %v6363_v15 = vpop.f32.mrb[55].mxu1 }
 0x860   :  { %v5132_v59 = vadd.f32 %v5131_v49, %v5124_v19 }
 0x863   :  { %v5064_v47 = vpop.f32.mrb[56].mxu1 }
 0x864   :  { %v5139_v55 = vmul.f32 %v6207_v53, %v5064_v47  ;;  %v6366_v52 = vpop.f32.mrb[57].mxu1 }
 0x865   :  { %v5067_v44 = vpop.f32.mrb[58].mxu1 }
 0x866   :  { %v5140_v26 = vadd.f32 %v5139_v55, %v5132_v59  ;;  %v6367_v0 = vpop.f32.mrb[59].mxu1 }
 0x868   :  { %v5148_v2 = vadd.f32 %v6208_v30, %v5140_v26 }
 0x86a   :  { %v5149_v7 = vmax.f32 %v5148_v2, 0.0 }
 0x86c   :  { %v5150_v9 = vmin.f32 %v5149_v7, 6.0 }
 0x86e   :  { %v5151_v10 = vpack.c.bf16 %v5150_v9, %v5150_v9 }
 0x86f   :  { %6893 = dma.done.wait [#allocation10 + $0x3], 2048 }
 0x870   :  { %6894 = vsyncadd [#allocation10 + $0x3], 4294965248  ;;  %5216 = vmatprep.mubr.bf16.mxu0 %v6940_v40  ;;  %v5157_v13 = vld [vmem:[#allocation5 + $0x8] sm:$0xff]  ;;  %v5156_v14 = vld [vmem:[#allocation5] sm:$0xff]  ;;  %s8680_s17 = sld [smem:[#allocation41_spill]] }
 0x871   :  { %v5159_v16 = vld [vmem:[#allocation5 + $0x18] sm:$0xff]  ;;  %5184 = vmatprep.subr.bf16.mxu0 %v5157_v13  ;;  %v5158_v24 = vld [vmem:[#allocation5 + $0x10] sm:$0xff]  ;;  %v5161_v48 = vld [vmem:[#allocation5 + $0x28] sm:$0xff] }
 0x872   :  { %5185 = vmatpush1.bf16.msra.mxu0 %v5156_v14  ;;  %v5160_v34 = vld [vmem:[#allocation5 + $0x20] sm:$0xff]  ;;  %v5163_v57 = vld [vmem:[#allocation5 + $0x38] sm:$0xff]  ;;  %v5162_v11 = vld [vmem:[#allocation5 + $0x30] sm:$0xff] }
 0x873   :  { %5186 = vmatprep.subr.bf16.mxu0 %v5159_v16  ;;  %v5165_v60 = vld [vmem:[#allocation5 + $0x48] sm:$0xff]  ;;  %v5164_v22 = vld [vmem:[#allocation5 + $0x40] sm:$0xff]  ;;  %v5167_v50 = vld [vmem:[#allocation5 + $0x58] sm:$0xff] }
 0x874   :  { %v5166_v58 = vld [vmem:[#allocation5 + $0x50] sm:$0xff]  ;;  %v5169_v37 = vld [vmem:[#allocation5 + $0x68] sm:$0xff]  ;;  %v5168_v21 = vld [vmem:[#allocation5 + $0x60] sm:$0xff] }
 0x875   :  { %v5171_v43 = vld [vmem:[#allocation5 + $0x78] sm:$0xff]  ;;  %v5170_v36 = vld [vmem:[#allocation5 + $0x70] sm:$0xff] }
 0x876   :  { %5187 = vmatpush1.bf16.msra.mxu0 %v5158_v24  ;;  %v5172_v35 = vld [vmem:[%s8680_s17] sm:$0x3]  ;;  %v8681_v31 = vld [vmem:[#allocation95_spill] sm:$0xff] }
 0x877   :  { %5188 = vmatprep.subr.bf16.mxu0 %v5161_v48  ;;  %v5177_v25 = vrot.slane %v5172_v35, %v8632_v12  ;;  %v5181_v27 = vrot.slane %v5172_v35, %v8635_v42  ;;  %6293 = vmatprep.subr.bf16.mxu1 %v8681_v31 }
 0x87a   :  { %5189 = vmatpush1.bf16.msra.mxu0 %v5160_v34 }
 0x87b   :  { %5190 = vmatprep.subr.bf16.mxu0 %v5163_v57 }
 0x87e   :  { %5191 = vmatpush1.bf16.msra.mxu0 %v5162_v11 }
 0x87f   :  { %5192 = vmatprep.subr.bf16.mxu0 %v5165_v60 }
 0x882   :  { %5193 = vmatpush1.bf16.msra.mxu0 %v5164_v22 }
 0x883   :  { %5194 = vmatprep.subr.bf16.mxu0 %v5167_v50 }
 0x886   :  { %5195 = vmatpush1.bf16.msra.mxu0 %v5166_v58 }
 0x887   :  { %5196 = vmatprep.subr.bf16.mxu0 %v5169_v37 }
 0x88a   :  { %5197 = vmatpush1.bf16.msra.mxu0 %v5168_v21 }
 0x88b   :  { %5198 = vmatprep.subr.bf16.mxu0 %v5171_v43 }
 0x88e   :  { %5199 = vmatpush1.bf16.msra.mxu0 %v5170_v36 }
 0x891   :  { %5217 = vmatmul.mubr.bf16.vlgmr.msra.gmra.mrb[96].mxu0 %v5151_v10 }
 0x964   :  { %v5218_v18 = vpop.f32.mrb[96].mxu0 }
 0x965   :  { %v5219_v63 = vadd.f32 %v5218_v18, %v5177_v25  ;;  %v5220_v8 = vpop.f32.mrb[97].mxu0 }
 0x966   :  { %v5221_v51 = vadd.f32 %v5220_v8, %v5181_v27  ;;  %v5222_v17 = vpop.f32.mrb[98].mxu0 }
 0x967   :  { %v5225_v46 = vmax.f32 %v5219_v63, 0.0  ;;  %v5223_v45 = vpop.f32.mrb[99].mxu0 }
 0x968   :  { %v5226_v1 = vmax.f32 %v5221_v51, 0.0 }
 0x969   :  { %v5227_v4 = vmin.f32 %v5225_v46, 6.0 }
 0x96a   :  { %v5228_v6 = vmin.f32 %v5226_v1, 6.0 }
 0x96b   :  { %5229 = vst [vmem:[#allocation13] sm:$0xff] %v5227_v4  ;;  %v5231_v41 = vpack.c.bf16 %v5227_v4, %v5227_v4 }
 0x96c   :  { %5230 = vst [vmem:[#allocation13 + $0x8] sm:$0xff] %v5228_v6  ;;  %v5232_v61 = vpack.c.bf16 %v5228_v6, %v5228_v6 }
 0x96e   :  { %5291 = vmatprep.mubr.bf16.mxu1 %v5232_v61 }
 0x96f   :  { %6895 = dma.done.wait [#allocation10 + $0x4], 2048 }
 0x970   :  { %6896 = vsyncadd [#allocation10 + $0x4], 4294965248  ;;  %v8682_v3 = vld [vmem:[#allocation87_spill] sm:$0xff]  ;;  %v8683_v5 = vld [vmem:[#allocation96_spill] sm:$0xff]  ;;  %s8687_s21 = sld [smem:[#allocation42_spill]]  ;;  %s8698_s25 = sld [smem:[#allocation45_spill]] }
 0x971   :  { %6294 = vmatpush3.bf16.msra.mxu1 %v8682_v3  ;;  %v8684_v28 = vld [vmem:[#allocation88_spill] sm:$0xff]  ;;  %v8685_v23 = vld [vmem:[#allocation97_spill] sm:$0xff]  ;;  %v8688_v29 = vld [vmem:[#allocation98_spill] sm:$0xff]  ;;  %s8699_s29 = sld [smem:[#allocation43_spill]]  ;;  %vm5311_vm2 = vcmask 1043456   ;;  %vm5307_vm3 = vcmask 64512  }
 0x972   :  { %6295 = vmatprep.subr.bf16.mxu1 %v8683_v5  ;;  %v8686_v33 = vld [vmem:[#allocation89_spill] sm:$0xff]  ;;  %v8689_v38 = vld [vmem:[#allocation90_spill] sm:$0xff]  ;;  %v8690_v20 = vld [vmem:[#allocation99_spill] sm:$0xff]  ;;  %s8700_s3 = sld [smem:[#allocation44_spill]] }
 0x973   :  { %v8691_v62 = vld [vmem:[#allocation91_spill] sm:$0xff]  ;;  %v8692_v39 = vld [vmem:[#allocation100_spill] sm:$0xff]  ;;  %v8694_v56 = vld [vmem:[#allocation101_spill] sm:$0xff] }
 0x974   :  { %v8693_v32 = vld [vmem:[#allocation92_spill] sm:$0xff]  ;;  %v8695_v19 = vld [vmem:[#allocation93_spill] sm:$0xff]  ;;  %v8696_v49 = vld [vmem:[#allocation102_spill] sm:$0xff] }
 0x975   :  { %6296 = vmatpush3.bf16.msra.mxu1 %v8684_v28  ;;  %v8697_v15 = vld [vmem:[#allocation94_spill] sm:$0xff] }
 0x976   :  { %6297 = vmatprep.subr.bf16.mxu1 %v8685_v23  ;;  %v6209_v53 = vld [vmem:[%s8687_s21] ss:$0 sm:$0xff] }
 0x977   :  { %v5305_v9 = vld [vmem:[%s8698_s25] sm:$0xf]  ;;  %v6212_v10 = vld [vmem:[%s8699_s29 + $0x5] ss:$0 sm:$0xff]  ;;  %v6213_v13 = vld [vmem:[%s8699_s29 + $0x7] ss:$0 sm:$0xff] }
 0x978   :  { %v6211_v14 = vld [vmem:[%s8699_s29 + $0x4] ss:$0 sm:$0xff]  ;;  %v6214_v16 = vld [vmem:[%s8699_s29 + $0x8] ss:$0 sm:$0xff]  ;;  %v6215_v35 = vld [vmem:[%s8700_s3] ss:$0 sm:$0xff] }
 0x979   :  { %6298 = vmatpush3.bf16.msra.mxu1 %v8686_v33 }
 0x97a   :  { %6299 = vmatprep.subr.bf16.mxu1 %v8688_v29 }
 0x97d   :  { %6300 = vmatpush3.bf16.msra.mxu1 %v8689_v38 }
 0x97e   :  { %6301 = vmatprep.subr.bf16.mxu1 %v8690_v20 }
 0x981   :  { %6302 = vmatpush3.bf16.msra.mxu1 %v8691_v62 }
 0x982   :  { %6303 = vmatprep.subr.bf16.mxu1 %v8692_v39 }
 0x985   :  { %6304 = vmatpush3.bf16.msra.mxu1 %v8693_v32 }
 0x986   :  { %6305 = vmatprep.subr.bf16.mxu1 %v8694_v56 }
 0x989   :  { %6306 = vmatpush3.bf16.msra.mxu1 %v8695_v19 }
 0x98a   :  { %6307 = vmatprep.subr.bf16.mxu1 %v8696_v49 }
 0x98d   :  { %6308 = vmatpush3.bf16.msra.mxu1 %v8697_v15 }
 0x98e   :  { %6368 = vmatprep.subr.bf16.mxu1 %v6941_v54 }
 0x990   :  { %5292 = vmatmul.mubr.bf16.vlgmr.msra.gmra.mrb[60].mxu1 %v5231_v41 }
 0x991   :  { %6370 = vmatprep.mubr.msk.bf16.mxu1 %vm6942_vm0, %v6941_v54 }
 0xa63   :  { %v6309_v59 = vpop.f32.mrb[60].mxu1 }
 0xa64   :  { %v6310_v47 = vpop.f32.mrb[61].mxu1 }
 0xa65   :  { %v6311_v55 = vadd.f32 %v6310_v47, %v6309_v59  ;;  %v6312_v52 = vpop.f32.mrb[62].mxu1 }
 0xa66   :  { %v6313_v30 = vpop.f32.mrb[63].mxu1 }
 0xa67   :  { %v5294_v44 = vadd.f32 %v6311_v55, %v6209_v53 }
 0xa69   :  { %v5299_v26 = vmax.f32 %v5294_v44, 0.0 }
 0xa6b   :  { %v5300_v0 = vmin.f32 %v5299_v26, 6.0 }
 0xa6d   :  { %v5306_v2 = vpack.c.bf16 %v5300_v0, %v5300_v0 }
 0xa6f   :  { %v5313_v7 = vsel %vm5311_vm2, %v5306_v2, 0 }
 0xa70   :  { %6369 = vmatpush3.bf16.msra.mxu1 %v5313_v7 }
 0xa73   :  { %6371 = vmatmul.mubr.msk.bf16.vlgmr.msra.gmra.mrb[64].mxu1 %vm5307_vm3, %v5305_v9 }
 0xb46   :  { %v5349_v24 = vpop.f32.mrb[64].mxu1 }
 0xb47   :  { %v5368_v48 = vmul.f32 %v6212_v10, %v5349_v24  ;;  %v5379_v34 = vmul.f32 %v6213_v13, %v5349_v24  ;;  %v6372_v57 = vpop.f32.mrb[65].mxu1  ;;  %v5361_v60 = vmul.f32 %v6211_v14, %v5349_v24  ;;  %v5390_v50 = vmul.f32 %v6214_v16, %v5349_v24 }
 0xb48   :  { %v5352_v11 = vpop.f32.mrb[66].mxu1 }
 0xb49   :  { %v5370_v22 = vrot.slane %v5368_v48, 2  ;;  %v6373_v58 = vpop.f32.mrb[67].mxu1  ;;  %v5381_v21 = vrot.slane %v5379_v34, 4  ;;  %v5392_v36 = vrot.slane %v5390_v50, 6 }
 0xb4b   :  { %v5372_v37 = vadd.f32 %v5370_v22, %v5361_v60 }
 0xb4d   :  { %v5383_v43 = vadd.f32 %v5381_v21, %v5372_v37 }
 0xb4f   :  { %v5394_v25 = vadd.f32 %v5392_v36, %v5383_v43 }
 0xb51   :  { %v5402_v27 = vadd.f32 %v6215_v35, %v5394_v25 }
 0xb53   :  { %v5403_v18 = vmax.f32 %v5402_v27, 0.0 }
 0xb55   :  { %v5404_v63 = vmin.f32 %v5403_v18, 6.0 }
 0xb57   :  { %v5405_v8 = vpack.c.bf16 %v5404_v63, %v5404_v63 }
 0xb58   :  { %6897 = dma.done.wait [#allocation10 + $0x5], 2048 }
 0xb59   :  { %6898 = vsyncadd [#allocation10 + $0x5], 4294965248  ;;  %5468 = vmatprep.mubr.bf16.mxu0 %v6940_v40  ;;  %v5409_v51 = vld [vmem:[#allocation7 + $0x8] sm:$0xff]  ;;  %v5408_v17 = vld [vmem:[#allocation7] sm:$0xff]  ;;  %s8701_s8 = sld [smem:[#allocation46_spill]] }
 0xb5a   :  { %v5411_v46 = vld [vmem:[#allocation7 + $0x18] sm:$0xff]  ;;  %5436 = vmatprep.subr.bf16.mxu0 %v5409_v51  ;;  %v5410_v45 = vld [vmem:[#allocation7 + $0x10] sm:$0xff]  ;;  %v5413_v1 = vld [vmem:[#allocation7 + $0x28] sm:$0xff] }
 0xb5b   :  { %5437 = vmatpush1.bf16.msra.mxu0 %v5408_v17  ;;  %v5412_v4 = vld [vmem:[#allocation7 + $0x20] sm:$0xff]  ;;  %v5415_v6 = vld [vmem:[#allocation7 + $0x38] sm:$0xff]  ;;  %v5414_v41 = vld [vmem:[#allocation7 + $0x30] sm:$0xff] }
 0xb5c   :  { %5438 = vmatprep.subr.bf16.mxu0 %v5411_v46  ;;  %v5417_v61 = vld [vmem:[#allocation7 + $0x48] sm:$0xff]  ;;  %v5416_v40 = vld [vmem:[#allocation7 + $0x40] sm:$0xff]  ;;  %v5419_v31 = vld [vmem:[#allocation7 + $0x58] sm:$0xff] }
 0xb5d   :  { %v5418_v3 = vld [vmem:[#allocation7 + $0x50] sm:$0xff]  ;;  %v5421_v5 = vld [vmem:[#allocation7 + $0x68] sm:$0xff]  ;;  %v5420_v28 = vld [vmem:[#allocation7 + $0x60] sm:$0xff] }
 0xb5e   :  { %v5423_v23 = vld [vmem:[#allocation7 + $0x78] sm:$0xff]  ;;  %v5422_v33 = vld [vmem:[#allocation7 + $0x70] sm:$0xff] }
 0xb5f   :  { %5439 = vmatpush1.bf16.msra.mxu0 %v5410_v45  ;;  %v5424_v29 = vld [vmem:[%s8701_s8] sm:$0x3]  ;;  %v8702_v44 = vld [vmem:[#allocation111_spill] sm:$0xff] }
 0xb60   :  { %5440 = vmatprep.subr.bf16.mxu0 %v5413_v1  ;;  %v5429_v38 = vrot.slane %v5424_v29, %v8632_v12  ;;  %v5433_v20 = vrot.slane %v5424_v29, %v8635_v42  ;;  %6317 = vmatprep.subr.bf16.mxu1 %v8702_v44 }
 0xb63   :  { %5441 = vmatpush1.bf16.msra.mxu0 %v5412_v4 }
 0xb64   :  { %5442 = vmatprep.subr.bf16.mxu0 %v5415_v6 }
 0xb67   :  { %5443 = vmatpush1.bf16.msra.mxu0 %v5414_v41 }
 0xb68   :  { %5444 = vmatprep.subr.bf16.mxu0 %v5417_v61 }
 0xb6b   :  { %5445 = vmatpush1.bf16.msra.mxu0 %v5416_v40 }
 0xb6c   :  { %5446 = vmatprep.subr.bf16.mxu0 %v5419_v31 }
 0xb6f   :  { %5447 = vmatpush1.bf16.msra.mxu0 %v5418_v3 }
 0xb70   :  { %5448 = vmatprep.subr.bf16.mxu0 %v5421_v5 }
 0xb73   :  { %5449 = vmatpush1.bf16.msra.mxu0 %v5420_v28 }
 0xb74   :  { %5450 = vmatprep.subr.bf16.mxu0 %v5423_v23 }
 0xb77   :  { %5451 = vmatpush1.bf16.msra.mxu0 %v5422_v33 }
 0xb7a   :  { %5469 = vmatmul.mubr.bf16.vlgmr.msra.gmra.mrb[100].mxu0 %v5405_v8 }
 0xc4d   :  { %v5470_v62 = vpop.f32.mrb[100].mxu0 }
 0xc4e   :  { %v5471_v39 = vadd.f32 %v5470_v62, %v5429_v38  ;;  %v5472_v32 = vpop.f32.mrb[101].mxu0 }
 0xc4f   :  { %v5473_v56 = vadd.f32 %v5472_v32, %v5433_v20  ;;  %v5474_v19 = vpop.f32.mrb[102].mxu0 }
 0xc50   :  { %v5477_v49 = vmax.f32 %v5471_v39, 0.0  ;;  %v5475_v15 = vpop.f32.mrb[103].mxu0 }
 0xc51   :  { %v5478_v59 = vmax.f32 %v5473_v56, 0.0 }
 0xc52   :  { %v5479_v53 = vmin.f32 %v5477_v49, 6.0 }
 0xc53   :  { %v5480_v47 = vmin.f32 %v5478_v59, 6.0 }
 0xc54   :  { %v5493_v55 = vpack.c.bf16 %v5479_v53, %v5479_v53 }
 0xc55   :  { %v5483_v52 = vcombine.low %v5479_v53, %v5480_v47  ;;  %v5494_v30 = vpack.c.bf16 %v5480_v47, %v5480_v47 }
 0xc57   :  { %6216 = vst.sshfl [vmem:[#allocation15] sm:$0x33 pattern:$0x76325410] %v5483_v52  ;;  %5552 = vmatprep.mubr.bf16.mxu1 %v5494_v30 }
 0xc58   :  { %6899 = dma.done.wait [#allocation10 + $0x6], 2048 }
 0xc59   :  { %6900 = vsyncadd [#allocation10 + $0x6], 4294965248  ;;  %v8703_v12 = vld [vmem:[#allocation103_spill] sm:$0xff]  ;;  %v8704_v42 = vld [vmem:[#allocation112_spill] sm:$0xff]  ;;  %s8706_s30 = sld [smem:[#allocation47_spill]]  ;;  %s8714_s6 = sld [smem:[#allocation48_spill]]  ;;  %6374 = vmatprep.subr.bf16.mxu0 %v6941_v54  ;;  %6382 = vmatprep.mubr.msk.bf16.mxu0 %vm6942_vm0, %v6941_v54 }
 0xc5a   :  { %6318 = vmatpush3.bf16.msra.mxu1 %v8703_v12  ;;  %v8705_v26 = vld [vmem:[#allocation104_spill] sm:$0xff]  ;;  %v8707_v0 = vld [vmem:[#allocation113_spill] sm:$0xff]  ;;  %v8709_v7 = vld [vmem:[#allocation114_spill] sm:$0xff]  ;;  %s8717_s12 = sld [smem:[#allocation49_spill]] }
 0xc5b   :  { %6319 = vmatprep.subr.bf16.mxu1 %v8704_v42  ;;  %v8708_v2 = vld [vmem:[#allocation105_spill] sm:$0xff]  ;;  %v8710_v9 = vld [vmem:[#allocation106_spill] sm:$0xff]  ;;  %v8711_v10 = vld [vmem:[#allocation115_spill] sm:$0xff] }
 0xc5c   :  { %v8712_v13 = vld [vmem:[#allocation107_spill] sm:$0xff]  ;;  %v8713_v14 = vld [vmem:[#allocation116_spill] sm:$0xff]  ;;  %v8716_v24 = vld [vmem:[#allocation117_spill] sm:$0xff] }
 0xc5d   :  { %v8715_v16 = vld [vmem:[#allocation108_spill] sm:$0xff]  ;;  %v8718_v48 = vld [vmem:[#allocation109_spill] sm:$0xff]  ;;  %v8719_v34 = vld [vmem:[#allocation118_spill] sm:$0xff] }
 0xc5e   :  { %6320 = vmatpush3.bf16.msra.mxu1 %v8705_v26  ;;  %v8720_v57 = vld [vmem:[#allocation110_spill] sm:$0xff] }
 0xc5f   :  { %6321 = vmatprep.subr.bf16.mxu1 %v8707_v0  ;;  %v6217_v60 = vld [vmem:[%s8706_s30] ss:$0 sm:$0xff]  ;;  %v6218_v36 = vld [vmem:[%s8714_s6 + $0x4] ss:$0 sm:$0xff] }
 0xc60   :  { %v6219_v25 = vld [vmem:[%s8717_s12] ss:$0 sm:$0xff] }
 0xc62   :  { %6322 = vmatpush3.bf16.msra.mxu1 %v8708_v2 }
 0xc63   :  { %6323 = vmatprep.subr.bf16.mxu1 %v8709_v7 }
 0xc66   :  { %6324 = vmatpush3.bf16.msra.mxu1 %v8710_v9 }
 0xc67   :  { %6325 = vmatprep.subr.bf16.mxu1 %v8711_v10 }
 0xc6a   :  { %6326 = vmatpush3.bf16.msra.mxu1 %v8712_v13 }
 0xc6b   :  { %6327 = vmatprep.subr.bf16.mxu1 %v8713_v14 }
 0xc6e   :  { %6328 = vmatpush3.bf16.msra.mxu1 %v8715_v16 }
 0xc6f   :  { %6329 = vmatprep.subr.bf16.mxu1 %v8716_v24 }
 0xc72   :  { %6330 = vmatpush3.bf16.msra.mxu1 %v8718_v48 }
 0xc73   :  { %6331 = vmatprep.subr.bf16.mxu1 %v8719_v34 }
 0xc76   :  { %6332 = vmatpush3.bf16.msra.mxu1 %v8720_v57 }
 0xc79   :  { %5553 = vmatmul.mubr.bf16.vlgmr.msra.gmra.mrb[68].mxu1 %v5493_v55 }
 0xd4c   :  { %v6333_v11 = vpop.f32.mrb[68].mxu1 }
 0xd4d   :  { %v6334_v22 = vpop.f32.mrb[69].mxu1 }
 0xd4e   :  { %v6335_v50 = vadd.f32 %v6334_v22, %v6333_v11  ;;  %v6336_v58 = vpop.f32.mrb[70].mxu1 }
 0xd4f   :  { %v6337_v37 = vpop.f32.mrb[71].mxu1 }
 0xd50   :  { %v5555_v21 = vadd.f32 %v6335_v50, %v6217_v60 }
 0xd52   :  { %v5560_v43 = vmax.f32 %v5555_v21, 0.0 }
 0xd54   :  { %v5561_v35 = vmin.f32 %v5560_v43, 6.0 }
 0xd56   :  { %v5569_v27 = vmul.f32 %v6218_v36, %v5561_v35 }
 0xd58   :  { %v5577_v18 = vadd.f32 %v6219_v25, %v5569_v27 }
 0xd5a   :  { %v5578_v63 = vmax.f32 %v5577_v18, 0.0 }
 0xd5c   :  { %v5579_v8 = vmin.f32 %v5578_v63, 6.0 }
 0xd5e   :  { %v5580_v51 = vpack.c.bf16 %v5579_v8, %v5579_v8 }
 0xd5f   :  { %6901 = dma.done.wait [#allocation10 + $0x7], 512 }
 0xd60   :  { %6902 = vsyncadd [#allocation10 + $0x7], 4294966784  ;;  %v8721_v17 = vld [vmem:[#allocation119_spill] sm:$0xff]  ;;  %v8722_v46 = vld [vmem:[#allocation120_spill] sm:$0xff]  ;;  %vm5596_vm4 = vcmask 523264   ;;  %s6943_s20 = smov [#allocation13]  }
 0xd61   :  { %6375 = vmatpush3.bf16.msra.mxu0 %v8721_v17  ;;  %v8723_v45 = vld [vmem:[#allocation121_spill] sm:$0xff]  ;;  %v8724_v1 = vld [vmem:[#allocation122_spill] sm:$0xff]  ;;  %s5661_s27 = sshll.u32 %s6943_s20, 4  ;;  %s6944_s22 = smov [#allocation11]   ;;  %s5662_s27 = int_to_ptr.vmem [resolvable:$true] %s5661_s27 }
 0xd62   :  { %6376 = vmatprep.subr.bf16.mxu0 %v6941_v54  ;;  %s5648_s23 = sshll.u32 %s6944_s22, 4  ;;  %s6799_s26 = scalar_lea.vmem %s5662_s27, 256  ;;  %s5649_s23 = int_to_ptr.vmem [resolvable:$true] %s5648_s23 }
 0xd63   :  { %p6800_p0 = scmp.ne.s32.totalorder %s5662_s27, %s6799_s26  ;;  %p6804_p1 = scmp.lt.s32.totalorder %s5662_s27, %s5662_s27 }
 0xd64   :  { %p6805_p2 = scmp.lt.s32.totalorder %s6799_s26, %s6799_s26 }
 0xd65   :  { %6377 = vmatpush3.bf16.msra.mxu0 %v8722_v46 }
 0xd66   :  { %6378 = vmatprep.subr.bf16.mxu0 %v6941_v54  ;;  %p6806_p3 = por %p6805_p2, %p6804_p1 }
 0xd68   :  { %p6807_p4 = pnand %p6806_p3, %p6800_p0 }
 0xd69   :  { %6379 = vmatpush3.bf16.msra.mxu0 %v8723_v45 }
 0xd6a   :  { %6380 = vmatprep.subr.bf16.mxu0 %v6941_v54 }
 0xd6d   :  { %6381 = vmatpush3.bf16.msra.mxu0 %v8724_v1 }
 0xd70   :  { %6383 = vmatmul.mubr.msk.bf16.vlgmr.msra.gmra.mrb[104].mxu0 %vm5596_vm4, %v5580_v51 }
 0xd71   :  { %6810 = shalt.err (!%p6807_p4)
}
 0xd72   :  { %s6811_s28 = scalar_lea.hbm %s7102_s4, 256 }
 0xd73   :  { %p6812_p5 = scmp.ne.s32.totalorder %s7102_s4, %s6811_s28  ;;  %p6815_p6 = scmp.lt.u32.totalorder %s6811_s28, %s7102_s4 }
 0xd75   :  { %p6817_p7 = pnand %p6815_p6, %p6812_p5 }
 0xd77   :  { %6820 = shalt.err (!%p6817_p7)
}
 0xd78   :  { %5664 = dma.vmem_to_hbm [thread:$0]  %s5662_s27, 256, %s7102_s4, [#allocation14]  }
 0xd79   :  { %s6821_s1 = scalar_lea.vmem %s5649_s23, 2048  ;;  %p6826_p9 = scmp.lt.s32.totalorder %s5649_s23, %s5649_s23 }
 0xd7a   :  { %p6822_p8 = scmp.ne.s32.totalorder %s5649_s23, %s6821_s1  ;;  %p6827_p10 = scmp.lt.s32.totalorder %s6821_s1, %s6821_s1 }
 0xd7c   :  { %p6828_p11 = por %p6827_p10, %p6826_p9 }
 0xd7e   :  { %p6829_p12 = pnand %p6828_p11, %p6822_p8 }
 0xd80   :  { %6832 = shalt.err (!%p6829_p12)
}
 0xd81   :  { %s6833_s2 = scalar_lea.hbm %s7097_s19, 2048 }
 0xd82   :  { %p6834_p13 = scmp.ne.s32.totalorder %s7097_s19, %s6833_s2  ;;  %p6837_p0 = scmp.lt.u32.totalorder %s6833_s2, %s7097_s19 }
 0xd84   :  { %p6839_p1 = pnand %p6837_p0, %p6834_p13 }
 0xd86   :  { %6842 = shalt.err (!%p6839_p1)
}
 0xd87   :  { %s6945_s7 = smov 512   ;;  %s6946_s10 = smov 32  }
 0xd88   :  { %5654 = dma.vmem_to_hbm [thread:$0]  %s5649_s23, 2048, %s7097_s19, [#allocation12], %s6945_s7, %s6945_s7, %s6946_s10  }
 0xd89   :  { %s6947_s4 = smov [#allocation15]  }
 0xd8a   :  { %s5671_s11 = sshll.u32 %s6947_s4, 4  ;;  %s5672_s11 = int_to_ptr.vmem [resolvable:$true] %s5671_s11 }
 0xd8b   :  { %s6843_s15 = scalar_lea.vmem %s5672_s11, 64  ;;  %p6848_p3 = scmp.lt.s32.totalorder %s5672_s11, %s5672_s11 }
 0xd8c   :  { %p6844_p2 = scmp.ne.s32.totalorder %s5672_s11, %s6843_s15  ;;  %p6849_p4 = scmp.lt.s32.totalorder %s6843_s15, %s6843_s15 }
 0xd8e   :  { %p6850_p5 = por %p6849_p4, %p6848_p3 }
 0xd90   :  { %p6851_p6 = pnand %p6850_p5, %p6844_p2 }
 0xd92   :  { %6854 = shalt.err (!%p6851_p6)
}
 0xd93   :  { %s6855_s16 = scalar_lea.hbm %s7107_s14, 64 }
 0xd94   :  { %p6856_p7 = scmp.ne.s32.totalorder %s7107_s14, %s6855_s16  ;;  %p6859_p8 = scmp.lt.u32.totalorder %s6855_s16, %s7107_s14 }
 0xd96   :  { %p6861_p9 = pnand %p6859_p8, %p6856_p7 }
 0xd98   :  { %6864 = shalt.err (!%p6861_p9)
}
 0xd99   :  { %s8725_s19 = sld [smem:[#allocation50_spill]]  ;;  %s6948_s18 = smov [#allocation16]  }
 0xd9a   :  { %5674 = dma.vmem_to_hbm [thread:$0]  %s5672_s11, 64, %s7107_s14, [#allocation14]  }
 0xd9b   :  { %s5681_s0 = sshll.u32 %s6948_s18, 4  ;;  %s5682_s0 = int_to_ptr.vmem [resolvable:$true] %s5681_s0 }
 0xd9c   :  { %s6865_s5 = scalar_lea.vmem %s5682_s0, 32  ;;  %p6870_p11 = scmp.lt.s32.totalorder %s5682_s0, %s5682_s0 }
 0xd9d   :  { %p6866_p10 = scmp.ne.s32.totalorder %s5682_s0, %s6865_s5  ;;  %p6871_p12 = scmp.lt.s32.totalorder %s6865_s5, %s6865_s5 }
 0xd9f   :  { %v6220_v54 = vld [vmem:[%s8725_s19] ss:$0 sm:$0xff]  ;;  %p6872_p13 = por %p6871_p12, %p6870_p11 }
 0xda1   :  { %p6873_p0 = pnand %p6872_p13, %p6866_p10 }
 0xe43   :  { %v5634_v4 = vpop.f32.mrb[104].mxu0 }
 0xe44   :  { %v5635_v6 = vadd.f32 %v6220_v54, %v5634_v4  ;;  %v6384_v41 = vpop.f32.mrb[105].mxu0 }
 0xe45   :  { %v5637_v61 = vpop.f32.mrb[106].mxu0 }
 0xe46   :  { %v5640_v40 = vmax.f32 %v5635_v6, 0.0  ;;  %v6385_v31 = vpop.f32.mrb[107].mxu0 }
 0xe48   :  { %v5641_v3 = vmin.f32 %v5640_v40, 6.0 }
 0xe4a   :  { %5642 = vst [vmem:[#allocation16] sm:$0x3] %v5641_v3 }
 0xe4b   :  { %6876 = shalt.err (!%p6873_p0)
}
 0xe4c   :  { %s6877_s14 = scalar_lea.hbm %s7112_s24, 32 }
 0xe4d   :  { %p6878_p1 = scmp.ne.s32.totalorder %s7112_s24, %s6877_s14  ;;  %p6881_p2 = scmp.lt.u32.totalorder %s6877_s14, %s7112_s24 }
 0xe4f   :  { %p6883_p3 = pnand %p6881_p2, %p6878_p1 }
 0xe51   :  { %6886 = shalt.err (!%p6883_p3)
}
 0xe52   :  { %5684 = dma.vmem_to_hbm [thread:$0]  %s5682_s0, 32, %s7112_s24, [#allocation17]  }
 0xe53   :  { %6903 = dma.done.wait [#allocation12], 2048  }
 0xe54   :  { %6904 = vsyncadd [#allocation12], 4294965248 }
 0xe55   :  { %6905 = dma.done.wait [#allocation14], 320  }
 0xe56   :  { %6906 = vsyncadd [#allocation14], 4294966976 }
 0xe57   :  { %6907 = dma.done.wait [#allocation17], 32  }
 0xe58   :  { %6908 = vsyncadd [#allocation17], 4294967264 }
 0xe59   :  { %5697 = vsyncpa [#allocation12], 1 }
 0xe5a   :  { %5698 = vsyncpa [#allocation14], 1 }
 0xe5b   :  { %5699 = vsyncpa [#allocation17], 1 }
 0xe5c   :  { %5700 = vsyncmov [#allocation10] }
 0xe5f   :  { %s5701_s9 = vpop.sfrf %5700 }
 0xe60   :  { %p6222_p4 = scmp.ne.s32.totalorder %s5701_s9, 0 }
 0xe62   :  { %5705 = shalt.err (%p6222_p4)  }
 0xe63   :  { %5707 = vsyncmov [#allocation10 + $0x1] }
 0xe66   :  { %s5708_s13 = vpop.sfrf %5707 }
 0xe67   :  { %p6223_p5 = scmp.ne.s32.totalorder %s5708_s13, 0 }
 0xe69   :  { %5712 = shalt.err (%p6223_p5)  }
 0xe6a   :  { %5714 = vsyncmov [#allocation10 + $0x2] }
 0xe6d   :  { %s5715_s17 = vpop.sfrf %5714 }
 0xe6e   :  { %p6224_p6 = scmp.ne.s32.totalorder %s5715_s17, 0 }
 0xe70   :  { %5719 = shalt.err (%p6224_p6)  }
 0xe71   :  { %5721 = vsyncmov [#allocation10 + $0x3] }
 0xe74   :  { %s5722_s24 = vpop.sfrf %5721 }
 0xe75   :  { %p6225_p7 = scmp.ne.s32.totalorder %s5722_s24, 0 }
 0xe77   :  { %5726 = shalt.err (%p6225_p7)  }
 0xe78   :  { %5728 = vsyncmov [#allocation10 + $0x4] }
 0xe7b   :  { %s5729_s21 = vpop.sfrf %5728 }
 0xe7c   :  { %p6226_p8 = scmp.ne.s32.totalorder %s5729_s21, 0 }
 0xe7e   :  { %5733 = shalt.err (%p6226_p8)  }
 0xe7f   :  { %5735 = vsyncmov [#allocation10 + $0x5] }
 0xe82   :  { %s5736_s25 = vpop.sfrf %5735 }
 0xe83   :  { %p6227_p9 = scmp.ne.s32.totalorder %s5736_s25, 0 }
 0xe85   :  { %5740 = shalt.err (%p6227_p9)  }
 0xe86   :  { %5742 = vsyncmov [#allocation10 + $0x6] }
 0xe89   :  { %s5743_s29 = vpop.sfrf %5742 }
 0xe8a   :  { %p6228_p10 = scmp.ne.s32.totalorder %s5743_s29, 0 }
 0xe8c   :  { %5747 = shalt.err (%p6228_p10)  }
 0xe8d   :  { %5749 = vsyncmov [#allocation10 + $0x7] }
 0xe90   :  { %s5750_s3 = vpop.sfrf %5749 }
 0xe91   :  { %p6229_p11 = scmp.ne.s32.totalorder %s5750_s3, 0 }
 0xe93   :  { %5754 = shalt.err (%p6229_p11)  }

</bundles_post_ra>
